<compile_context>
chip_gen: v7x
topology: tpu7x:2x2x1
jax: 0.10.0
libtpu: 0.0.40
codegen_flags: <defaults>
</compile_context>

<pallas_src>
import numpy as np
import jax
import jax.numpy as jnp
from jax import lax
from jax.experimental import pallas as pl
from jax.experimental.pallas import tpu as pltpu


def _round_up(x, m):
    return (x + m - 1) // m * m


def _pick_time_block(T, max_ts=32):
    ts = min(T, max_ts)
    while T % ts != 0:
        ts -= 1
    return ts


def _bilstm_kernel(gf_ref, gb_ref, whf_ref, whb_ref, h0_ref, c0_ref,
                   of_ref, ob_ref, hn_ref, cn_ref,
                   h_f, c_f, h_b, c_b):
    """One grid step = one block of TS timesteps.
    Forward direction sees time block tb, backward direction sees the mirrored
    block (handled by the BlockSpec index maps); inside the block the backward
    direction walks local indices TS-1..0."""
    tb = pl.program_id(0)
    TS = of_ref.shape[0]
    Hp = h_f.shape[-1]

    @pl.when(tb == 0)
    def _():
        h_f[...] = h0_ref[0]
        c_f[...] = c0_ref[0]
        h_b[...] = h0_ref[1]
        c_b[...] = c0_ref[1]

    # Read the recurrent weights once per time block (hoisted out of the
    # per-timestep loop).
    w_f = whf_ref[...]
    w_b = whb_ref[...]

    def lstm_step(g_pre, h, c, w):
        # g_pre (bf16) already contains x @ W_i + b; only the recurrent matmul
        # runs here.  f32 operands, f32 accumulation (bf16 + f32 promotes to
        # f32 for the add).
        gates = g_pre + jnp.dot(h, w, preferred_element_type=jnp.float32)
        # Gate slices are 128-lane aligned because H was padded to Hp.
        i_g = jax.nn.sigmoid(gates[:, 0 * Hp:1 * Hp])
        f_g = jax.nn.sigmoid(gates[:, 1 * Hp:2 * Hp])
        g_g = jnp.tanh(gates[:, 2 * Hp:3 * Hp])
        o_g = jax.nn.sigmoid(gates[:, 3 * Hp:4 * Hp])
        c_new = f_g * c + i_g * g_g
        h_new = o_g * jnp.tanh(c_new)
        return h_new, c_new

    def body(s, carry):
        # forward direction, local timestep s
        h_new, c_new = lstm_step(gf_ref[s], h_f[...], c_f[...], w_f)
        h_f[...] = h_new
        c_f[...] = c_new
        of_ref[s] = h_new.astype(of_ref.dtype)

        # backward direction, local timestep TS-1-s (block already mirrored)
        sb = TS - 1 - s
        hb_new, cb_new = lstm_step(gb_ref[sb], h_b[...], c_b[...], w_b)
        h_b[...] = hb_new
        c_b[...] = cb_new
        ob_ref[sb] = hb_new.astype(ob_ref.dtype)
        return carry

    # Partial unroll: keeps the fwd/bwd interleave for latency hiding without
    # blowing the vreg budget when TS is large.
    lax.fori_loop(0, TS, body, 0, unroll=min(TS, 8))

    # Final hidden / cell states: only the last grid step writes them
    # (the blocks are resident across the grid).
    @pl.when(tb == pl.num_programs(0) - 1)
    def _():
        hn_ref[0] = h_f[...]
        hn_ref[1] = h_b[...]
        cn_ref[0] = c_f[...]
        cn_ref[1] = c_b[...]


def _pad_gate_cols(w, H, Hp):
    """[..., 4H] -> [..., 4Hp], placing gate g's columns at g*Hp (zero pad)."""
    lead = w.shape[:-1]
    w4 = w.reshape(*lead, 4, H)
    out = jnp.zeros((*lead, 4, Hp), w.dtype).at[..., :H].set(w4)
    return out.reshape(*lead, 4 * Hp)


def _invariant_spec(block_shape, index_map):
    """BlockSpec for a grid-invariant operand, single-buffered when the
    installed Pallas supports pipeline_mode (saves dead double-buffer VMEM)."""
    try:
        return pl.BlockSpec(block_shape, index_map, pipeline_mode=pl.Buffered(1))
    except TypeError:  # older Pallas without pipeline_mode
        return pl.BlockSpec(block_shape, index_map)


def encoder_cell_forward(sent_variable, hidden, params, *, max_time_block=32):
    """sent_variable: [B, T, D] float32 (batch_first, like the PyTorch module)
       hidden:        (h0, c0), each [2, B, H] (2 = num_directions, nlayers=1)
       returns:       output [B, T, 2H], (h_n [2, B, H], c_n [2, B, H])"""
    B, T, D = sent_variable.shape
    H = params["hidden_size"]
    h0, c0 = hidden

    Bp = _round_up(B, 8)        # sublane-dense batch
    Hp = _round_up(H, 128)      # lane-dense hidden width (per direction)
    TS = _pick_time_block(T, max_time_block)
    nblk = T // TS

    # Pad batch once (f32; all dots run in f32).
    x_p = jnp.zeros((Bp, T, D), jnp.float32).at[:B].set(
        sent_variable.astype(jnp.float32))

    def prep_direction(d):
        wi = _pad_gate_cols(params[f"wi_{d}"], H, Hp)                   # [D, 4Hp]
        wh = _pad_gate_cols(params[f"wh_{d}"], H, Hp)                   # [H, 4Hp]
        wh = jnp.zeros((Hp, 4 * Hp), jnp.float32).at[:H].set(wh)        # [Hp, 4Hp]
        b = _pad_gate_cols(params[f"b_{d}"], H, Hp)                     # [1, 4Hp]
        # Hoisted input projection (one big f32 matmul), emitted time-major
        # and stored bf16: these blocks dominate pipelined VMEM + HBM traffic.
        gates_in = (jnp.einsum("btd,dg->tbg", x_p, wi,
                               preferred_element_type=jnp.float32)
                    + b).astype(jnp.bfloat16)                            # [T, Bp, 4Hp]
        return gates_in, wh

    gates_f, wh_f = prep_direction("f")
    gates_b, wh_b = prep_direction("b")

    h0_p = jnp.zeros((2, Bp, Hp), jnp.float32).at[:, :B, :H].set(
        h0.astype(jnp.float32))
    c0_p = jnp.zeros((2, Bp, Hp), jnp.float32).at[:, :B, :H].set(
        c0.astype(jnp.float32))

    grid_spec = pltpu.PrefetchScalarGridSpec(
        num_scalar_prefetch=0,
        grid=(nblk,),
        in_specs=[
            pl.BlockSpec((TS, Bp, 4 * Hp), lambda tb: (tb, 0, 0)),             # fwd gates (bf16)
            pl.BlockSpec((TS, Bp, 4 * Hp), lambda tb: (nblk - 1 - tb, 0, 0)),  # bwd gates (bf16)
            _invariant_spec((Hp, 4 * Hp), lambda tb: (0, 0)),                  # W_h fwd (f32)
            _invariant_spec((Hp, 4 * Hp), lambda tb: (0, 0)),                  # W_h bwd (f32)
            _invariant_spec((2, Bp, Hp), lambda tb: (0, 0, 0)),                # h0
            _invariant_spec((2, Bp, Hp), lambda tb: (0, 0, 0)),                # c0
        ],
        out_specs=[
            pl.BlockSpec((TS, Bp, Hp), lambda tb: (tb, 0, 0)),                 # fwd output (bf16)
            pl.BlockSpec((TS, Bp, Hp), lambda tb: (nblk - 1 - tb, 0, 0)),      # bwd output (bf16)
            pl.BlockSpec((2, Bp, Hp), lambda tb: (0, 0, 0)),                   # h_n
            pl.BlockSpec((2, Bp, Hp), lambda tb: (0, 0, 0)),                   # c_n
        ],
        scratch_shapes=[
            pltpu.VMEM((Bp, Hp), jnp.float32),  # h_f
            pltpu.VMEM((Bp, Hp), jnp.float32),  # c_f
            pltpu.VMEM((Bp, Hp), jnp.float32),  # h_b
            pltpu.VMEM((Bp, Hp), jnp.float32),  # c_b
        ],
    )

    out_f, out_b, h_n, c_n = pl.pallas_call(
        _bilstm_kernel,
        out_shape=(jax.ShapeDtypeStruct((T, Bp, Hp), jnp.bfloat16),
                   jax.ShapeDtypeStruct((T, Bp, Hp), jnp.bfloat16),
                   jax.ShapeDtypeStruct((2, Bp, Hp), jnp.float32),
                   jax.ShapeDtypeStruct((2, Bp, Hp), jnp.float32)),
        grid_spec=grid_spec,
        compiler_params=pltpu.CompilerParams(
            dimension_semantics=("arbitrary",)),   # sequential recurrence in time
    )(gates_f, gates_b, wh_f, wh_b, h0_p, c0_p)

    out = jnp.concatenate([out_f[:, :B, :H], out_b[:, :B, :H]], axis=-1)  # [T, B, 2H] bf16
    out = jnp.transpose(out, (1, 0, 2)).astype(jnp.float32)               # [B, T, 2H] f32
    return out, (h_n[:, :B, :H], c_n[:, :B, :H])


def _ref_bilstm(x, hidden, params):
    """Pure-JAX f32 reference (Python time loop) for verification."""
    B, T, D = x.shape
    H = params["hidden_size"]
    h0, c0 = hidden
    outs, finals_h, finals_c = [], [], []
    for d_idx, d in enumerate(("f", "b")):
        wi, wh, b = params[f"wi_{d}"], params[f"wh_{d}"], params[f"b_{d}"]
        h = h0[d_idx].astype(jnp.float32)
        c = c0[d_idx].astype(jnp.float32)
        out = jnp.zeros((B, T, H), jnp.float32)
        ts = range(T) if d == "f" else range(T - 1, -1, -1)
        for t in ts:
            gates = x[:, t] @ wi + h @ wh + b
            i_g = jax.nn.sigmoid(gates[:, 0 * H:1 * H])
            f_g = jax.nn.sigmoid(gates[:, 1 * H:2 * H])
            g_g = jnp.tanh(gates[:, 2 * H:3 * H])
            o_g = jax.nn.sigmoid(gates[:, 3 * H:4 * H])
            c = f_g * c + i_g * g_g
            h = o_g * jnp.tanh(c)
            out = out.at[:, t].set(h)
        outs.append(out)
        finals_h.append(h)
        finals_c.append(c)
    return (jnp.concatenate(outs, axis=-1),
            (jnp.stack(finals_h), jnp.stack(finals_c)))


def _init_params(key, input_size, hidden_size):
    """Deterministic synthetic LSTM parameters (PyTorch gate order i,f,g,o),
    transposed to [in, 4H] for right-multiplication; b = b_ih + b_hh."""
    H, D = hidden_size, input_size
    scale = 1.0 / np.sqrt(H)
    ks = jax.random.split(key, 8)
    u = lambda k, shape: jax.random.uniform(k, shape, jnp.float32, -scale, scale)
    return {
        "hidden_size": H,
        "wi_f": u(ks[0], (D, 4 * H)),
        "wh_f": u(ks[1], (H, 4 * H)),
        "b_f": u(ks[2], (1, 4 * H)) + u(ks[3], (1, 4 * H)),
        "wi_b": u(ks[4], (D, 4 * H)),
        "wh_b": u(ks[5], (H, 4 * H)),
        "b_b": u(ks[6], (1, 4 * H)) + u(ks[7], (1, 4 * H)),
    }


if __name__ == "__main__":
    # Small shapes: batch=4, seq=8, input_size=16, hidden_size=32 (bidirectional)
    B, T, D, H = 4, 8, 16, 32
    key = jax.random.PRNGKey(0)
    k_x, k_p = jax.random.split(key)

    sent_variable = jax.random.normal(k_x, (B, T, D), jnp.float32)
    params = _init_params(k_p, D, H)
    # init_weights(bsz): zero initial hidden / cell state, shape [nlayers*2, B, H]
    hidden = (jnp.zeros((2, B, H), jnp.float32), jnp.zeros((2, B, H), jnp.float32))

    out, (h_n, c_n) = encoder_cell_forward(sent_variable, hidden, params)
    out = jax.block_until_ready(out)

    ref_out, (ref_h, ref_c) = _ref_bilstm(sent_variable, hidden, params)

    # bf16 gate/output storage in the kernel vs f32 reference -> loose tol.
    np.testing.assert_allclose(np.asarray(out), np.asarray(ref_out),
                               rtol=2e-2, atol=2e-2)
    np.testing.assert_allclose(np.asarray(h_n), np.asarray(ref_h),
                               rtol=2e-2, atol=2e-2)
    np.testing.assert_allclose(np.asarray(c_n), np.asarray(ref_c),
                               rtol=2e-2, atol=2e-2)

    assert out.shape == (B, T, 2 * H)
    assert h_n.shape == (2, B, H) and c_n.shape == (2, B, H)
    print("KERNEL_OK")
</pallas_src>

<mosaic_0001>
module attributes {stable_mosaic.version = 11 : i64} {
  func.func @_bilstm_kernel(%arg0: i32, %arg1: memref<8x8x512xbf16, #tpu.memory_space<vmem>>, %arg2: memref<8x8x512xbf16, #tpu.memory_space<vmem>>, %arg3: memref<128x512xf32, #tpu.memory_space<vmem>>, %arg4: memref<128x512xf32, #tpu.memory_space<vmem>>, %arg5: memref<2x8x128xf32, #tpu.memory_space<vmem>>, %arg6: memref<2x8x128xf32, #tpu.memory_space<vmem>>, %arg7: memref<8x8x128xbf16, #tpu.memory_space<vmem>>, %arg8: memref<8x8x128xbf16, #tpu.memory_space<vmem>>, %arg9: memref<2x8x128xf32, #tpu.memory_space<vmem>>, %arg10: memref<2x8x128xf32, #tpu.memory_space<vmem>>, %arg11: memref<8x128xf32, #tpu.memory_space<vmem>>, %arg12: memref<8x128xf32, #tpu.memory_space<vmem>>, %arg13: memref<8x128xf32, #tpu.memory_space<vmem>>, %arg14: memref<8x128xf32, #tpu.memory_space<vmem>>) attributes {dimension_semantics = [#tpu.dimension_semantics<arbitrary>], iteration_bounds = array<i64: 1>, scalar_prefetch = 0 : i64, scratch_operands = 4 : i64, tpu.core_type = #tpu.core_type<tc>, window_params = [{transform_indices = @transform_0, window_bounds = array<i64: 8, 8, 512>}, {transform_indices = @transform_1, window_bounds = array<i64: 8, 8, 512>}, {pipeline_mode = #tpu.pipeline_mode<synchronous>, transform_indices = @transform_2, window_bounds = array<i64: 128, 512>}, {pipeline_mode = #tpu.pipeline_mode<synchronous>, transform_indices = @transform_3, window_bounds = array<i64: 128, 512>}, {pipeline_mode = #tpu.pipeline_mode<synchronous>, transform_indices = @transform_4, window_bounds = array<i64: 2, 8, 128>}, {pipeline_mode = #tpu.pipeline_mode<synchronous>, transform_indices = @transform_5, window_bounds = array<i64: 2, 8, 128>}, {transform_indices = @transform_6, window_bounds = array<i64: 8, 8, 128>}, {transform_indices = @transform_7, window_bounds = array<i64: 8, 8, 128>}, {pipeline_mode = #tpu.pipeline_mode<synchronous>, transform_indices = @transform_8, window_bounds = array<i64: 2, 8, 128>}, {pipeline_mode = #tpu.pipeline_mode<synchronous>, transform_indices = @transform_9, window_bounds = array<i64: 2, 8, 128>}]} {
    %c0_i32 = arith.constant 0 : i32
    %0 = arith.cmpi eq, %arg0, %c0_i32 : i32
    %1 = arith.extui %0 : i1 to i32
    %c0_i32_0 = arith.constant 0 : i32
    %2 = arith.cmpi ne, %1, %c0_i32_0 : i32
    scf.if %2 {
      %c0_270 = arith.constant 0 : index
      %c0_271 = arith.constant 0 : index
      %c0_272 = arith.constant 0 : index
      %656 = vector.load %arg5[%c0_270, %c0_271, %c0_272] : memref<2x8x128xf32, #tpu.memory_space<vmem>>, vector<1x8x128xf32>
      %657 = vector.shape_cast %656 : vector<1x8x128xf32> to vector<8x128xf32>
      %c0_273 = arith.constant 0 : index
      %c0_274 = arith.constant 0 : index
      %658 = vector.load %arg11[%c0_273, %c0_274] : memref<8x128xf32, #tpu.memory_space<vmem>>, vector<8x128xf32>
      tpu.vector_store %arg11[%c0_273, %c0_274], %657 {strides = array<i32>} : memref<8x128xf32, #tpu.memory_space<vmem>>, vector<8x128xf32>,
      %c0_275 = arith.constant 0 : index
      %c0_276 = arith.constant 0 : index
      %c0_277 = arith.constant 0 : index
      %659 = vector.load %arg6[%c0_275, %c0_276, %c0_277] : memref<2x8x128xf32, #tpu.memory_space<vmem>>, vector<1x8x128xf32>
      %660 = vector.shape_cast %659 : vector<1x8x128xf32> to vector<8x128xf32>
      %c0_278 = arith.constant 0 : index
      %c0_279 = arith.constant 0 : index
      %661 = vector.load %arg12[%c0_278, %c0_279] : memref<8x128xf32, #tpu.memory_space<vmem>>, vector<8x128xf32>
      tpu.vector_store %arg12[%c0_278, %c0_279], %660 {strides = array<i32>} : memref<8x128xf32, #tpu.memory_space<vmem>>, vector<8x128xf32>,
      %c1 = arith.constant 1 : index
      %c0_280 = arith.constant 0 : index
      %c0_281 = arith.constant 0 : index
      %662 = vector.load %arg5[%c1, %c0_280, %c0_281] : memref<2x8x128xf32, #tpu.memory_space<vmem>>, vector<1x8x128xf32>
      %663 = vector.shape_cast %662 : vector<1x8x128xf32> to vector<8x128xf32>
      %c0_282 = arith.constant 0 : index
      %c0_283 = arith.constant 0 : index
      %664 = vector.load %arg13[%c0_282, %c0_283] : memref<8x128xf32, #tpu.memory_space<vmem>>, vector<8x128xf32>
      tpu.vector_store %arg13[%c0_282, %c0_283], %663 {strides = array<i32>} : memref<8x128xf32, #tpu.memory_space<vmem>>, vector<8x128xf32>,
      %c1_284 = arith.constant 1 : index
      %c0_285 = arith.constant 0 : index
      %c0_286 = arith.constant 0 : index
      %665 = vector.load %arg6[%c1_284, %c0_285, %c0_286] : memref<2x8x128xf32, #tpu.memory_space<vmem>>, vector<1x8x128xf32>
      %666 = vector.shape_cast %665 : vector<1x8x128xf32> to vector<8x128xf32>
      %c0_287 = arith.constant 0 : index
      %c0_288 = arith.constant 0 : index
      %667 = vector.load %arg14[%c0_287, %c0_288] : memref<8x128xf32, #tpu.memory_space<vmem>>, vector<8x128xf32>
      tpu.vector_store %arg14[%c0_287, %c0_288], %666 {strides = array<i32>} : memref<8x128xf32, #tpu.memory_space<vmem>>, vector<8x128xf32>,
    } else {
    }
    %c0 = arith.constant 0 : index
    %c0_1 = arith.constant 0 : index
    %3 = vector.load %arg3[%c0, %c0_1] : memref<128x512xf32, #tpu.memory_space<vmem>>, vector<128x512xf32>
    %c0_2 = arith.constant 0 : index
    %c0_3 = arith.constant 0 : index
    %4 = vector.load %arg4[%c0_2, %c0_3] : memref<128x512xf32, #tpu.memory_space<vmem>>, vector<128x512xf32>
    %c0_i32_4 = arith.constant 0 : i32
    %5 = arith.index_cast %c0_i32_4 : i32 to index
    %c0_5 = arith.constant 0 : index
    %c0_6 = arith.constant 0 : index
    %6 = vector.load %arg1[%5, %c0_5, %c0_6] : memref<8x8x512xbf16, #tpu.memory_space<vmem>>, vector<1x8x512xbf16>
    %7 = vector.shape_cast %6 : vector<1x8x512xbf16> to vector<8x512xbf16>
    %c0_7 = arith.constant 0 : index
    %c0_8 = arith.constant 0 : index
    %8 = vector.load %arg11[%c0_7, %c0_8] : memref<8x128xf32, #tpu.memory_space<vmem>>, vector<8x128xf32>
    %c0_9 = arith.constant 0 : index
    %c0_10 = arith.constant 0 : index
    %9 = vector.load %arg12[%c0_9, %c0_10] : memref<8x128xf32, #tpu.memory_space<vmem>>, vector<8x128xf32>
    %cst = arith.constant dense<0.000000e+00> : vector<8x512xf32>
    %10 = tpu.matmul %8, %3, %cst {dimension_numbers = #tpu.dot_dimension_numbers<[1], [0], [0], [1], [0, 0, 1, 1], [], []>} : vector<8x128xf32>, vector<128x512xf32>, vector<8x512xf32> -> vector<8x512xf32>
    %11 = arith.extf %7 : vector<8x512xbf16> to vector<8x512xf32>
    %12 = arith.addf %11, %10 : vector<8x512xf32>
    %13 = vector.extract_strided_slice %12 {offsets = [0, 0], sizes = [8, 128], strides = [1, 1]} : vector<8x512xf32> to vector<8x128xf32>
    %14 = arith.negf %13 : vector<8x128xf32>
    %15 = math.exp %14 : vector<8x128xf32>
    %cst_11 = arith.constant 1.000000e+00 : f32
    %16 = vector.broadcast %cst_11 : f32 to vector<8x128xf32>
    %17 = arith.addf %16, %15 : vector<8x128xf32>
    %18 = arith.divf %16, %17 : vector<8x128xf32>
    %19 = vector.extract_strided_slice %12 {offsets = [0, 128], sizes = [8, 128], strides = [1, 1]} : vector<8x512xf32> to vector<8x128xf32>
    %20 = arith.negf %19 : vector<8x128xf32>
    %21 = math.exp %20 : vector<8x128xf32>
    %cst_12 = arith.constant 1.000000e+00 : f32
    %22 = vector.broadcast %cst_12 : f32 to vector<8x128xf32>
    %23 = arith.addf %22, %21 : vector<8x128xf32>
    %24 = arith.divf %22, %23 : vector<8x128xf32>
    %25 = vector.extract_strided_slice %12 {offsets = [0, 256], sizes = [8, 128], strides = [1, 1]} : vector<8x512xf32> to vector<8x128xf32>
    %26 = math.tanh %25 : vector<8x128xf32>
    %27 = vector.extract_strided_slice %12 {offsets = [0, 384], sizes = [8, 128], strides = [1, 1]} : vector<8x512xf32> to vector<8x128xf32>
    %28 = arith.negf %27 : vector<8x128xf32>
    %29 = math.exp %28 : vector<8x128xf32>
    %cst_13 = arith.constant 1.000000e+00 : f32
    %30 = vector.broadcast %cst_13 : f32 to vector<8x128xf32>
    %31 = arith.addf %30, %29 : vector<8x128xf32>
    %32 = arith.divf %30, %31 : vector<8x128xf32>
    %33 = arith.mulf %24, %9 : vector<8x128xf32>
    %34 = arith.mulf %18, %26 : vector<8x128xf32>
    %35 = arith.addf %33, %34 : vector<8x128xf32>
    %36 = math.tanh %35 : vector<8x128xf32>
    %37 = arith.mulf %32, %36 : vector<8x128xf32>
    %c0_14 = arith.constant 0 : index
    %c0_15 = arith.constant 0 : index
    %38 = vector.load %arg11[%c0_14, %c0_15] : memref<8x128xf32, #tpu.memory_space<vmem>>, vector<8x128xf32>
    tpu.vector_store %arg11[%c0_14, %c0_15], %37 {strides = array<i32>} : memref<8x128xf32, #tpu.memory_space<vmem>>, vector<8x128xf32>,
    %c0_16 = arith.constant 0 : index
    %c0_17 = arith.constant 0 : index
    %39 = vector.load %arg12[%c0_16, %c0_17] : memref<8x128xf32, #tpu.memory_space<vmem>>, vector<8x128xf32>
    tpu.vector_store %arg12[%c0_16, %c0_17], %35 {strides = array<i32>} : memref<8x128xf32, #tpu.memory_space<vmem>>, vector<8x128xf32>,
    %40 = arith.truncf %37 : vector<8x128xf32> to vector<8x128xbf16>
    %41 = arith.index_cast %c0_i32_4 : i32 to index
    %c0_18 = arith.constant 0 : index
    %c0_19 = arith.constant 0 : index
    %42 = vector.load %arg7[%41, %c0_18, %c0_19] : memref<8x8x128xbf16, #tpu.memory_space<vmem>>, vector<1x8x128xbf16>
    %43 = vector.shape_cast %42 : vector<1x8x128xbf16> to vector<8x128xbf16>
    %44 = vector.shape_cast %40 : vector<8x128xbf16> to vector<1x8x128xbf16>
    tpu.vector_store %arg7[%41, %c0_18, %c0_19], %44 {strides = array<i32>} : memref<8x8x128xbf16, #tpu.memory_space<vmem>>, vector<1x8x128xbf16>,
    %c7_i32 = arith.constant 7 : i32
    %45 = arith.subi %c7_i32, %c0_i32_4 : i32
    %46 = arith.index_cast %45 : i32 to index
    %c0_20 = arith.constant 0 : index
    %c0_21 = arith.constant 0 : index
    %47 = vector.load %arg2[%46, %c0_20, %c0_21] : memref<8x8x512xbf16, #tpu.memory_space<vmem>>, vector<1x8x512xbf16>
    %48 = vector.shape_cast %47 : vector<1x8x512xbf16> to vector<8x512xbf16>
    %c0_22 = arith.constant 0 : index
    %c0_23 = arith.constant 0 : index
    %49 = vector.load %arg13[%c0_22, %c0_23] : memref<8x128xf32, #tpu.memory_space<vmem>>, vector<8x128xf32>
    %c0_24 = arith.constant 0 : index
    %c0_25 = arith.constant 0 : index
    %50 = vector.load %arg14[%c0_24, %c0_25] : memref<8x128xf32, #tpu.memory_space<vmem>>, vector<8x128xf32>
    %cst_26 = arith.constant dense<0.000000e+00> : vector<8x512xf32>
    %51 = tpu.matmul %49, %4, %cst_26 {dimension_numbers = #tpu.dot_dimension_numbers<[1], [0], [0], [1], [0, 0, 1, 1], [], []>} : vector<8x128xf32>, vector<128x512xf32>, vector<8x512xf32> -> vector<8x512xf32>
    %52 = arith.extf %48 : vector<8x512xbf16> to vector<8x512xf32>
    %53 = arith.addf %52, %51 : vector<8x512xf32>
    %54 = vector.extract_strided_slice %53 {offsets = [0, 0], sizes = [8, 128], strides = [1, 1]} : vector<8x512xf32> to vector<8x128xf32>
    %55 = arith.negf %54 : vector<8x128xf32>
    %56 = math.exp %55 : vector<8x128xf32>
    %cst_27 = arith.constant 1.000000e+00 : f32
    %57 = vector.broadcast %cst_27 : f32 to vector<8x128xf32>
    %58 = arith.addf %57, %56 : vector<8x128xf32>
    %59 = arith.divf %57, %58 : vector<8x128xf32>
    %60 = vector.extract_strided_slice %53 {offsets = [0, 128], sizes = [8, 128], strides = [1, 1]} : vector<8x512xf32> to vector<8x128xf32>
    %61 = arith.negf %60 : vector<8x128xf32>
    %62 = math.exp %61 : vector<8x128xf32>
    %cst_28 = arith.constant 1.000000e+00 : f32
    %63 = vector.broadcast %cst_28 : f32 to vector<8x128xf32>
    %64 = arith.addf %63, %62 : vector<8x128xf32>
    %65 = arith.divf %63, %64 : vector<8x128xf32>
    %66 = vector.extract_strided_slice %53 {offsets = [0, 256], sizes = [8, 128], strides = [1, 1]} : vector<8x512xf32> to vector<8x128xf32>
    %67 = math.tanh %66 : vector<8x128xf32>
    %68 = vector.extract_strided_slice %53 {offsets = [0, 384], sizes = [8, 128], strides = [1, 1]} : vector<8x512xf32> to vector<8x128xf32>
    %69 = arith.negf %68 : vector<8x128xf32>
    %70 = math.exp %69 : vector<8x128xf32>
    %cst_29 = arith.constant 1.000000e+00 : f32
    %71 = vector.broadcast %cst_29 : f32 to vector<8x128xf32>
    %72 = arith.addf %71, %70 : vector<8x128xf32>
    %73 = arith.divf %71, %72 : vector<8x128xf32>
    %74 = arith.mulf %65, %50 : vector<8x128xf32>
    %75 = arith.mulf %59, %67 : vector<8x128xf32>
    %76 = arith.addf %74, %75 : vector<8x128xf32>
    %77 = math.tanh %76 : vector<8x128xf32>
    %78 = arith.mulf %73, %77 : vector<8x128xf32>
    %c0_30 = arith.constant 0 : index
    %c0_31 = arith.constant 0 : index
    %79 = vector.load %arg13[%c0_30, %c0_31] : memref<8x128xf32, #tpu.memory_space<vmem>>, vector<8x128xf32>
    tpu.vector_store %arg13[%c0_30, %c0_31], %78 {strides = array<i32>} : memref<8x128xf32, #tpu.memory_space<vmem>>, vector<8x128xf32>,
    %c0_32 = arith.constant 0 : index
    %c0_33 = arith.constant 0 : index
    %80 = vector.load %arg14[%c0_32, %c0_33] : memref<8x128xf32, #tpu.memory_space<vmem>>, vector<8x128xf32>
    tpu.vector_store %arg14[%c0_32, %c0_33], %76 {strides = array<i32>} : memref<8x128xf32, #tpu.memory_space<vmem>>, vector<8x128xf32>,
    %81 = arith.truncf %78 : vector<8x128xf32> to vector<8x128xbf16>
    %82 = arith.index_cast %45 : i32 to index
    %c0_34 = arith.constant 0 : index
    %c0_35 = arith.constant 0 : index
    %83 = vector.load %arg8[%82, %c0_34, %c0_35] : memref<8x8x128xbf16, #tpu.memory_space<vmem>>, vector<1x8x128xbf16>
    %84 = vector.shape_cast %83 : vector<1x8x128xbf16> to vector<8x128xbf16>
    %85 = vector.shape_cast %81 : vector<8x128xbf16> to vector<1x8x128xbf16>
    tpu.vector_store %arg8[%82, %c0_34, %c0_35], %85 {strides = array<i32>} : memref<8x8x128xbf16, #tpu.memory_space<vmem>>, vector<1x8x128xbf16>,
    %c1_i32 = arith.constant 1 : i32
    %86 = arith.index_cast %c1_i32 : i32 to index
    %c0_36 = arith.constant 0 : index
    %c0_37 = arith.constant 0 : index
    %87 = vector.load %arg1[%86, %c0_36, %c0_37] : memref<8x8x512xbf16, #tpu.memory_space<vmem>>, vector<1x8x512xbf16>
    %88 = vector.shape_cast %87 : vector<1x8x512xbf16> to vector<8x512xbf16>
    %c0_38 = arith.constant 0 : index
    %c0_39 = arith.constant 0 : index
    %89 = vector.load %arg11[%c0_38, %c0_39] : memref<8x128xf32, #tpu.memory_space<vmem>>, vector<8x128xf32>
    %c0_40 = arith.constant 0 : index
    %c0_41 = arith.constant 0 : index
    %90 = vector.load %arg12[%c0_40, %c0_41] : memref<8x128xf32, #tpu.memory_space<vmem>>, vector<8x128xf32>
    %cst_42 = arith.constant dense<0.000000e+00> : vector<8x512xf32>
    %91 = tpu.matmul %89, %3, %cst_42 {dimension_numbers = #tpu.dot_dimension_numbers<[1], [0], [0], [1], [0, 0, 1, 1], [], []>} : vector<8x128xf32>, vector<128x512xf32>, vector<8x512xf32> -> vector<8x512xf32>
    %92 = arith.extf %88 : vector<8x512xbf16> to vector<8x512xf32>
    %93 = arith.addf %92, %91 : vector<8x512xf32>
    %94 = vector.extract_strided_slice %93 {offsets = [0, 0], sizes = [8, 128], strides = [1, 1]} : vector<8x512xf32> to vector<8x128xf32>
    %95 = arith.negf %94 : vector<8x128xf32>
    %96 = math.exp %95 : vector<8x128xf32>
    %cst_43 = arith.constant 1.000000e+00 : f32
    %97 = vector.broadcast %cst_43 : f32 to vector<8x128xf32>
    %98 = arith.addf %97, %96 : vector<8x128xf32>
    %99 = arith.divf %97, %98 : vector<8x128xf32>
    %100 = vector.extract_strided_slice %93 {offsets = [0, 128], sizes = [8, 128], strides = [1, 1]} : vector<8x512xf32> to vector<8x128xf32>
    %101 = arith.negf %100 : vector<8x128xf32>
    %102 = math.exp %101 : vector<8x128xf32>
    %cst_44 = arith.constant 1.000000e+00 : f32
    %103 = vector.broadcast %cst_44 : f32 to vector<8x128xf32>
    %104 = arith.addf %103, %102 : vector<8x128xf32>
    %105 = arith.divf %103, %104 : vector<8x128xf32>
    %106 = vector.extract_strided_slice %93 {offsets = [0, 256], sizes = [8, 128], strides = [1, 1]} : vector<8x512xf32> to vector<8x128xf32>
    %107 = math.tanh %106 : vector<8x128xf32>
    %108 = vector.extract_strided_slice %93 {offsets = [0, 384], sizes = [8, 128], strides = [1, 1]} : vector<8x512xf32> to vector<8x128xf32>
    %109 = arith.negf %108 : vector<8x128xf32>
    %110 = math.exp %109 : vector<8x128xf32>
    %cst_45 = arith.constant 1.000000e+00 : f32
    %111 = vector.broadcast %cst_45 : f32 to vector<8x128xf32>
    %112 = arith.addf %111, %110 : vector<8x128xf32>
    %113 = arith.divf %111, %112 : vector<8x128xf32>
    %114 = arith.mulf %105, %90 : vector<8x128xf32>
    %115 = arith.mulf %99, %107 : vector<8x128xf32>
    %116 = arith.addf %114, %115 : vector<8x128xf32>
    %117 = math.tanh %116 : vector<8x128xf32>
    %118 = arith.mulf %113, %117 : vector<8x128xf32>
    %c0_46 = arith.constant 0 : index
    %c0_47 = arith.constant 0 : index
    %119 = vector.load %arg11[%c0_46, %c0_47] : memref<8x128xf32, #tpu.memory_space<vmem>>, vector<8x128xf32>
    tpu.vector_store %arg11[%c0_46, %c0_47], %118 {strides = array<i32>} : memref<8x128xf32, #tpu.memory_space<vmem>>, vector<8x128xf32>,
    %c0_48 = arith.constant 0 : index
    %c0_49 = arith.constant 0 : index
    %120 = vector.load %arg12[%c0_48, %c0_49] : memref<8x128xf32, #tpu.memory_space<vmem>>, vector<8x128xf32>
    tpu.vector_store %arg12[%c0_48, %c0_49], %116 {strides = array<i32>} : memref<8x128xf32, #tpu.memory_space<vmem>>, vector<8x128xf32>,
    %121 = arith.truncf %118 : vector<8x128xf32> to vector<8x128xbf16>
    %122 = arith.index_cast %c1_i32 : i32 to index
    %c0_50 = arith.constant 0 : index
    %c0_51 = arith.constant 0 : index
    %123 = vector.load %arg7[%122, %c0_50, %c0_51] : memref<8x8x128xbf16, #tpu.memory_space<vmem>>, vector<1x8x128xbf16>
    %124 = vector.shape_cast %123 : vector<1x8x128xbf16> to vector<8x128xbf16>
    %125 = vector.shape_cast %121 : vector<8x128xbf16> to vector<1x8x128xbf16>
    tpu.vector_store %arg7[%122, %c0_50, %c0_51], %125 {strides = array<i32>} : memref<8x8x128xbf16, #tpu.memory_space<vmem>>, vector<1x8x128xbf16>,
    %c7_i32_52 = arith.constant 7 : i32
    %126 = arith.subi %c7_i32_52, %c1_i32 : i32
    %127 = arith.index_cast %126 : i32 to index
    %c0_53 = arith.constant 0 : index
    %c0_54 = arith.constant 0 : index
    %128 = vector.load %arg2[%127, %c0_53, %c0_54] : memref<8x8x512xbf16, #tpu.memory_space<vmem>>, vector<1x8x512xbf16>
    %129 = vector.shape_cast %128 : vector<1x8x512xbf16> to vector<8x512xbf16>
    %c0_55 = arith.constant 0 : index
    %c0_56 = arith.constant 0 : index
    %130 = vector.load %arg13[%c0_55, %c0_56] : memref<8x128xf32, #tpu.memory_space<vmem>>, vector<8x128xf32>
    %c0_57 = arith.constant 0 : index
    %c0_58 = arith.constant 0 : index
    %131 = vector.load %arg14[%c0_57, %c0_58] : memref<8x128xf32, #tpu.memory_space<vmem>>, vector<8x128xf32>
    %cst_59 = arith.constant dense<0.000000e+00> : vector<8x512xf32>
    %132 = tpu.matmul %130, %4, %cst_59 {dimension_numbers = #tpu.dot_dimension_numbers<[1], [0], [0], [1], [0, 0, 1, 1], [], []>} : vector<8x128xf32>, vector<128x512xf32>, vector<8x512xf32> -> vector<8x512xf32>
    %133 = arith.extf %129 : vector<8x512xbf16> to vector<8x512xf32>
    %134 = arith.addf %133, %132 : vector<8x512xf32>
    %135 = vector.extract_strided_slice %134 {offsets = [0, 0], sizes = [8, 128], strides = [1, 1]} : vector<8x512xf32> to vector<8x128xf32>
    %136 = arith.negf %135 : vector<8x128xf32>
    %137 = math.exp %136 : vector<8x128xf32>
    %cst_60 = arith.constant 1.000000e+00 : f32
    %138 = vector.broadcast %cst_60 : f32 to vector<8x128xf32>
    %139 = arith.addf %138, %137 : vector<8x128xf32>
    %140 = arith.divf %138, %139 : vector<8x128xf32>
    %141 = vector.extract_strided_slice %134 {offsets = [0, 128], sizes = [8, 128], strides = [1, 1]} : vector<8x512xf32> to vector<8x128xf32>
    %142 = arith.negf %141 : vector<8x128xf32>
    %143 = math.exp %142 : vector<8x128xf32>
    %cst_61 = arith.constant 1.000000e+00 : f32
    %144 = vector.broadcast %cst_61 : f32 to vector<8x128xf32>
    %145 = arith.addf %144, %143 : vector<8x128xf32>
    %146 = arith.divf %144, %145 : vector<8x128xf32>
    %147 = vector.extract_strided_slice %134 {offsets = [0, 256], sizes = [8, 128], strides = [1, 1]} : vector<8x512xf32> to vector<8x128xf32>
    %148 = math.tanh %147 : vector<8x128xf32>
    %149 = vector.extract_strided_slice %134 {offsets = [0, 384], sizes = [8, 128], strides = [1, 1]} : vector<8x512xf32> to vector<8x128xf32>
    %150 = arith.negf %149 : vector<8x128xf32>
    %151 = math.exp %150 : vector<8x128xf32>
    %cst_62 = arith.constant 1.000000e+00 : f32
    %152 = vector.broadcast %cst_62 : f32 to vector<8x128xf32>
    %153 = arith.addf %152, %151 : vector<8x128xf32>
    %154 = arith.divf %152, %153 : vector<8x128xf32>
    %155 = arith.mulf %146, %131 : vector<8x128xf32>
    %156 = arith.mulf %140, %148 : vector<8x128xf32>
    %157 = arith.addf %155, %156 : vector<8x128xf32>
    %158 = math.tanh %157 : vector<8x128xf32>
    %159 = arith.mulf %154, %158 : vector<8x128xf32>
    %c0_63 = arith.constant 0 : index
    %c0_64 = arith.constant 0 : index
    %160 = vector.load %arg13[%c0_63, %c0_64] : memref<8x128xf32, #tpu.memory_space<vmem>>, vector<8x128xf32>
    tpu.vector_store %arg13[%c0_63, %c0_64], %159 {strides = array<i32>} : memref<8x128xf32, #tpu.memory_space<vmem>>, vector<8x128xf32>,
    %c0_65 = arith.constant 0 : index
    %c0_66 = arith.constant 0 : index
    %161 = vector.load %arg14[%c0_65, %c0_66] : memref<8x128xf32, #tpu.memory_space<vmem>>, vector<8x128xf32>
    tpu.vector_store %arg14[%c0_65, %c0_66], %157 {strides = array<i32>} : memref<8x128xf32, #tpu.memory_space<vmem>>, vector<8x128xf32>,
    %162 = arith.truncf %159 : vector<8x128xf32> to vector<8x128xbf16>
    %163 = arith.index_cast %126 : i32 to index
    %c0_67 = arith.constant 0 : index
    %c0_68 = arith.constant 0 : index
    %164 = vector.load %arg8[%163, %c0_67, %c0_68] : memref<8x8x128xbf16, #tpu.memory_space<vmem>>, vector<1x8x128xbf16>
    %165 = vector.shape_cast %164 : vector<1x8x128xbf16> to vector<8x128xbf16>
    %166 = vector.shape_cast %162 : vector<8x128xbf16> to vector<1x8x128xbf16>
    tpu.vector_store %arg8[%163, %c0_67, %c0_68], %166 {strides = array<i32>} : memref<8x8x128xbf16, #tpu.memory_space<vmem>>, vector<1x8x128xbf16>,
    %c2_i32 = arith.constant 2 : i32
    %167 = arith.index_cast %c2_i32 : i32 to index
    %c0_69 = arith.constant 0 : index
    %c0_70 = arith.constant 0 : index
    %168 = vector.load %arg1[%167, %c0_69, %c0_70] : memref<8x8x512xbf16, #tpu.memory_space<vmem>>, vector<1x8x512xbf16>
    %169 = vector.shape_cast %168 : vector<1x8x512xbf16> to vector<8x512xbf16>
    %c0_71 = arith.constant 0 : index
    %c0_72 = arith.constant 0 : index
    %170 = vector.load %arg11[%c0_71, %c0_72] : memref<8x128xf32, #tpu.memory_space<vmem>>, vector<8x128xf32>
    %c0_73 = arith.constant 0 : index
    %c0_74 = arith.constant 0 : index
    %171 = vector.load %arg12[%c0_73, %c0_74] : memref<8x128xf32, #tpu.memory_space<vmem>>, vector<8x128xf32>
    %cst_75 = arith.constant dense<0.000000e+00> : vector<8x512xf32>
    %172 = tpu.matmul %170, %3, %cst_75 {dimension_numbers = #tpu.dot_dimension_numbers<[1], [0], [0], [1], [0, 0, 1, 1], [], []>} : vector<8x128xf32>, vector<128x512xf32>, vector<8x512xf32> -> vector<8x512xf32>
    %173 = arith.extf %169 : vector<8x512xbf16> to vector<8x512xf32>
    %174 = arith.addf %173, %172 : vector<8x512xf32>
    %175 = vector.extract_strided_slice %174 {offsets = [0, 0], sizes = [8, 128], strides = [1, 1]} : vector<8x512xf32> to vector<8x128xf32>
    %176 = arith.negf %175 : vector<8x128xf32>
    %177 = math.exp %176 : vector<8x128xf32>
    %cst_76 = arith.constant 1.000000e+00 : f32
    %178 = vector.broadcast %cst_76 : f32 to vector<8x128xf32>
    %179 = arith.addf %178, %177 : vector<8x128xf32>
    %180 = arith.divf %178, %179 : vector<8x128xf32>
    %181 = vector.extract_strided_slice %174 {offsets = [0, 128], sizes = [8, 128], strides = [1, 1]} : vector<8x512xf32> to vector<8x128xf32>
    %182 = arith.negf %181 : vector<8x128xf32>
    %183 = math.exp %182 : vector<8x128xf32>
    %cst_77 = arith.constant 1.000000e+00 : f32
    %184 = vector.broadcast %cst_77 : f32 to vector<8x128xf32>
    %185 = arith.addf %184, %183 : vector<8x128xf32>
    %186 = arith.divf %184, %185 : vector<8x128xf32>
    %187 = vector.extract_strided_slice %174 {offsets = [0, 256], sizes = [8, 128], strides = [1, 1]} : vector<8x512xf32> to vector<8x128xf32>
    %188 = math.tanh %187 : vector<8x128xf32>
    %189 = vector.extract_strided_slice %174 {offsets = [0, 384], sizes = [8, 128], strides = [1, 1]} : vector<8x512xf32> to vector<8x128xf32>
    %190 = arith.negf %189 : vector<8x128xf32>
    %191 = math.exp %190 : vector<8x128xf32>
    %cst_78 = arith.constant 1.000000e+00 : f32
    %192 = vector.broadcast %cst_78 : f32 to vector<8x128xf32>
    %193 = arith.addf %192, %191 : vector<8x128xf32>
    %194 = arith.divf %192, %193 : vector<8x128xf32>
    %195 = arith.mulf %186, %171 : vector<8x128xf32>
    %196 = arith.mulf %180, %188 : vector<8x128xf32>
    %197 = arith.addf %195, %196 : vector<8x128xf32>
    %198 = math.tanh %197 : vector<8x128xf32>
    %199 = arith.mulf %194, %198 : vector<8x128xf32>
    %c0_79 = arith.constant 0 : index
    %c0_80 = arith.constant 0 : index
    %200 = vector.load %arg11[%c0_79, %c0_80] : memref<8x128xf32, #tpu.memory_space<vmem>>, vector<8x128xf32>
    tpu.vector_store %arg11[%c0_79, %c0_80], %199 {strides = array<i32>} : memref<8x128xf32, #tpu.memory_space<vmem>>, vector<8x128xf32>,
    %c0_81 = arith.constant 0 : index
    %c0_82 = arith.constant 0 : index
    %201 = vector.load %arg12[%c0_81, %c0_82] : memref<8x128xf32, #tpu.memory_space<vmem>>, vector<8x128xf32>
    tpu.vector_store %arg12[%c0_81, %c0_82], %197 {strides = array<i32>} : memref<8x128xf32, #tpu.memory_space<vmem>>, vector<8x128xf32>,
    %202 = arith.truncf %199 : vector<8x128xf32> to vector<8x128xbf16>
    %203 = arith.index_cast %c2_i32 : i32 to index
    %c0_83 = arith.constant 0 : index
    %c0_84 = arith.constant 0 : index
    %204 = vector.load %arg7[%203, %c0_83, %c0_84] : memref<8x8x128xbf16, #tpu.memory_space<vmem>>, vector<1x8x128xbf16>
    %205 = vector.shape_cast %204 : vector<1x8x128xbf16> to vector<8x128xbf16>
    %206 = vector.shape_cast %202 : vector<8x128xbf16> to vector<1x8x128xbf16>
    tpu.vector_store %arg7[%203, %c0_83, %c0_84], %206 {strides = array<i32>} : memref<8x8x128xbf16, #tpu.memory_space<vmem>>, vector<1x8x128xbf16>,
    %c7_i32_85 = arith.constant 7 : i32
    %207 = arith.subi %c7_i32_85, %c2_i32 : i32
    %208 = arith.index_cast %207 : i32 to index
    %c0_86 = arith.constant 0 : index
    %c0_87 = arith.constant 0 : index
    %209 = vector.load %arg2[%208, %c0_86, %c0_87] : memref<8x8x512xbf16, #tpu.memory_space<vmem>>, vector<1x8x512xbf16>
    %210 = vector.shape_cast %209 : vector<1x8x512xbf16> to vector<8x512xbf16>
    %c0_88 = arith.constant 0 : index
    %c0_89 = arith.constant 0 : index
    %211 = vector.load %arg13[%c0_88, %c0_89] : memref<8x128xf32, #tpu.memory_space<vmem>>, vector<8x128xf32>
    %c0_90 = arith.constant 0 : index
    %c0_91 = arith.constant 0 : index
    %212 = vector.load %arg14[%c0_90, %c0_91] : memref<8x128xf32, #tpu.memory_space<vmem>>, vector<8x128xf32>
    %cst_92 = arith.constant dense<0.000000e+00> : vector<8x512xf32>
    %213 = tpu.matmul %211, %4, %cst_92 {dimension_numbers = #tpu.dot_dimension_numbers<[1], [0], [0], [1], [0, 0, 1, 1], [], []>} : vector<8x128xf32>, vector<128x512xf32>, vector<8x512xf32> -> vector<8x512xf32>
    %214 = arith.extf %210 : vector<8x512xbf16> to vector<8x512xf32>
    %215 = arith.addf %214, %213 : vector<8x512xf32>
    %216 = vector.extract_strided_slice %215 {offsets = [0, 0], sizes = [8, 128], strides = [1, 1]} : vector<8x512xf32> to vector<8x128xf32>
    %217 = arith.negf %216 : vector<8x128xf32>
    %218 = math.exp %217 : vector<8x128xf32>
    %cst_93 = arith.constant 1.000000e+00 : f32
    %219 = vector.broadcast %cst_93 : f32 to vector<8x128xf32>
    %220 = arith.addf %219, %218 : vector<8x128xf32>
    %221 = arith.divf %219, %220 : vector<8x128xf32>
    %222 = vector.extract_strided_slice %215 {offsets = [0, 128], sizes = [8, 128], strides = [1, 1]} : vector<8x512xf32> to vector<8x128xf32>
    %223 = arith.negf %222 : vector<8x128xf32>
    %224 = math.exp %223 : vector<8x128xf32>
    %cst_94 = arith.constant 1.000000e+00 : f32
    %225 = vector.broadcast %cst_94 : f32 to vector<8x128xf32>
    %226 = arith.addf %225, %224 : vector<8x128xf32>
    %227 = arith.divf %225, %226 : vector<8x128xf32>
    %228 = vector.extract_strided_slice %215 {offsets = [0, 256], sizes = [8, 128], strides = [1, 1]} : vector<8x512xf32> to vector<8x128xf32>
    %229 = math.tanh %228 : vector<8x128xf32>
    %230 = vector.extract_strided_slice %215 {offsets = [0, 384], sizes = [8, 128], strides = [1, 1]} : vector<8x512xf32> to vector<8x128xf32>
    %231 = arith.negf %230 : vector<8x128xf32>
    %232 = math.exp %231 : vector<8x128xf32>
    %cst_95 = arith.constant 1.000000e+00 : f32
    %233 = vector.broadcast %cst_95 : f32 to vector<8x128xf32>
    %234 = arith.addf %233, %232 : vector<8x128xf32>
    %235 = arith.divf %233, %234 : vector<8x128xf32>
    %236 = arith.mulf %227, %212 : vector<8x128xf32>
    %237 = arith.mulf %221, %229 : vector<8x128xf32>
    %238 = arith.addf %236, %237 : vector<8x128xf32>
    %239 = math.tanh %238 : vector<8x128xf32>
    %240 = arith.mulf %235, %239 : vector<8x128xf32>
    %c0_96 = arith.constant 0 : index
    %c0_97 = arith.constant 0 : index
    %241 = vector.load %arg13[%c0_96, %c0_97] : memref<8x128xf32, #tpu.memory_space<vmem>>, vector<8x128xf32>
    tpu.vector_store %arg13[%c0_96, %c0_97], %240 {strides = array<i32>} : memref<8x128xf32, #tpu.memory_space<vmem>>, vector<8x128xf32>,
    %c0_98 = arith.constant 0 : index
    %c0_99 = arith.constant 0 : index
    %242 = vector.load %arg14[%c0_98, %c0_99] : memref<8x128xf32, #tpu.memory_space<vmem>>, vector<8x128xf32>
    tpu.vector_store %arg14[%c0_98, %c0_99], %238 {strides = array<i32>} : memref<8x128xf32, #tpu.memory_space<vmem>>, vector<8x128xf32>,
    %243 = arith.truncf %240 : vector<8x128xf32> to vector<8x128xbf16>
    %244 = arith.index_cast %207 : i32 to index
    %c0_100 = arith.constant 0 : index
    %c0_101 = arith.constant 0 : index
    %245 = vector.load %arg8[%244, %c0_100, %c0_101] : memref<8x8x128xbf16, #tpu.memory_space<vmem>>, vector<1x8x128xbf16>
    %246 = vector.shape_cast %245 : vector<1x8x128xbf16> to vector<8x128xbf16>
    %247 = vector.shape_cast %243 : vector<8x128xbf16> to vector<1x8x128xbf16>
    tpu.vector_store %arg8[%244, %c0_100, %c0_101], %247 {strides = array<i32>} : memref<8x8x128xbf16, #tpu.memory_space<vmem>>, vector<1x8x128xbf16>,
    %c3_i32 = arith.constant 3 : i32
    %248 = arith.index_cast %c3_i32 : i32 to index
    %c0_102 = arith.constant 0 : index
    %c0_103 = arith.constant 0 : index
    %249 = vector.load %arg1[%248, %c0_102, %c0_103] : memref<8x8x512xbf16, #tpu.memory_space<vmem>>, vector<1x8x512xbf16>
    %250 = vector.shape_cast %249 : vector<1x8x512xbf16> to vector<8x512xbf16>
    %c0_104 = arith.constant 0 : index
    %c0_105 = arith.constant 0 : index
    %251 = vector.load %arg11[%c0_104, %c0_105] : memref<8x128xf32, #tpu.memory_space<vmem>>, vector<8x128xf32>
    %c0_106 = arith.constant 0 : index
    %c0_107 = arith.constant 0 : index
    %252 = vector.load %arg12[%c0_106, %c0_107] : memref<8x128xf32, #tpu.memory_space<vmem>>, vector<8x128xf32>
    %cst_108 = arith.constant dense<0.000000e+00> : vector<8x512xf32>
    %253 = tpu.matmul %251, %3, %cst_108 {dimension_numbers = #tpu.dot_dimension_numbers<[1], [0], [0], [1], [0, 0, 1, 1], [], []>} : vector<8x128xf32>, vector<128x512xf32>, vector<8x512xf32> -> vector<8x512xf32>
    %254 = arith.extf %250 : vector<8x512xbf16> to vector<8x512xf32>
    %255 = arith.addf %254, %253 : vector<8x512xf32>
    %256 = vector.extract_strided_slice %255 {offsets = [0, 0], sizes = [8, 128], strides = [1, 1]} : vector<8x512xf32> to vector<8x128xf32>
    %257 = arith.negf %256 : vector<8x128xf32>
    %258 = math.exp %257 : vector<8x128xf32>
    %cst_109 = arith.constant 1.000000e+00 : f32
    %259 = vector.broadcast %cst_109 : f32 to vector<8x128xf32>
    %260 = arith.addf %259, %258 : vector<8x128xf32>
    %261 = arith.divf %259, %260 : vector<8x128xf32>
    %262 = vector.extract_strided_slice %255 {offsets = [0, 128], sizes = [8, 128], strides = [1, 1]} : vector<8x512xf32> to vector<8x128xf32>
    %263 = arith.negf %262 : vector<8x128xf32>
    %264 = math.exp %263 : vector<8x128xf32>
    %cst_110 = arith.constant 1.000000e+00 : f32
    %265 = vector.broadcast %cst_110 : f32 to vector<8x128xf32>
    %266 = arith.addf %265, %264 : vector<8x128xf32>
    %267 = arith.divf %265, %266 : vector<8x128xf32>
    %268 = vector.extract_strided_slice %255 {offsets = [0, 256], sizes = [8, 128], strides = [1, 1]} : vector<8x512xf32> to vector<8x128xf32>
    %269 = math.tanh %268 : vector<8x128xf32>
    %270 = vector.extract_strided_slice %255 {offsets = [0, 384], sizes = [8, 128], strides = [1, 1]} : vector<8x512xf32> to vector<8x128xf32>
    %271 = arith.negf %270 : vector<8x128xf32>
    %272 = math.exp %271 : vector<8x128xf32>
    %cst_111 = arith.constant 1.000000e+00 : f32
    %273 = vector.broadcast %cst_111 : f32 to vector<8x128xf32>
    %274 = arith.addf %273, %272 : vector<8x128xf32>
    %275 = arith.divf %273, %274 : vector<8x128xf32>
    %276 = arith.mulf %267, %252 : vector<8x128xf32>
    %277 = arith.mulf %261, %269 : vector<8x128xf32>
    %278 = arith.addf %276, %277 : vector<8x128xf32>
    %279 = math.tanh %278 : vector<8x128xf32>
    %280 = arith.mulf %275, %279 : vector<8x128xf32>
    %c0_112 = arith.constant 0 : index
    %c0_113 = arith.constant 0 : index
    %281 = vector.load %arg11[%c0_112, %c0_113] : memref<8x128xf32, #tpu.memory_space<vmem>>, vector<8x128xf32>
    tpu.vector_store %arg11[%c0_112, %c0_113], %280 {strides = array<i32>} : memref<8x128xf32, #tpu.memory_space<vmem>>, vector<8x128xf32>,
    %c0_114 = arith.constant 0 : index
    %c0_115 = arith.constant 0 : index
    %282 = vector.load %arg12[%c0_114, %c0_115] : memref<8x128xf32, #tpu.memory_space<vmem>>, vector<8x128xf32>
    tpu.vector_store %arg12[%c0_114, %c0_115], %278 {strides = array<i32>} : memref<8x128xf32, #tpu.memory_space<vmem>>, vector<8x128xf32>,
    %283 = arith.truncf %280 : vector<8x128xf32> to vector<8x128xbf16>
    %284 = arith.index_cast %c3_i32 : i32 to index
    %c0_116 = arith.constant 0 : index
    %c0_117 = arith.constant 0 : index
    %285 = vector.load %arg7[%284, %c0_116, %c0_117] : memref<8x8x128xbf16, #tpu.memory_space<vmem>>, vector<1x8x128xbf16>
    %286 = vector.shape_cast %285 : vector<1x8x128xbf16> to vector<8x128xbf16>
    %287 = vector.shape_cast %283 : vector<8x128xbf16> to vector<1x8x128xbf16>
    tpu.vector_store %arg7[%284, %c0_116, %c0_117], %287 {strides = array<i32>} : memref<8x8x128xbf16, #tpu.memory_space<vmem>>, vector<1x8x128xbf16>,
    %c7_i32_118 = arith.constant 7 : i32
    %288 = arith.subi %c7_i32_118, %c3_i32 : i32
    %289 = arith.index_cast %288 : i32 to index
    %c0_119 = arith.constant 0 : index
    %c0_120 = arith.constant 0 : index
    %290 = vector.load %arg2[%289, %c0_119, %c0_120] : memref<8x8x512xbf16, #tpu.memory_space<vmem>>, vector<1x8x512xbf16>
    %291 = vector.shape_cast %290 : vector<1x8x512xbf16> to vector<8x512xbf16>
    %c0_121 = arith.constant 0 : index
    %c0_122 = arith.constant 0 : index
    %292 = vector.load %arg13[%c0_121, %c0_122] : memref<8x128xf32, #tpu.memory_space<vmem>>, vector<8x128xf32>
    %c0_123 = arith.constant 0 : index
    %c0_124 = arith.constant 0 : index
    %293 = vector.load %arg14[%c0_123, %c0_124] : memref<8x128xf32, #tpu.memory_space<vmem>>, vector<8x128xf32>
    %cst_125 = arith.constant dense<0.000000e+00> : vector<8x512xf32>
    %294 = tpu.matmul %292, %4, %cst_125 {dimension_numbers = #tpu.dot_dimension_numbers<[1], [0], [0], [1], [0, 0, 1, 1], [], []>} : vector<8x128xf32>, vector<128x512xf32>, vector<8x512xf32> -> vector<8x512xf32>
    %295 = arith.extf %291 : vector<8x512xbf16> to vector<8x512xf32>
    %296 = arith.addf %295, %294 : vector<8x512xf32>
    %297 = vector.extract_strided_slice %296 {offsets = [0, 0], sizes = [8, 128], strides = [1, 1]} : vector<8x512xf32> to vector<8x128xf32>
    %298 = arith.negf %297 : vector<8x128xf32>
    %299 = math.exp %298 : vector<8x128xf32>
    %cst_126 = arith.constant 1.000000e+00 : f32
    %300 = vector.broadcast %cst_126 : f32 to vector<8x128xf32>
    %301 = arith.addf %300, %299 : vector<8x128xf32>
    %302 = arith.divf %300, %301 : vector<8x128xf32>
    %303 = vector.extract_strided_slice %296 {offsets = [0, 128], sizes = [8, 128], strides = [1, 1]} : vector<8x512xf32> to vector<8x128xf32>
    %304 = arith.negf %303 : vector<8x128xf32>
    %305 = math.exp %304 : vector<8x128xf32>
    %cst_127 = arith.constant 1.000000e+00 : f32
    %306 = vector.broadcast %cst_127 : f32 to vector<8x128xf32>
    %307 = arith.addf %306, %305 : vector<8x128xf32>
    %308 = arith.divf %306, %307 : vector<8x128xf32>
    %309 = vector.extract_strided_slice %296 {offsets = [0, 256], sizes = [8, 128], strides = [1, 1]} : vector<8x512xf32> to vector<8x128xf32>
    %310 = math.tanh %309 : vector<8x128xf32>
    %311 = vector.extract_strided_slice %296 {offsets = [0, 384], sizes = [8, 128], strides = [1, 1]} : vector<8x512xf32> to vector<8x128xf32>
    %312 = arith.negf %311 : vector<8x128xf32>
    %313 = math.exp %312 : vector<8x128xf32>
    %cst_128 = arith.constant 1.000000e+00 : f32
    %314 = vector.broadcast %cst_128 : f32 to vector<8x128xf32>
    %315 = arith.addf %314, %313 : vector<8x128xf32>
    %316 = arith.divf %314, %315 : vector<8x128xf32>
    %317 = arith.mulf %308, %293 : vector<8x128xf32>
    %318 = arith.mulf %302, %310 : vector<8x128xf32>
    %319 = arith.addf %317, %318 : vector<8x128xf32>
    %320 = math.tanh %319 : vector<8x128xf32>
    %321 = arith.mulf %316, %320 : vector<8x128xf32>
    %c0_129 = arith.constant 0 : index
    %c0_130 = arith.constant 0 : index
    %322 = vector.load %arg13[%c0_129, %c0_130] : memref<8x128xf32, #tpu.memory_space<vmem>>, vector<8x128xf32>
    tpu.vector_store %arg13[%c0_129, %c0_130], %321 {strides = array<i32>} : memref<8x128xf32, #tpu.memory_space<vmem>>, vector<8x128xf32>,
    %c0_131 = arith.constant 0 : index
    %c0_132 = arith.constant 0 : index
    %323 = vector.load %arg14[%c0_131, %c0_132] : memref<8x128xf32, #tpu.memory_space<vmem>>, vector<8x128xf32>
    tpu.vector_store %arg14[%c0_131, %c0_132], %319 {strides = array<i32>} : memref<8x128xf32, #tpu.memory_space<vmem>>, vector<8x128xf32>,
    %324 = arith.truncf %321 : vector<8x128xf32> to vector<8x128xbf16>
    %325 = arith.index_cast %288 : i32 to index
    %c0_133 = arith.constant 0 : index
    %c0_134 = arith.constant 0 : index
    %326 = vector.load %arg8[%325, %c0_133, %c0_134] : memref<8x8x128xbf16, #tpu.memory_space<vmem>>, vector<1x8x128xbf16>
    %327 = vector.shape_cast %326 : vector<1x8x128xbf16> to vector<8x128xbf16>
    %328 = vector.shape_cast %324 : vector<8x128xbf16> to vector<1x8x128xbf16>
    tpu.vector_store %arg8[%325, %c0_133, %c0_134], %328 {strides = array<i32>} : memref<8x8x128xbf16, #tpu.memory_space<vmem>>, vector<1x8x128xbf16>,
    %c4_i32 = arith.constant 4 : i32
    %329 = arith.index_cast %c4_i32 : i32 to index
    %c0_135 = arith.constant 0 : index
    %c0_136 = arith.constant 0 : index
    %330 = vector.load %arg1[%329, %c0_135, %c0_136] : memref<8x8x512xbf16, #tpu.memory_space<vmem>>, vector<1x8x512xbf16>
    %331 = vector.shape_cast %330 : vector<1x8x512xbf16> to vector<8x512xbf16>
    %c0_137 = arith.constant 0 : index
    %c0_138 = arith.constant 0 : index
    %332 = vector.load %arg11[%c0_137, %c0_138] : memref<8x128xf32, #tpu.memory_space<vmem>>, vector<8x128xf32>
    %c0_139 = arith.constant 0 : index
    %c0_140 = arith.constant 0 : index
    %333 = vector.load %arg12[%c0_139, %c0_140] : memref<8x128xf32, #tpu.memory_space<vmem>>, vector<8x128xf32>
    %cst_141 = arith.constant dense<0.000000e+00> : vector<8x512xf32>
    %334 = tpu.matmul %332, %3, %cst_141 {dimension_numbers = #tpu.dot_dimension_numbers<[1], [0], [0], [1], [0, 0, 1, 1], [], []>} : vector<8x128xf32>, vector<128x512xf32>, vector<8x512xf32> -> vector<8x512xf32>
    %335 = arith.extf %331 : vector<8x512xbf16> to vector<8x512xf32>
    %336 = arith.addf %335, %334 : vector<8x512xf32>
    %337 = vector.extract_strided_slice %336 {offsets = [0, 0], sizes = [8, 128], strides = [1, 1]} : vector<8x512xf32> to vector<8x128xf32>
    %338 = arith.negf %337 : vector<8x128xf32>
    %339 = math.exp %338 : vector<8x128xf32>
    %cst_142 = arith.constant 1.000000e+00 : f32
    %340 = vector.broadcast %cst_142 : f32 to vector<8x128xf32>
    %341 = arith.addf %340, %339 : vector<8x128xf32>
    %342 = arith.divf %340, %341 : vector<8x128xf32>
    %343 = vector.extract_strided_slice %336 {offsets = [0, 128], sizes = [8, 128], strides = [1, 1]} : vector<8x512xf32> to vector<8x128xf32>
    %344 = arith.negf %343 : vector<8x128xf32>
    %345 = math.exp %344 : vector<8x128xf32>
    %cst_143 = arith.constant 1.000000e+00 : f32
    %346 = vector.broadcast %cst_143 : f32 to vector<8x128xf32>
    %347 = arith.addf %346, %345 : vector<8x128xf32>
    %348 = arith.divf %346, %347 : vector<8x128xf32>
    %349 = vector.extract_strided_slice %336 {offsets = [0, 256], sizes = [8, 128], strides = [1, 1]} : vector<8x512xf32> to vector<8x128xf32>
    %350 = math.tanh %349 : vector<8x128xf32>
    %351 = vector.extract_strided_slice %336 {offsets = [0, 384], sizes = [8, 128], strides = [1, 1]} : vector<8x512xf32> to vector<8x128xf32>
    %352 = arith.negf %351 : vector<8x128xf32>
    %353 = math.exp %352 : vector<8x128xf32>
    %cst_144 = arith.constant 1.000000e+00 : f32
    %354 = vector.broadcast %cst_144 : f32 to vector<8x128xf32>
    %355 = arith.addf %354, %353 : vector<8x128xf32>
    %356 = arith.divf %354, %355 : vector<8x128xf32>
    %357 = arith.mulf %348, %333 : vector<8x128xf32>
    %358 = arith.mulf %342, %350 : vector<8x128xf32>
    %359 = arith.addf %357, %358 : vector<8x128xf32>
    %360 = math.tanh %359 : vector<8x128xf32>
    %361 = arith.mulf %356, %360 : vector<8x128xf32>
    %c0_145 = arith.constant 0 : index
    %c0_146 = arith.constant 0 : index
    %362 = vector.load %arg11[%c0_145, %c0_146] : memref<8x128xf32, #tpu.memory_space<vmem>>, vector<8x128xf32>
    tpu.vector_store %arg11[%c0_145, %c0_146], %361 {strides = array<i32>} : memref<8x128xf32, #tpu.memory_space<vmem>>, vector<8x128xf32>,
    %c0_147 = arith.constant 0 : index
    %c0_148 = arith.constant 0 : index
    %363 = vector.load %arg12[%c0_147, %c0_148] : memref<8x128xf32, #tpu.memory_space<vmem>>, vector<8x128xf32>
    tpu.vector_store %arg12[%c0_147, %c0_148], %359 {strides = array<i32>} : memref<8x128xf32, #tpu.memory_space<vmem>>, vector<8x128xf32>,
    %364 = arith.truncf %361 : vector<8x128xf32> to vector<8x128xbf16>
    %365 = arith.index_cast %c4_i32 : i32 to index
    %c0_149 = arith.constant 0 : index
    %c0_150 = arith.constant 0 : index
    %366 = vector.load %arg7[%365, %c0_149, %c0_150] : memref<8x8x128xbf16, #tpu.memory_space<vmem>>, vector<1x8x128xbf16>
    %367 = vector.shape_cast %366 : vector<1x8x128xbf16> to vector<8x128xbf16>
    %368 = vector.shape_cast %364 : vector<8x128xbf16> to vector<1x8x128xbf16>
    tpu.vector_store %arg7[%365, %c0_149, %c0_150], %368 {strides = array<i32>} : memref<8x8x128xbf16, #tpu.memory_space<vmem>>, vector<1x8x128xbf16>,
    %c7_i32_151 = arith.constant 7 : i32
    %369 = arith.subi %c7_i32_151, %c4_i32 : i32
    %370 = arith.index_cast %369 : i32 to index
    %c0_152 = arith.constant 0 : index
    %c0_153 = arith.constant 0 : index
    %371 = vector.load %arg2[%370, %c0_152, %c0_153] : memref<8x8x512xbf16, #tpu.memory_space<vmem>>, vector<1x8x512xbf16>
    %372 = vector.shape_cast %371 : vector<1x8x512xbf16> to vector<8x512xbf16>
    %c0_154 = arith.constant 0 : index
    %c0_155 = arith.constant 0 : index
    %373 = vector.load %arg13[%c0_154, %c0_155] : memref<8x128xf32, #tpu.memory_space<vmem>>, vector<8x128xf32>
    %c0_156 = arith.constant 0 : index
    %c0_157 = arith.constant 0 : index
    %374 = vector.load %arg14[%c0_156, %c0_157] : memref<8x128xf32, #tpu.memory_space<vmem>>, vector<8x128xf32>
    %cst_158 = arith.constant dense<0.000000e+00> : vector<8x512xf32>
    %375 = tpu.matmul %373, %4, %cst_158 {dimension_numbers = #tpu.dot_dimension_numbers<[1], [0], [0], [1], [0, 0, 1, 1], [], []>} : vector<8x128xf32>, vector<128x512xf32>, vector<8x512xf32> -> vector<8x512xf32>
    %376 = arith.extf %372 : vector<8x512xbf16> to vector<8x512xf32>
    %377 = arith.addf %376, %375 : vector<8x512xf32>
    %378 = vector.extract_strided_slice %377 {offsets = [0, 0], sizes = [8, 128], strides = [1, 1]} : vector<8x512xf32> to vector<8x128xf32>
    %379 = arith.negf %378 : vector<8x128xf32>
    %380 = math.exp %379 : vector<8x128xf32>
    %cst_159 = arith.constant 1.000000e+00 : f32
    %381 = vector.broadcast %cst_159 : f32 to vector<8x128xf32>
    %382 = arith.addf %381, %380 : vector<8x128xf32>
    %383 = arith.divf %381, %382 : vector<8x128xf32>
    %384 = vector.extract_strided_slice %377 {offsets = [0, 128], sizes = [8, 128], strides = [1, 1]} : vector<8x512xf32> to vector<8x128xf32>
    %385 = arith.negf %384 : vector<8x128xf32>
    %386 = math.exp %385 : vector<8x128xf32>
    %cst_160 = arith.constant 1.000000e+00 : f32
    %387 = vector.broadcast %cst_160 : f32 to vector<8x128xf32>
    %388 = arith.addf %387, %386 : vector<8x128xf32>
    %389 = arith.divf %387, %388 : vector<8x128xf32>
    %390 = vector.extract_strided_slice %377 {offsets = [0, 256], sizes = [8, 128], strides = [1, 1]} : vector<8x512xf32> to vector<8x128xf32>
    %391 = math.tanh %390 : vector<8x128xf32>
    %392 = vector.extract_strided_slice %377 {offsets = [0, 384], sizes = [8, 128], strides = [1, 1]} : vector<8x512xf32> to vector<8x128xf32>
    %393 = arith.negf %392 : vector<8x128xf32>
    %394 = math.exp %393 : vector<8x128xf32>
    %cst_161 = arith.constant 1.000000e+00 : f32
    %395 = vector.broadcast %cst_161 : f32 to vector<8x128xf32>
    %396 = arith.addf %395, %394 : vector<8x128xf32>
    %397 = arith.divf %395, %396 : vector<8x128xf32>
    %398 = arith.mulf %389, %374 : vector<8x128xf32>
    %399 = arith.mulf %383, %391 : vector<8x128xf32>
    %400 = arith.addf %398, %399 : vector<8x128xf32>
    %401 = math.tanh %400 : vector<8x128xf32>
    %402 = arith.mulf %397, %401 : vector<8x128xf32>
    %c0_162 = arith.constant 0 : index
    %c0_163 = arith.constant 0 : index
    %403 = vector.load %arg13[%c0_162, %c0_163] : memref<8x128xf32, #tpu.memory_space<vmem>>, vector<8x128xf32>
    tpu.vector_store %arg13[%c0_162, %c0_163], %402 {strides = array<i32>} : memref<8x128xf32, #tpu.memory_space<vmem>>, vector<8x128xf32>,
    %c0_164 = arith.constant 0 : index
    %c0_165 = arith.constant 0 : index
    %404 = vector.load %arg14[%c0_164, %c0_165] : memref<8x128xf32, #tpu.memory_space<vmem>>, vector<8x128xf32>
    tpu.vector_store %arg14[%c0_164, %c0_165], %400 {strides = array<i32>} : memref<8x128xf32, #tpu.memory_space<vmem>>, vector<8x128xf32>,
    %405 = arith.truncf %402 : vector<8x128xf32> to vector<8x128xbf16>
    %406 = arith.index_cast %369 : i32 to index
    %c0_166 = arith.constant 0 : index
    %c0_167 = arith.constant 0 : index
    %407 = vector.load %arg8[%406, %c0_166, %c0_167] : memref<8x8x128xbf16, #tpu.memory_space<vmem>>, vector<1x8x128xbf16>
    %408 = vector.shape_cast %407 : vector<1x8x128xbf16> to vector<8x128xbf16>
    %409 = vector.shape_cast %405 : vector<8x128xbf16> to vector<1x8x128xbf16>
    tpu.vector_store %arg8[%406, %c0_166, %c0_167], %409 {strides = array<i32>} : memref<8x8x128xbf16, #tpu.memory_space<vmem>>, vector<1x8x128xbf16>,
    %c5_i32 = arith.constant 5 : i32
    %410 = arith.index_cast %c5_i32 : i32 to index
    %c0_168 = arith.constant 0 : index
    %c0_169 = arith.constant 0 : index
    %411 = vector.load %arg1[%410, %c0_168, %c0_169] : memref<8x8x512xbf16, #tpu.memory_space<vmem>>, vector<1x8x512xbf16>
    %412 = vector.shape_cast %411 : vector<1x8x512xbf16> to vector<8x512xbf16>
    %c0_170 = arith.constant 0 : index
    %c0_171 = arith.constant 0 : index
    %413 = vector.load %arg11[%c0_170, %c0_171] : memref<8x128xf32, #tpu.memory_space<vmem>>, vector<8x128xf32>
    %c0_172 = arith.constant 0 : index
    %c0_173 = arith.constant 0 : index
    %414 = vector.load %arg12[%c0_172, %c0_173] : memref<8x128xf32, #tpu.memory_space<vmem>>, vector<8x128xf32>
    %cst_174 = arith.constant dense<0.000000e+00> : vector<8x512xf32>
    %415 = tpu.matmul %413, %3, %cst_174 {dimension_numbers = #tpu.dot_dimension_numbers<[1], [0], [0], [1], [0, 0, 1, 1], [], []>} : vector<8x128xf32>, vector<128x512xf32>, vector<8x512xf32> -> vector<8x512xf32>
    %416 = arith.extf %412 : vector<8x512xbf16> to vector<8x512xf32>
    %417 = arith.addf %416, %415 : vector<8x512xf32>
    %418 = vector.extract_strided_slice %417 {offsets = [0, 0], sizes = [8, 128], strides = [1, 1]} : vector<8x512xf32> to vector<8x128xf32>
    %419 = arith.negf %418 : vector<8x128xf32>
    %420 = math.exp %419 : vector<8x128xf32>
    %cst_175 = arith.constant 1.000000e+00 : f32
    %421 = vector.broadcast %cst_175 : f32 to vector<8x128xf32>
    %422 = arith.addf %421, %420 : vector<8x128xf32>
    %423 = arith.divf %421, %422 : vector<8x128xf32>
    %424 = vector.extract_strided_slice %417 {offsets = [0, 128], sizes = [8, 128], strides = [1, 1]} : vector<8x512xf32> to vector<8x128xf32>
    %425 = arith.negf %424 : vector<8x128xf32>
    %426 = math.exp %425 : vector<8x128xf32>
    %cst_176 = arith.constant 1.000000e+00 : f32
    %427 = vector.broadcast %cst_176 : f32 to vector<8x128xf32>
    %428 = arith.addf %427, %426 : vector<8x128xf32>
    %429 = arith.divf %427, %428 : vector<8x128xf32>
    %430 = vector.extract_strided_slice %417 {offsets = [0, 256], sizes = [8, 128], strides = [1, 1]} : vector<8x512xf32> to vector<8x128xf32>
    %431 = math.tanh %430 : vector<8x128xf32>
    %432 = vector.extract_strided_slice %417 {offsets = [0, 384], sizes = [8, 128], strides = [1, 1]} : vector<8x512xf32> to vector<8x128xf32>
    %433 = arith.negf %432 : vector<8x128xf32>
    %434 = math.exp %433 : vector<8x128xf32>
    %cst_177 = arith.constant 1.000000e+00 : f32
    %435 = vector.broadcast %cst_177 : f32 to vector<8x128xf32>
    %436 = arith.addf %435, %434 : vector<8x128xf32>
    %437 = arith.divf %435, %436 : vector<8x128xf32>
    %438 = arith.mulf %429, %414 : vector<8x128xf32>
    %439 = arith.mulf %423, %431 : vector<8x128xf32>
    %440 = arith.addf %438, %439 : vector<8x128xf32>
    %441 = math.tanh %440 : vector<8x128xf32>
    %442 = arith.mulf %437, %441 : vector<8x128xf32>
    %c0_178 = arith.constant 0 : index
    %c0_179 = arith.constant 0 : index
    %443 = vector.load %arg11[%c0_178, %c0_179] : memref<8x128xf32, #tpu.memory_space<vmem>>, vector<8x128xf32>
    tpu.vector_store %arg11[%c0_178, %c0_179], %442 {strides = array<i32>} : memref<8x128xf32, #tpu.memory_space<vmem>>, vector<8x128xf32>,
    %c0_180 = arith.constant 0 : index
    %c0_181 = arith.constant 0 : index
    %444 = vector.load %arg12[%c0_180, %c0_181] : memref<8x128xf32, #tpu.memory_space<vmem>>, vector<8x128xf32>
    tpu.vector_store %arg12[%c0_180, %c0_181], %440 {strides = array<i32>} : memref<8x128xf32, #tpu.memory_space<vmem>>, vector<8x128xf32>,
    %445 = arith.truncf %442 : vector<8x128xf32> to vector<8x128xbf16>
    %446 = arith.index_cast %c5_i32 : i32 to index
    %c0_182 = arith.constant 0 : index
    %c0_183 = arith.constant 0 : index
    %447 = vector.load %arg7[%446, %c0_182, %c0_183] : memref<8x8x128xbf16, #tpu.memory_space<vmem>>, vector<1x8x128xbf16>
    %448 = vector.shape_cast %447 : vector<1x8x128xbf16> to vector<8x128xbf16>
    %449 = vector.shape_cast %445 : vector<8x128xbf16> to vector<1x8x128xbf16>
    tpu.vector_store %arg7[%446, %c0_182, %c0_183], %449 {strides = array<i32>} : memref<8x8x128xbf16, #tpu.memory_space<vmem>>, vector<1x8x128xbf16>,
    %c7_i32_184 = arith.constant 7 : i32
    %450 = arith.subi %c7_i32_184, %c5_i32 : i32
    %451 = arith.index_cast %450 : i32 to index
    %c0_185 = arith.constant 0 : index
    %c0_186 = arith.constant 0 : index
    %452 = vector.load %arg2[%451, %c0_185, %c0_186] : memref<8x8x512xbf16, #tpu.memory_space<vmem>>, vector<1x8x512xbf16>
    %453 = vector.shape_cast %452 : vector<1x8x512xbf16> to vector<8x512xbf16>
    %c0_187 = arith.constant 0 : index
    %c0_188 = arith.constant 0 : index
    %454 = vector.load %arg13[%c0_187, %c0_188] : memref<8x128xf32, #tpu.memory_space<vmem>>, vector<8x128xf32>
    %c0_189 = arith.constant 0 : index
    %c0_190 = arith.constant 0 : index
    %455 = vector.load %arg14[%c0_189, %c0_190] : memref<8x128xf32, #tpu.memory_space<vmem>>, vector<8x128xf32>
    %cst_191 = arith.constant dense<0.000000e+00> : vector<8x512xf32>
    %456 = tpu.matmul %454, %4, %cst_191 {dimension_numbers = #tpu.dot_dimension_numbers<[1], [0], [0], [1], [0, 0, 1, 1], [], []>} : vector<8x128xf32>, vector<128x512xf32>, vector<8x512xf32> -> vector<8x512xf32>
    %457 = arith.extf %453 : vector<8x512xbf16> to vector<8x512xf32>
    %458 = arith.addf %457, %456 : vector<8x512xf32>
    %459 = vector.extract_strided_slice %458 {offsets = [0, 0], sizes = [8, 128], strides = [1, 1]} : vector<8x512xf32> to vector<8x128xf32>
    %460 = arith.negf %459 : vector<8x128xf32>
    %461 = math.exp %460 : vector<8x128xf32>
    %cst_192 = arith.constant 1.000000e+00 : f32
    %462 = vector.broadcast %cst_192 : f32 to vector<8x128xf32>
    %463 = arith.addf %462, %461 : vector<8x128xf32>
    %464 = arith.divf %462, %463 : vector<8x128xf32>
    %465 = vector.extract_strided_slice %458 {offsets = [0, 128], sizes = [8, 128], strides = [1, 1]} : vector<8x512xf32> to vector<8x128xf32>
    %466 = arith.negf %465 : vector<8x128xf32>
    %467 = math.exp %466 : vector<8x128xf32>
    %cst_193 = arith.constant 1.000000e+00 : f32
    %468 = vector.broadcast %cst_193 : f32 to vector<8x128xf32>
    %469 = arith.addf %468, %467 : vector<8x128xf32>
    %470 = arith.divf %468, %469 : vector<8x128xf32>
    %471 = vector.extract_strided_slice %458 {offsets = [0, 256], sizes = [8, 128], strides = [1, 1]} : vector<8x512xf32> to vector<8x128xf32>
    %472 = math.tanh %471 : vector<8x128xf32>
    %473 = vector.extract_strided_slice %458 {offsets = [0, 384], sizes = [8, 128], strides = [1, 1]} : vector<8x512xf32> to vector<8x128xf32>
    %474 = arith.negf %473 : vector<8x128xf32>
    %475 = math.exp %474 : vector<8x128xf32>
    %cst_194 = arith.constant 1.000000e+00 : f32
    %476 = vector.broadcast %cst_194 : f32 to vector<8x128xf32>
    %477 = arith.addf %476, %475 : vector<8x128xf32>
    %478 = arith.divf %476, %477 : vector<8x128xf32>
    %479 = arith.mulf %470, %455 : vector<8x128xf32>
    %480 = arith.mulf %464, %472 : vector<8x128xf32>
    %481 = arith.addf %479, %480 : vector<8x128xf32>
    %482 = math.tanh %481 : vector<8x128xf32>
    %483 = arith.mulf %478, %482 : vector<8x128xf32>
    %c0_195 = arith.constant 0 : index
    %c0_196 = arith.constant 0 : index
    %484 = vector.load %arg13[%c0_195, %c0_196] : memref<8x128xf32, #tpu.memory_space<vmem>>, vector<8x128xf32>
    tpu.vector_store %arg13[%c0_195, %c0_196], %483 {strides = array<i32>} : memref<8x128xf32, #tpu.memory_space<vmem>>, vector<8x128xf32>,
    %c0_197 = arith.constant 0 : index
    %c0_198 = arith.constant 0 : index
    %485 = vector.load %arg14[%c0_197, %c0_198] : memref<8x128xf32, #tpu.memory_space<vmem>>, vector<8x128xf32>
    tpu.vector_store %arg14[%c0_197, %c0_198], %481 {strides = array<i32>} : memref<8x128xf32, #tpu.memory_space<vmem>>, vector<8x128xf32>,
    %486 = arith.truncf %483 : vector<8x128xf32> to vector<8x128xbf16>
    %487 = arith.index_cast %450 : i32 to index
    %c0_199 = arith.constant 0 : index
    %c0_200 = arith.constant 0 : index
    %488 = vector.load %arg8[%487, %c0_199, %c0_200] : memref<8x8x128xbf16, #tpu.memory_space<vmem>>, vector<1x8x128xbf16>
    %489 = vector.shape_cast %488 : vector<1x8x128xbf16> to vector<8x128xbf16>
    %490 = vector.shape_cast %486 : vector<8x128xbf16> to vector<1x8x128xbf16>
    tpu.vector_store %arg8[%487, %c0_199, %c0_200], %490 {strides = array<i32>} : memref<8x8x128xbf16, #tpu.memory_space<vmem>>, vector<1x8x128xbf16>,
    %c6_i32 = arith.constant 6 : i32
    %491 = arith.index_cast %c6_i32 : i32 to index
    %c0_201 = arith.constant 0 : index
    %c0_202 = arith.constant 0 : index
    %492 = vector.load %arg1[%491, %c0_201, %c0_202] : memref<8x8x512xbf16, #tpu.memory_space<vmem>>, vector<1x8x512xbf16>
    %493 = vector.shape_cast %492 : vector<1x8x512xbf16> to vector<8x512xbf16>
    %c0_203 = arith.constant 0 : index
    %c0_204 = arith.constant 0 : index
    %494 = vector.load %arg11[%c0_203, %c0_204] : memref<8x128xf32, #tpu.memory_space<vmem>>, vector<8x128xf32>
    %c0_205 = arith.constant 0 : index
    %c0_206 = arith.constant 0 : index
    %495 = vector.load %arg12[%c0_205, %c0_206] : memref<8x128xf32, #tpu.memory_space<vmem>>, vector<8x128xf32>
    %cst_207 = arith.constant dense<0.000000e+00> : vector<8x512xf32>
    %496 = tpu.matmul %494, %3, %cst_207 {dimension_numbers = #tpu.dot_dimension_numbers<[1], [0], [0], [1], [0, 0, 1, 1], [], []>} : vector<8x128xf32>, vector<128x512xf32>, vector<8x512xf32> -> vector<8x512xf32>
    %497 = arith.extf %493 : vector<8x512xbf16> to vector<8x512xf32>
    %498 = arith.addf %497, %496 : vector<8x512xf32>
    %499 = vector.extract_strided_slice %498 {offsets = [0, 0], sizes = [8, 128], strides = [1, 1]} : vector<8x512xf32> to vector<8x128xf32>
    %500 = arith.negf %499 : vector<8x128xf32>
    %501 = math.exp %500 : vector<8x128xf32>
    %cst_208 = arith.constant 1.000000e+00 : f32
    %502 = vector.broadcast %cst_208 : f32 to vector<8x128xf32>
    %503 = arith.addf %502, %501 : vector<8x128xf32>
    %504 = arith.divf %502, %503 : vector<8x128xf32>
    %505 = vector.extract_strided_slice %498 {offsets = [0, 128], sizes = [8, 128], strides = [1, 1]} : vector<8x512xf32> to vector<8x128xf32>
    %506 = arith.negf %505 : vector<8x128xf32>
    %507 = math.exp %506 : vector<8x128xf32>
    %cst_209 = arith.constant 1.000000e+00 : f32
    %508 = vector.broadcast %cst_209 : f32 to vector<8x128xf32>
    %509 = arith.addf %508, %507 : vector<8x128xf32>
    %510 = arith.divf %508, %509 : vector<8x128xf32>
    %511 = vector.extract_strided_slice %498 {offsets = [0, 256], sizes = [8, 128], strides = [1, 1]} : vector<8x512xf32> to vector<8x128xf32>
    %512 = math.tanh %511 : vector<8x128xf32>
    %513 = vector.extract_strided_slice %498 {offsets = [0, 384], sizes = [8, 128], strides = [1, 1]} : vector<8x512xf32> to vector<8x128xf32>
    %514 = arith.negf %513 : vector<8x128xf32>
    %515 = math.exp %514 : vector<8x128xf32>
    %cst_210 = arith.constant 1.000000e+00 : f32
    %516 = vector.broadcast %cst_210 : f32 to vector<8x128xf32>
    %517 = arith.addf %516, %515 : vector<8x128xf32>
    %518 = arith.divf %516, %517 : vector<8x128xf32>
    %519 = arith.mulf %510, %495 : vector<8x128xf32>
    %520 = arith.mulf %504, %512 : vector<8x128xf32>
    %521 = arith.addf %519, %520 : vector<8x128xf32>
    %522 = math.tanh %521 : vector<8x128xf32>
    %523 = arith.mulf %518, %522 : vector<8x128xf32>
    %c0_211 = arith.constant 0 : index
    %c0_212 = arith.constant 0 : index
    %524 = vector.load %arg11[%c0_211, %c0_212] : memref<8x128xf32, #tpu.memory_space<vmem>>, vector<8x128xf32>
    tpu.vector_store %arg11[%c0_211, %c0_212], %523 {strides = array<i32>} : memref<8x128xf32, #tpu.memory_space<vmem>>, vector<8x128xf32>,
    %c0_213 = arith.constant 0 : index
    %c0_214 = arith.constant 0 : index
    %525 = vector.load %arg12[%c0_213, %c0_214] : memref<8x128xf32, #tpu.memory_space<vmem>>, vector<8x128xf32>
    tpu.vector_store %arg12[%c0_213, %c0_214], %521 {strides = array<i32>} : memref<8x128xf32, #tpu.memory_space<vmem>>, vector<8x128xf32>,
    %526 = arith.truncf %523 : vector<8x128xf32> to vector<8x128xbf16>
    %527 = arith.index_cast %c6_i32 : i32 to index
    %c0_215 = arith.constant 0 : index
    %c0_216 = arith.constant 0 : index
    %528 = vector.load %arg7[%527, %c0_215, %c0_216] : memref<8x8x128xbf16, #tpu.memory_space<vmem>>, vector<1x8x128xbf16>
    %529 = vector.shape_cast %528 : vector<1x8x128xbf16> to vector<8x128xbf16>
    %530 = vector.shape_cast %526 : vector<8x128xbf16> to vector<1x8x128xbf16>
    tpu.vector_store %arg7[%527, %c0_215, %c0_216], %530 {strides = array<i32>} : memref<8x8x128xbf16, #tpu.memory_space<vmem>>, vector<1x8x128xbf16>,
    %c7_i32_217 = arith.constant 7 : i32
    %531 = arith.subi %c7_i32_217, %c6_i32 : i32
    %532 = arith.index_cast %531 : i32 to index
    %c0_218 = arith.constant 0 : index
    %c0_219 = arith.constant 0 : index
    %533 = vector.load %arg2[%532, %c0_218, %c0_219] : memref<8x8x512xbf16, #tpu.memory_space<vmem>>, vector<1x8x512xbf16>
    %534 = vector.shape_cast %533 : vector<1x8x512xbf16> to vector<8x512xbf16>
    %c0_220 = arith.constant 0 : index
    %c0_221 = arith.constant 0 : index
    %535 = vector.load %arg13[%c0_220, %c0_221] : memref<8x128xf32, #tpu.memory_space<vmem>>, vector<8x128xf32>
    %c0_222 = arith.constant 0 : index
    %c0_223 = arith.constant 0 : index
    %536 = vector.load %arg14[%c0_222, %c0_223] : memref<8x128xf32, #tpu.memory_space<vmem>>, vector<8x128xf32>
    %cst_224 = arith.constant dense<0.000000e+00> : vector<8x512xf32>
    %537 = tpu.matmul %535, %4, %cst_224 {dimension_numbers = #tpu.dot_dimension_numbers<[1], [0], [0], [1], [0, 0, 1, 1], [], []>} : vector<8x128xf32>, vector<128x512xf32>, vector<8x512xf32> -> vector<8x512xf32>
    %538 = arith.extf %534 : vector<8x512xbf16> to vector<8x512xf32>
    %539 = arith.addf %538, %537 : vector<8x512xf32>
    %540 = vector.extract_strided_slice %539 {offsets = [0, 0], sizes = [8, 128], strides = [1, 1]} : vector<8x512xf32> to vector<8x128xf32>
    %541 = arith.negf %540 : vector<8x128xf32>
    %542 = math.exp %541 : vector<8x128xf32>
    %cst_225 = arith.constant 1.000000e+00 : f32
    %543 = vector.broadcast %cst_225 : f32 to vector<8x128xf32>
    %544 = arith.addf %543, %542 : vector<8x128xf32>
    %545 = arith.divf %543, %544 : vector<8x128xf32>
    %546 = vector.extract_strided_slice %539 {offsets = [0, 128], sizes = [8, 128], strides = [1, 1]} : vector<8x512xf32> to vector<8x128xf32>
    %547 = arith.negf %546 : vector<8x128xf32>
    %548 = math.exp %547 : vector<8x128xf32>
    %cst_226 = arith.constant 1.000000e+00 : f32
    %549 = vector.broadcast %cst_226 : f32 to vector<8x128xf32>
    %550 = arith.addf %549, %548 : vector<8x128xf32>
    %551 = arith.divf %549, %550 : vector<8x128xf32>
    %552 = vector.extract_strided_slice %539 {offsets = [0, 256], sizes = [8, 128], strides = [1, 1]} : vector<8x512xf32> to vector<8x128xf32>
    %553 = math.tanh %552 : vector<8x128xf32>
    %554 = vector.extract_strided_slice %539 {offsets = [0, 384], sizes = [8, 128], strides = [1, 1]} : vector<8x512xf32> to vector<8x128xf32>
    %555 = arith.negf %554 : vector<8x128xf32>
    %556 = math.exp %555 : vector<8x128xf32>
    %cst_227 = arith.constant 1.000000e+00 : f32
    %557 = vector.broadcast %cst_227 : f32 to vector<8x128xf32>
    %558 = arith.addf %557, %556 : vector<8x128xf32>
    %559 = arith.divf %557, %558 : vector<8x128xf32>
    %560 = arith.mulf %551, %536 : vector<8x128xf32>
    %561 = arith.mulf %545, %553 : vector<8x128xf32>
    %562 = arith.addf %560, %561 : vector<8x128xf32>
    %563 = math.tanh %562 : vector<8x128xf32>
    %564 = arith.mulf %559, %563 : vector<8x128xf32>
    %c0_228 = arith.constant 0 : index
    %c0_229 = arith.constant 0 : index
    %565 = vector.load %arg13[%c0_228, %c0_229] : memref<8x128xf32, #tpu.memory_space<vmem>>, vector<8x128xf32>
    tpu.vector_store %arg13[%c0_228, %c0_229], %564 {strides = array<i32>} : memref<8x128xf32, #tpu.memory_space<vmem>>, vector<8x128xf32>,
    %c0_230 = arith.constant 0 : index
    %c0_231 = arith.constant 0 : index
    %566 = vector.load %arg14[%c0_230, %c0_231] : memref<8x128xf32, #tpu.memory_space<vmem>>, vector<8x128xf32>
    tpu.vector_store %arg14[%c0_230, %c0_231], %562 {strides = array<i32>} : memref<8x128xf32, #tpu.memory_space<vmem>>, vector<8x128xf32>,
    %567 = arith.truncf %564 : vector<8x128xf32> to vector<8x128xbf16>
    %568 = arith.index_cast %531 : i32 to index
    %c0_232 = arith.constant 0 : index
    %c0_233 = arith.constant 0 : index
    %569 = vector.load %arg8[%568, %c0_232, %c0_233] : memref<8x8x128xbf16, #tpu.memory_space<vmem>>, vector<1x8x128xbf16>
    %570 = vector.shape_cast %569 : vector<1x8x128xbf16> to vector<8x128xbf16>
    %571 = vector.shape_cast %567 : vector<8x128xbf16> to vector<1x8x128xbf16>
    tpu.vector_store %arg8[%568, %c0_232, %c0_233], %571 {strides = array<i32>} : memref<8x8x128xbf16, #tpu.memory_space<vmem>>, vector<1x8x128xbf16>,
    %c7_i32_234 = arith.constant 7 : i32
    %572 = arith.index_cast %c7_i32_234 : i32 to index
    %c0_235 = arith.constant 0 : index
    %c0_236 = arith.constant 0 : index
    %573 = vector.load %arg1[%572, %c0_235, %c0_236] : memref<8x8x512xbf16, #tpu.memory_space<vmem>>, vector<1x8x512xbf16>
    %574 = vector.shape_cast %573 : vector<1x8x512xbf16> to vector<8x512xbf16>
    %c0_237 = arith.constant 0 : index
    %c0_238 = arith.constant 0 : index
    %575 = vector.load %arg11[%c0_237, %c0_238] : memref<8x128xf32, #tpu.memory_space<vmem>>, vector<8x128xf32>
    %c0_239 = arith.constant 0 : index
    %c0_240 = arith.constant 0 : index
    %576 = vector.load %arg12[%c0_239, %c0_240] : memref<8x128xf32, #tpu.memory_space<vmem>>, vector<8x128xf32>
    %cst_241 = arith.constant dense<0.000000e+00> : vector<8x512xf32>
    %577 = tpu.matmul %575, %3, %cst_241 {dimension_numbers = #tpu.dot_dimension_numbers<[1], [0], [0], [1], [0, 0, 1, 1], [], []>} : vector<8x128xf32>, vector<128x512xf32>, vector<8x512xf32> -> vector<8x512xf32>
    %578 = arith.extf %574 : vector<8x512xbf16> to vector<8x512xf32>
    %579 = arith.addf %578, %577 : vector<8x512xf32>
    %580 = vector.extract_strided_slice %579 {offsets = [0, 0], sizes = [8, 128], strides = [1, 1]} : vector<8x512xf32> to vector<8x128xf32>
    %581 = arith.negf %580 : vector<8x128xf32>
    %582 = math.exp %581 : vector<8x128xf32>
    %cst_242 = arith.constant 1.000000e+00 : f32
    %583 = vector.broadcast %cst_242 : f32 to vector<8x128xf32>
    %584 = arith.addf %583, %582 : vector<8x128xf32>
    %585 = arith.divf %583, %584 : vector<8x128xf32>
    %586 = vector.extract_strided_slice %579 {offsets = [0, 128], sizes = [8, 128], strides = [1, 1]} : vector<8x512xf32> to vector<8x128xf32>
    %587 = arith.negf %586 : vector<8x128xf32>
    %588 = math.exp %587 : vector<8x128xf32>
    %cst_243 = arith.constant 1.000000e+00 : f32
    %589 = vector.broadcast %cst_243 : f32 to vector<8x128xf32>
    %590 = arith.addf %589, %588 : vector<8x128xf32>
    %591 = arith.divf %589, %590 : vector<8x128xf32>
    %592 = vector.extract_strided_slice %579 {offsets = [0, 256], sizes = [8, 128], strides = [1, 1]} : vector<8x512xf32> to vector<8x128xf32>
    %593 = math.tanh %592 : vector<8x128xf32>
    %594 = vector.extract_strided_slice %579 {offsets = [0, 384], sizes = [8, 128], strides = [1, 1]} : vector<8x512xf32> to vector<8x128xf32>
    %595 = arith.negf %594 : vector<8x128xf32>
    %596 = math.exp %595 : vector<8x128xf32>
    %cst_244 = arith.constant 1.000000e+00 : f32
    %597 = vector.broadcast %cst_244 : f32 to vector<8x128xf32>
    %598 = arith.addf %597, %596 : vector<8x128xf32>
    %599 = arith.divf %597, %598 : vector<8x128xf32>
    %600 = arith.mulf %591, %576 : vector<8x128xf32>
    %601 = arith.mulf %585, %593 : vector<8x128xf32>
    %602 = arith.addf %600, %601 : vector<8x128xf32>
    %603 = math.tanh %602 : vector<8x128xf32>
    %604 = arith.mulf %599, %603 : vector<8x128xf32>
    %c0_245 = arith.constant 0 : index
    %c0_246 = arith.constant 0 : index
    %605 = vector.load %arg11[%c0_245, %c0_246] : memref<8x128xf32, #tpu.memory_space<vmem>>, vector<8x128xf32>
    tpu.vector_store %arg11[%c0_245, %c0_246], %604 {strides = array<i32>} : memref<8x128xf32, #tpu.memory_space<vmem>>, vector<8x128xf32>,
    %c0_247 = arith.constant 0 : index
    %c0_248 = arith.constant 0 : index
    %606 = vector.load %arg12[%c0_247, %c0_248] : memref<8x128xf32, #tpu.memory_space<vmem>>, vector<8x128xf32>
    tpu.vector_store %arg12[%c0_247, %c0_248], %602 {strides = array<i32>} : memref<8x128xf32, #tpu.memory_space<vmem>>, vector<8x128xf32>,
    %607 = arith.truncf %604 : vector<8x128xf32> to vector<8x128xbf16>
    %608 = arith.index_cast %c7_i32_234 : i32 to index
    %c0_249 = arith.constant 0 : index
    %c0_250 = arith.constant 0 : index
    %609 = vector.load %arg7[%608, %c0_249, %c0_250] : memref<8x8x128xbf16, #tpu.memory_space<vmem>>, vector<1x8x128xbf16>
    %610 = vector.shape_cast %609 : vector<1x8x128xbf16> to vector<8x128xbf16>
    %611 = vector.shape_cast %607 : vector<8x128xbf16> to vector<1x8x128xbf16>
    tpu.vector_store %arg7[%608, %c0_249, %c0_250], %611 {strides = array<i32>} : memref<8x8x128xbf16, #tpu.memory_space<vmem>>, vector<1x8x128xbf16>,
    %c7_i32_251 = arith.constant 7 : i32
    %612 = arith.subi %c7_i32_251, %c7_i32_234 : i32
    %613 = arith.index_cast %612 : i32 to index
    %c0_252 = arith.constant 0 : index
    %c0_253 = arith.constant 0 : index
    %614 = vector.load %arg2[%613, %c0_252, %c0_253] : memref<8x8x512xbf16, #tpu.memory_space<vmem>>, vector<1x8x512xbf16>
    %615 = vector.shape_cast %614 : vector<1x8x512xbf16> to vector<8x512xbf16>
    %c0_254 = arith.constant 0 : index
    %c0_255 = arith.constant 0 : index
    %616 = vector.load %arg13[%c0_254, %c0_255] : memref<8x128xf32, #tpu.memory_space<vmem>>, vector<8x128xf32>
    %c0_256 = arith.constant 0 : index
    %c0_257 = arith.constant 0 : index
    %617 = vector.load %arg14[%c0_256, %c0_257] : memref<8x128xf32, #tpu.memory_space<vmem>>, vector<8x128xf32>
    %cst_258 = arith.constant dense<0.000000e+00> : vector<8x512xf32>
    %618 = tpu.matmul %616, %4, %cst_258 {dimension_numbers = #tpu.dot_dimension_numbers<[1], [0], [0], [1], [0, 0, 1, 1], [], []>} : vector<8x128xf32>, vector<128x512xf32>, vector<8x512xf32> -> vector<8x512xf32>
    %619 = arith.extf %615 : vector<8x512xbf16> to vector<8x512xf32>
    %620 = arith.addf %619, %618 : vector<8x512xf32>
    %621 = vector.extract_strided_slice %620 {offsets = [0, 0], sizes = [8, 128], strides = [1, 1]} : vector<8x512xf32> to vector<8x128xf32>
    %622 = arith.negf %621 : vector<8x128xf32>
    %623 = math.exp %622 : vector<8x128xf32>
    %cst_259 = arith.constant 1.000000e+00 : f32
    %624 = vector.broadcast %cst_259 : f32 to vector<8x128xf32>
    %625 = arith.addf %624, %623 : vector<8x128xf32>
    %626 = arith.divf %624, %625 : vector<8x128xf32>
    %627 = vector.extract_strided_slice %620 {offsets = [0, 128], sizes = [8, 128], strides = [1, 1]} : vector<8x512xf32> to vector<8x128xf32>
    %628 = arith.negf %627 : vector<8x128xf32>
    %629 = math.exp %628 : vector<8x128xf32>
    %cst_260 = arith.constant 1.000000e+00 : f32
    %630 = vector.broadcast %cst_260 : f32 to vector<8x128xf32>
    %631 = arith.addf %630, %629 : vector<8x128xf32>
    %632 = arith.divf %630, %631 : vector<8x128xf32>
    %633 = vector.extract_strided_slice %620 {offsets = [0, 256], sizes = [8, 128], strides = [1, 1]} : vector<8x512xf32> to vector<8x128xf32>
    %634 = math.tanh %633 : vector<8x128xf32>
    %635 = vector.extract_strided_slice %620 {offsets = [0, 384], sizes = [8, 128], strides = [1, 1]} : vector<8x512xf32> to vector<8x128xf32>
    %636 = arith.negf %635 : vector<8x128xf32>
    %637 = math.exp %636 : vector<8x128xf32>
    %cst_261 = arith.constant 1.000000e+00 : f32
    %638 = vector.broadcast %cst_261 : f32 to vector<8x128xf32>
    %639 = arith.addf %638, %637 : vector<8x128xf32>
    %640 = arith.divf %638, %639 : vector<8x128xf32>
    %641 = arith.mulf %632, %617 : vector<8x128xf32>
    %642 = arith.mulf %626, %634 : vector<8x128xf32>
    %643 = arith.addf %641, %642 : vector<8x128xf32>
    %644 = math.tanh %643 : vector<8x128xf32>
    %645 = arith.mulf %640, %644 : vector<8x128xf32>
    %c0_262 = arith.constant 0 : index
    %c0_263 = arith.constant 0 : index
    %646 = vector.load %arg13[%c0_262, %c0_263] : memref<8x128xf32, #tpu.memory_space<vmem>>, vector<8x128xf32>
    tpu.vector_store %arg13[%c0_262, %c0_263], %645 {strides = array<i32>} : memref<8x128xf32, #tpu.memory_space<vmem>>, vector<8x128xf32>,
    %c0_264 = arith.constant 0 : index
    %c0_265 = arith.constant 0 : index
    %647 = vector.load %arg14[%c0_264, %c0_265] : memref<8x128xf32, #tpu.memory_space<vmem>>, vector<8x128xf32>
    tpu.vector_store %arg14[%c0_264, %c0_265], %643 {strides = array<i32>} : memref<8x128xf32, #tpu.memory_space<vmem>>, vector<8x128xf32>,
    %648 = arith.truncf %645 : vector<8x128xf32> to vector<8x128xbf16>
    %649 = arith.index_cast %612 : i32 to index
    %c0_266 = arith.constant 0 : index
    %c0_267 = arith.constant 0 : index
    %650 = vector.load %arg8[%649, %c0_266, %c0_267] : memref<8x8x128xbf16, #tpu.memory_space<vmem>>, vector<1x8x128xbf16>
    %651 = vector.shape_cast %650 : vector<1x8x128xbf16> to vector<8x128xbf16>
    %652 = vector.shape_cast %648 : vector<8x128xbf16> to vector<1x8x128xbf16>
    tpu.vector_store %arg8[%649, %c0_266, %c0_267], %652 {strides = array<i32>} : memref<8x8x128xbf16, #tpu.memory_space<vmem>>, vector<1x8x128xbf16>,
    %c8_i32 = arith.constant 8 : i32
    %c0_i32_268 = arith.constant 0 : i32
    %653 = arith.cmpi eq, %arg0, %c0_i32_268 : i32
    %654 = arith.extui %653 : i1 to i32
    %c0_i32_269 = arith.constant 0 : i32
    %655 = arith.cmpi ne, %654, %c0_i32_269 : i32
    scf.if %655 {
      %c0_270 = arith.constant 0 : index
      %c0_271 = arith.constant 0 : index
      %656 = vector.load %arg11[%c0_270, %c0_271] : memref<8x128xf32, #tpu.memory_space<vmem>>, vector<8x128xf32>
      %c0_272 = arith.constant 0 : index
      %c0_273 = arith.constant 0 : index
      %c0_274 = arith.constant 0 : index
      %657 = vector.load %arg9[%c0_272, %c0_273, %c0_274] : memref<2x8x128xf32, #tpu.memory_space<vmem>>, vector<1x8x128xf32>
      %658 = vector.shape_cast %657 : vector<1x8x128xf32> to vector<8x128xf32>
      %659 = vector.shape_cast %656 : vector<8x128xf32> to vector<1x8x128xf32>
      tpu.vector_store %arg9[%c0_272, %c0_273, %c0_274], %659 {strides = array<i32>} : memref<2x8x128xf32, #tpu.memory_space<vmem>>, vector<1x8x128xf32>,
      %c0_275 = arith.constant 0 : index
      %c0_276 = arith.constant 0 : index
      %660 = vector.load %arg13[%c0_275, %c0_276] : memref<8x128xf32, #tpu.memory_space<vmem>>, vector<8x128xf32>
      %c1 = arith.constant 1 : index
      %c0_277 = arith.constant 0 : index
      %c0_278 = arith.constant 0 : index
      %661 = vector.load %arg9[%c1, %c0_277, %c0_278] : memref<2x8x128xf32, #tpu.memory_space<vmem>>, vector<1x8x128xf32>
      %662 = vector.shape_cast %661 : vector<1x8x128xf32> to vector<8x128xf32>
      %663 = vector.shape_cast %660 : vector<8x128xf32> to vector<1x8x128xf32>
      tpu.vector_store %arg9[%c1, %c0_277, %c0_278], %663 {strides = array<i32>} : memref<2x8x128xf32, #tpu.memory_space<vmem>>, vector<1x8x128xf32>,
      %c0_279 = arith.constant 0 : index
      %c0_280 = arith.constant 0 : index
      %664 = vector.load %arg12[%c0_279, %c0_280] : memref<8x128xf32, #tpu.memory_space<vmem>>, vector<8x128xf32>
      %c0_281 = arith.constant 0 : index
      %c0_282 = arith.constant 0 : index
      %c0_283 = arith.constant 0 : index
      %665 = vector.load %arg10[%c0_281, %c0_282, %c0_283] : memref<2x8x128xf32, #tpu.memory_space<vmem>>, vector<1x8x128xf32>
      %666 = vector.shape_cast %665 : vector<1x8x128xf32> to vector<8x128xf32>
      %667 = vector.shape_cast %664 : vector<8x128xf32> to vector<1x8x128xf32>
      tpu.vector_store %arg10[%c0_281, %c0_282, %c0_283], %667 {strides = array<i32>} : memref<2x8x128xf32, #tpu.memory_space<vmem>>, vector<1x8x128xf32>,
      %c0_284 = arith.constant 0 : index
      %c0_285 = arith.constant 0 : index
      %668 = vector.load %arg14[%c0_284, %c0_285] : memref<8x128xf32, #tpu.memory_space<vmem>>, vector<8x128xf32>
      %c1_286 = arith.constant 1 : index
      %c0_287 = arith.constant 0 : index
      %c0_288 = arith.constant 0 : index
      %669 = vector.load %arg10[%c1_286, %c0_287, %c0_288] : memref<2x8x128xf32, #tpu.memory_space<vmem>>, vector<1x8x128xf32>
      %670 = vector.shape_cast %669 : vector<1x8x128xf32> to vector<8x128xf32>
      %671 = vector.shape_cast %668 : vector<8x128xf32> to vector<1x8x128xf32>
      tpu.vector_store %arg10[%c1_286, %c0_287, %c0_288], %671 {strides = array<i32>} : memref<2x8x128xf32, #tpu.memory_space<vmem>>, vector<1x8x128xf32>,
    } else {
    }
    return
  }
  func.func @transform_0(%arg0: i32) -> (i32, i32, i32) {
    %c0_i32 = arith.constant 0 : i32
    %c0_i32_0 = arith.constant 0 : i32
    %c0_i32_1 = arith.constant 0 : i32
    return %arg0, %c0_i32, %c0_i32_0 : i32, i32, i32
  }
  func.func @transform_1(%arg0: i32) -> (i32, i32, i32) {
    %c0_i32 = arith.constant 0 : i32
    %0 = arith.subi %c0_i32, %arg0 : i32
    %c0_i32_0 = arith.constant 0 : i32
    %c0_i32_1 = arith.constant 0 : i32
    %c0_i32_2 = arith.constant 0 : i32
    return %0, %c0_i32_0, %c0_i32_1 : i32, i32, i32
  }
  func.func @transform_2(%arg0: i32) -> (i32, i32) {
    %c0_i32 = arith.constant 0 : i32
    %c0_i32_0 = arith.constant 0 : i32
    %c0_i32_1 = arith.constant 0 : i32
    return %c0_i32, %c0_i32_0 : i32, i32
  }
  func.func @transform_3(%arg0: i32) -> (i32, i32) {
    %c0_i32 = arith.constant 0 : i32
    %c0_i32_0 = arith.constant 0 : i32
    %c0_i32_1 = arith.constant 0 : i32
    return %c0_i32, %c0_i32_0 : i32, i32
  }
  func.func @transform_4(%arg0: i32) -> (i32, i32, i32) {
    %c0_i32 = arith.constant 0 : i32
    %c0_i32_0 = arith.constant 0 : i32
    %c0_i32_1 = arith.constant 0 : i32
    %c0_i32_2 = arith.constant 0 : i32
    return %c0_i32, %c0_i32_0, %c0_i32_1 : i32, i32, i32
  }
  func.func @transform_5(%arg0: i32) -> (i32, i32, i32) {
    %c0_i32 = arith.constant 0 : i32
    %c0_i32_0 = arith.constant 0 : i32
    %c0_i32_1 = arith.constant 0 : i32
    %c0_i32_2 = arith.constant 0 : i32
    return %c0_i32, %c0_i32_0, %c0_i32_1 : i32, i32, i32
  }
  func.func @transform_6(%arg0: i32) -> (i32, i32, i32) {
    %c0_i32 = arith.constant 0 : i32
    %c0_i32_0 = arith.constant 0 : i32
    %c0_i32_1 = arith.constant 0 : i32
    return %arg0, %c0_i32, %c0_i32_0 : i32, i32, i32
  }
  func.func @transform_7(%arg0: i32) -> (i32, i32, i32) {
    %c0_i32 = arith.constant 0 : i32
    %0 = arith.subi %c0_i32, %arg0 : i32
    %c0_i32_0 = arith.constant 0 : i32
    %c0_i32_1 = arith.constant 0 : i32
    %c0_i32_2 = arith.constant 0 : i32
    return %0, %c0_i32_0, %c0_i32_1 : i32, i32, i32
  }
  func.func @transform_8(%arg0: i32) -> (i32, i32, i32) {
    %c0_i32 = arith.constant 0 : i32
    %c0_i32_0 = arith.constant 0 : i32
    %c0_i32_1 = arith.constant 0 : i32
    %c0_i32_2 = arith.constant 0 : i32
    return %c0_i32, %c0_i32_0, %c0_i32_1 : i32, i32, i32
  }
  func.func @transform_9(%arg0: i32) -> (i32, i32, i32) {
    %c0_i32 = arith.constant 0 : i32
    %c0_i32_0 = arith.constant 0 : i32
    %c0_i32_1 = arith.constant 0 : i32
    %c0_i32_2 = arith.constant 0 : i32
    return %c0_i32, %c0_i32_0, %c0_i32_1 : i32, i32, i32
  }
}

</mosaic_0001>

<bundles_post_ra>
// kernel: tpu_custom_call.1
= control target key start
LH: loop header
LB: loop body
LE: loop exit
PB: predicated region body
PF: predicated region fallthrough
CT: control target
= control target key end

     0   :  { %15 = vsyncpa [#allocation7], 0  ;;  %s5777_s0 = inlined_call_operand.hbm [shape: bf16[8,8,512], index: 0, kind: input, shape index: {}]   ;;  %s5778_s1 = inlined_call_operand.hbm [shape: bf16[8,8,512], index: 1, kind: input, shape index: {}]   ;;  %s5779_s2 = inlined_call_operand.hbm [shape: f32[128,512], index: 2, kind: input, shape index: {}]   ;;  %s5780_s3 = inlined_call_operand.hbm [shape: f32[128,512], index: 3, kind: input, shape index: {}]   ;;  %s5781_s4 = inlined_call_operand.hbm [shape: f32[2,8,128], index: 4, kind: input, shape index: {}]   ;;  %s5782_s5 = inlined_call_operand.vmem [shape: f32[2,8,128], index: 5, kind: input, shape index: {}]   ;;  %s5783_s6 = inlined_call_operand.hbm [shape: bf16[8,8,128], index: 6, kind: output, shape index: {0}]   ;;  %s5784_s7 = inlined_call_operand.hbm [shape: bf16[8,8,128], index: 7, kind: output, shape index: {1}]   ;;  %s5785_s8 = inlined_call_operand.hbm [shape: f32[2,8,128], index: 8, kind: output, shape index: {2}]   ;;  %s5786_s9 = inlined_call_operand.hbm [shape: f32[2,8,128], index: 9, kind: output, shape index: {3}]  }
   0x1   :  { %16 = vsyncpa [#allocation10], 0 }
   0x2   :  { %17 = vsyncpa [#allocation13], 0 }
   0x3   :  { %18 = vsyncpa [#allocation8], 0 }
   0x4   :  { %19 = vsyncpa [#allocation17], 0 }
   0x5   :  { %20 = vsyncpa [#allocation20], 0  ;;  %s4833_s30 = smov [#allocation9]   ;;  %s4623_s13 = scalar_lea.hbm %s5778_s1, 2048 }
   0x6   :  { %s43_s10 = sshll.u32 %s4833_s30, 4  ;;  %p4624_p0 = scmp.ne.s32.totalorder %s5778_s1, %s4623_s13  ;;  %s44_s10 = int_to_ptr.vmem [resolvable:$true] %s43_s10 }
   0x7   :  { %p4627_p1 = scmp.lt.u32.totalorder %s4623_s13, %s5778_s1 }
   0x9   :  { %p4629_p2 = pnand %p4627_p1, %p4624_p0 }
   0xb   :  { %4632 = shalt.err (!%p4629_p2)
}
   0xc   :  { %s4633_s18 = scalar_lea.vmem %s44_s10, 2048  ;;  %p4638_p4 = scmp.lt.s32.totalorder %s44_s10, %s44_s10 }
   0xd   :  { %p4634_p3 = scmp.ne.s32.totalorder %s44_s10, %s4633_s18  ;;  %p4639_p5 = scmp.lt.s32.totalorder %s4633_s18, %s4633_s18 }
   0xf   :  { %p4640_p6 = por %p4639_p5, %p4638_p4 }
  0x11   :  { %p4641_p7 = pnand %p4640_p6, %p4634_p3 }
  0x13   :  { %4644 = shalt.err (!%p4641_p7)
}
  0x14   :  { %s4834_s19 = smov 256   ;;  %s4835_s20 = smov 16  }
  0x15   :  { %49 = dma.hbm_to_vmem [thread:$0]  %s5778_s1, 2048, %s44_s10, [#allocation10], %s4834_s19, %s4834_s19, %s4835_s20  }
  0x16   :  { %s4836_s23 = smov [#allocation12]   ;;  %s4837_s25 = smov [#allocation6]  }
  0x17   :  { %s67_s24 = sshll.u32 %s4836_s23, 4  ;;  %s26_s26 = sshll.u32 %s4837_s25, 4  ;;  %s68_s24 = int_to_ptr.vmem [resolvable:$true] %s67_s24  ;;  %s27_s26 = int_to_ptr.vmem [resolvable:$true] %s26_s26 }
  0x18   :  { %s4645_s29 = scalar_lea.hbm %s5780_s3, 8192 }
  0x19   :  { %p4646_p8 = scmp.ne.s32.totalorder %s5780_s3, %s4645_s29  ;;  %p4649_p9 = scmp.lt.u32.totalorder %s4645_s29, %s5780_s3 }
  0x1b   :  { %p4651_p10 = pnand %p4649_p9, %p4646_p8 }
  0x1d   :  { %4654 = shalt.err (!%p4651_p10)
}
  0x1e   :  { %s4655_s1 = scalar_lea.vmem %s68_s24, 8192  ;;  %p4660_p12 = scmp.lt.s32.totalorder %s68_s24, %s68_s24 }
  0x1f   :  { %p4656_p11 = scmp.ne.s32.totalorder %s68_s24, %s4655_s1  ;;  %p4661_p13 = scmp.lt.s32.totalorder %s4655_s1, %s4655_s1 }
  0x21   :  { %p4662_p0 = por %p4661_p13, %p4660_p12 }
  0x23   :  { %p4663_p1 = pnand %p4662_p0, %p4656_p11 }
  0x25   :  { %4666 = shalt.err (!%p4663_p1)
}
  0x26   :  { %s4838_s10 = smov 512   ;;  %s4839_s14 = smov 32  }
  0x27   :  { %73 = dma.hbm_to_vmem [thread:$0]  %s5780_s3, 8192, %s68_s24, [#allocation13], %s4838_s10, %s4838_s10, %s4839_s14  }
  0x28   :  { %s4667_s21 = scalar_lea.hbm %s5777_s0, 2048 }
  0x29   :  { %p4668_p2 = scmp.ne.s32.totalorder %s5777_s0, %s4667_s21  ;;  %p4671_p3 = scmp.lt.u32.totalorder %s4667_s21, %s5777_s0 }
  0x2b   :  { %p4673_p4 = pnand %p4671_p3, %p4668_p2 }
  0x2d   :  { %4676 = shalt.err (!%p4673_p4)
}
  0x2e   :  { %s4677_s28 = scalar_lea.vmem %s27_s26, 2048  ;;  %p4682_p6 = scmp.lt.s32.totalorder %s27_s26, %s27_s26 }
  0x2f   :  { %p4678_p5 = scmp.ne.s32.totalorder %s27_s26, %s4677_s28  ;;  %p4683_p7 = scmp.lt.s32.totalorder %s4677_s28, %s4677_s28 }
  0x31   :  { %p4684_p8 = por %p4683_p7, %p4682_p6 }
  0x33   :  { %p4685_p9 = pnand %p4684_p8, %p4678_p5 }
  0x35   :  { %4688 = shalt.err (!%p4685_p9)
}
  0x36   :  { %32 = dma.hbm_to_vmem [thread:$0]  %s5777_s0, 2048, %s27_s26, [#allocation7], %s4834_s19, %s4834_s19, %s4835_s20  }
  0x37   :  { %s4840_s29 = smov [#allocation11]   ;;  %s4841_s11 = smov [#allocation14]  }
  0x38   :  { %s55_s30 = sshll.u32 %s4840_s29, 4  ;;  %s79_s12 = sshll.u32 %s4841_s11, 4  ;;  %s56_s30 = int_to_ptr.vmem [resolvable:$true] %s55_s30  ;;  %s80_s12 = int_to_ptr.vmem [resolvable:$true] %s79_s12 }
  0x39   :  { %s4689_s15 = scalar_lea.hbm %s5779_s2, 8192 }
  0x3a   :  { %p4690_p10 = scmp.ne.s32.totalorder %s5779_s2, %s4689_s15  ;;  %p4693_p11 = scmp.lt.u32.totalorder %s4689_s15, %s5779_s2 }
  0x3c   :  { %p4695_p12 = pnand %p4693_p11, %p4690_p10 }
  0x3e   :  { %4698 = shalt.err (!%p4695_p12)
}
  0x3f   :  { %s4699_s0 = scalar_lea.vmem %s56_s30, 8192  ;;  %p4704_p0 = scmp.lt.s32.totalorder %s56_s30, %s56_s30 }
  0x40   :  { %p4700_p13 = scmp.ne.s32.totalorder %s56_s30, %s4699_s0  ;;  %p4705_p1 = scmp.lt.s32.totalorder %s4699_s0, %s4699_s0 }
  0x42   :  { %p4706_p2 = por %p4705_p1, %p4704_p0 }
  0x44   :  { %p4707_p3 = pnand %p4706_p2, %p4700_p13 }
  0x46   :  { %4710 = shalt.err (!%p4707_p3)
}
  0x47   :  { %61 = dma.hbm_to_vmem [thread:$0]  %s5779_s2, 8192, %s56_s30, [#allocation10], %s4838_s10, %s4838_s10, %s4839_s14  }
  0x48   :  { %s4711_s23 = scalar_lea.hbm %s5781_s4, 256 }
  0x49   :  { %p4712_p4 = scmp.ne.s32.totalorder %s5781_s4, %s4711_s23  ;;  %p4715_p5 = scmp.lt.u32.totalorder %s4711_s23, %s5781_s4 }
  0x4b   :  { %p4717_p6 = pnand %p4715_p5, %p4712_p4 }
  0x4d   :  { %4720 = shalt.err (!%p4717_p6)
}
  0x4e   :  { %s4721_s24 = scalar_lea.vmem %s80_s12, 256  ;;  %p4726_p8 = scmp.lt.s32.totalorder %s80_s12, %s80_s12 }
  0x4f   :  { %p4722_p7 = scmp.ne.s32.totalorder %s80_s12, %s4721_s24  ;;  %p4727_p9 = scmp.lt.s32.totalorder %s4721_s24, %s4721_s24 }
  0x51   :  { %p4728_p10 = por %p4727_p9, %p4726_p8 }
  0x53   :  { %p4729_p11 = pnand %p4728_p10, %p4722_p7 }
  0x55   :  { %4732 = shalt.err (!%p4729_p11)
}
  0x56   :  { %s4842_s2 = smov 128   ;;  %s4843_s10 = smov 8  }
  0x57   :  { %85 = dma.hbm_to_vmem [thread:$0]  %s5781_s4, 256, %s80_s12, [#allocation13], %s4842_s2, %s4842_s2, %s4843_s10  }
  0x58   :  { %4821 = dma.done.wait [#allocation7], 2048  }
  0x59   :  { %4822 = vsyncadd [#allocation7], 4294965248 }
  0x5a   :  { %4823 = dma.done.wait [#allocation10], 10240  }
  0x5b   :  { %4824 = vsyncadd [#allocation10], 4294957056 }
  0x5c   :  { %4825 = dma.done.wait [#allocation13], 8448  }
  0x5d   :  { %4826 = vsyncadd [#allocation13], 4294958848  ;;  %v5787_v0 = vmov 0.0   ;;  %v122_v1 = vld [vmem:[#allocation11 + $0x8] sm:$0xff]  ;;  %v121_v3 = vld [vmem:[#allocation11] sm:$0xff] }
  0x5e   :  { %317 = vmatprep.mubr.f32.mxu0 %v5787_v0  ;;  %388 = vmatprep.mubr.f32.mxu1 %v5787_v0  ;;  %v126_v2 = vld [vmem:[#allocation11 + $0x28] sm:$0xff]  ;;  %v125_v5 = vld [vmem:[#allocation11 + $0x20] sm:$0xff]  ;;  %v124_v19 = vld [vmem:[#allocation11 + $0x18] sm:$0xff] }
  0x5f   :  { %v4978_v4 = vpack.c.bf16 %v126_v2, %v122_v1  ;;  %v130_v6 = vld [vmem:[#allocation11 + $0x48] sm:$0xff]  ;;  %v4980_v8 = vpack.c.bf16 %v125_v5, %v121_v3  ;;  %v129_v10 = vld [vmem:[#allocation11 + $0x40] sm:$0xff]  ;;  %v128_v20 = vld [vmem:[#allocation11 + $0x38] sm:$0xff] }
  0x60   :  { %v134_v7 = vld [vmem:[#allocation11 + $0x68] sm:$0xff]  ;;  %v133_v11 = vld [vmem:[#allocation11 + $0x60] sm:$0xff]  ;;  %v4991_v22 = vpack.c.bf16 %v128_v20, %v124_v19  ;;  %v123_v23 = vld [vmem:[#allocation11 + $0x10] sm:$0xff] }
  0x61   :  { %v4982_v9 = vpack.c.bf16 %v134_v7, %v130_v6  ;;  %v138_v12 = vld [vmem:[#allocation11 + $0x88] sm:$0xff]  ;;  %3326 = vmatprep.subr.bf16.mxu0 %v4978_v4  ;;  %v4986_v14 = vpack.c.bf16 %v133_v11, %v129_v10  ;;  %v137_v15 = vld [vmem:[#allocation11 + $0x80] sm:$0xff]  ;;  %v127_v24 = vld [vmem:[#allocation11 + $0x30] sm:$0xff] }
  0x62   :  { %v142_v13 = vld [vmem:[#allocation11 + $0xa8] sm:$0xff]  ;;  %3328 = vmatpush1.bf16.msra.mxu0 %v4980_v8  ;;  %v141_v16 = vld [vmem:[#allocation11 + $0xa0] sm:$0xff]  ;;  %v4993_v25 = vpack.c.bf16 %v127_v24, %v123_v23  ;;  %3358 = vmatprep.subr.bf16.mxu1 %v4991_v22  ;;  %v132_v27 = vld [vmem:[#allocation11 + $0x58] sm:$0xff] }
  0x63   :  { %3330 = vmatprep.subr.bf16.mxu0 %v4982_v9  ;;  %v4989_v17 = vpack.c.bf16 %v142_v13, %v138_v12  ;;  %v146_v18 = vld [vmem:[#allocation11 + $0xc8] sm:$0xff]  ;;  %v4996_v26 = vpack.c.bf16 %v141_v16, %v137_v15  ;;  %v136_v28 = vld [vmem:[#allocation11 + $0x78] sm:$0xff]  ;;  %v131_v29 = vld [vmem:[#allocation11 + $0x50] sm:$0xff] }
  0x64   :  { %v150_v21 = vld [vmem:[#allocation11 + $0xe8] sm:$0xff]  ;;  %v145_v31 = vld [vmem:[#allocation11 + $0xc0] sm:$0xff]  ;;  %3360 = vmatpush1.bf16.msra.mxu1 %v4993_v25  ;;  %v5003_v33 = vpack.c.bf16 %v136_v28, %v132_v27  ;;  %v135_v34 = vld [vmem:[#allocation11 + $0x70] sm:$0xff] }
  0x65   :  { %v5000_v30 = vpack.c.bf16 %v150_v21, %v146_v18  ;;  %v149_v32 = vld [vmem:[#allocation11 + $0xe0] sm:$0xff]  ;;  %v154_v35 = vld [vmem:[#allocation11 + $0x108] sm:$0xff]  ;;  %v5005_v37 = vpack.c.bf16 %v135_v34, %v131_v29  ;;  %v140_v38 = vld [vmem:[#allocation11 + $0x98] sm:$0xff] }
  0x66   :  { %3332 = vmatpush1.bf16.msra.mxu0 %v4986_v14  ;;  %v158_v36 = vld [vmem:[#allocation11 + $0x128] sm:$0xff]  ;;  %3362 = vmatprep.subr.bf16.mxu1 %v5003_v33  ;;  %v144_v39 = vld [vmem:[#allocation11 + $0xb8] sm:$0xff]  ;;  %v139_v40 = vld [vmem:[#allocation11 + $0x90] sm:$0xff]  ;;  %v5009_v42 = vpack.c.bf16 %v149_v32, %v145_v31 }
  0x67   :  { %3334 = vmatprep.subr.bf16.mxu0 %v4989_v17  ;;  %5855 = vst [vmem:[#allocation27_spill] sm:$0xff] %v5000_v30  ;;  %v143_v41 = vld [vmem:[#allocation11 + $0xb0] sm:$0xff]  ;;  %v153_v43 = vld [vmem:[#allocation11 + $0x100] sm:$0xff]  ;;  %v5011_v45 = vpack.c.bf16 %v144_v39, %v140_v38  ;;  %v5014_v46 = vpack.c.bf16 %v158_v36, %v154_v35  ;;  %v162_v47 = vld [vmem:[#allocation11 + $0x148] sm:$0xff] }
  0x68   :  { %5856 = vst [vmem:[#allocation28_spill] sm:$0xff] %v5009_v42  ;;  %v157_v44 = vld [vmem:[#allocation11 + $0x120] sm:$0xff]  ;;  %3364 = vmatpush1.bf16.msra.mxu1 %v5005_v37  ;;  %v5017_v48 = vpack.c.bf16 %v143_v41, %v139_v40  ;;  %v148_v49 = vld [vmem:[#allocation11 + $0xd8] sm:$0xff]  ;;  %v166_v51 = vld [vmem:[#allocation11 + $0x168] sm:$0xff] }
  0x69   :  { %5857 = vst [vmem:[#allocation29_spill] sm:$0xff] %v5014_v46  ;;  %v152_v50 = vld [vmem:[#allocation11 + $0xf8] sm:$0xff]  ;;  %3366 = vmatprep.subr.bf16.mxu1 %v5011_v45  ;;  %v147_v53 = vld [vmem:[#allocation11 + $0xd0] sm:$0xff]  ;;  %v5023_v55 = vpack.c.bf16 %v157_v44, %v153_v43  ;;  %v5026_v58 = vpack.c.bf16 %v166_v51, %v162_v47  ;;  %v161_v59 = vld [vmem:[#allocation11 + $0x140] sm:$0xff] }
  0x6a   :  { %3336 = vmatpush1.bf16.msra.mxu0 %v4996_v26  ;;  %5858 = vst [vmem:[#allocation30_spill] sm:$0xff] %v5017_v48  ;;  %v5020_v52 = vpack.c.bf16 %v152_v50, %v148_v49  ;;  %v151_v54 = vld [vmem:[#allocation11 + $0xf0] sm:$0xff]  ;;  %v156_v56 = vld [vmem:[#allocation11 + $0x118] sm:$0xff]  ;;  %v165_v60 = vld [vmem:[#allocation11 + $0x160] sm:$0xff] }
  0x6b   :  { %3338 = vmatprep.subr.bf16.mxu0 %v5000_v30  ;;  %5860 = vst [vmem:[#allocation32_spill] sm:$0xff] %v5023_v55  ;;  %v160_v57 = vld [vmem:[#allocation11 + $0x138] sm:$0xff]  ;;  %5861 = vst [vmem:[#allocation33_spill] sm:$0xff] %v5026_v58  ;;  %v170_v61 = vld [vmem:[#allocation11 + $0x188] sm:$0xff]  ;;  %v5029_v62 = vpack.c.bf16 %v151_v54, %v147_v53  ;;  %v5035_v7 = vpack.c.bf16 %v165_v60, %v161_v59 }
  0x6c   :  { %5859 = vst [vmem:[#allocation31_spill] sm:$0xff] %v5020_v52  ;;  %3368 = vmatpush1.bf16.msra.mxu1 %v5017_v48  ;;  %v174_v63 = vld [vmem:[#allocation11 + $0x1a8] sm:$0xff]  ;;  %v5032_v1 = vpack.c.bf16 %v160_v57, %v156_v56  ;;  %v155_v2 = vld [vmem:[#allocation11 + $0x110] sm:$0xff]  ;;  %v164_v5 = vld [vmem:[#allocation11 + $0x158] sm:$0xff] }
  0x6d   :  { %5862 = vst [vmem:[#allocation34_spill] sm:$0xff] %v5029_v62  ;;  %3370 = vmatprep.subr.bf16.mxu1 %v5020_v52  ;;  %v159_v3 = vld [vmem:[#allocation11 + $0x130] sm:$0xff]  ;;  %v168_v6 = vld [vmem:[#allocation11 + $0x178] sm:$0xff]  ;;  %5864 = vst [vmem:[#allocation36_spill] sm:$0xff] %v5035_v7  ;;  %v5038_v10 = vpack.c.bf16 %v174_v63, %v170_v61 }
  0x6e   :  { %3340 = vmatpush1.bf16.msra.mxu0 %v5009_v42  ;;  %5863 = vst [vmem:[#allocation35_spill] sm:$0xff] %v5032_v1  ;;  %v169_v11 = vld [vmem:[#allocation11 + $0x180] sm:$0xff]  ;;  %v178_v13 = vld [vmem:[#allocation11 + $0x1c8] sm:$0xff]  ;;  %v5041_v15 = vpack.c.bf16 %v159_v3, %v155_v2  ;;  %v5044_v18 = vpack.c.bf16 %v168_v6, %v164_v5  ;;  %v163_v19 = vld [vmem:[#allocation11 + $0x150] sm:$0xff] }
  0x6f   :  { %3342 = vmatprep.subr.bf16.mxu0 %v5014_v46  ;;  %5865 = vst [vmem:[#allocation37_spill] sm:$0xff] %v5038_v10  ;;  %v173_v12 = vld [vmem:[#allocation11 + $0x1a0] sm:$0xff]  ;;  %v182_v16 = vld [vmem:[#allocation11 + $0x1e8] sm:$0xff]  ;;  %v167_v20 = vld [vmem:[#allocation11 + $0x170] sm:$0xff] }
  0x70   :  { %3372 = vmatpush1.bf16.msra.mxu1 %v5029_v62  ;;  %5866 = vst [vmem:[#allocation38_spill] sm:$0xff] %v5041_v15  ;;  %5867 = vst [vmem:[#allocation39_spill] sm:$0xff] %v5044_v18  ;;  %v172_v21 = vld [vmem:[#allocation11 + $0x198] sm:$0xff]  ;;  %v5047_v24 = vpack.c.bf16 %v173_v12, %v169_v11  ;;  %v5050_v27 = vpack.c.bf16 %v182_v16, %v178_v13  ;;  %v177_v28 = vld [vmem:[#allocation11 + $0x1c0] sm:$0xff]  ;;  %v5053_v32 = vpack.c.bf16 %v167_v20, %v163_v19 }
  0x71   :  { %3374 = vmatprep.subr.bf16.mxu1 %v5032_v1  ;;  %v176_v23 = vld [vmem:[#allocation11 + $0x1b8] sm:$0xff]  ;;  %v181_v29 = vld [vmem:[#allocation11 + $0x1e0] sm:$0xff]  ;;  %v186_v31 = vld [vmem:[#allocation12 + $0x8] sm:$0xff] }
  0x72   :  { %3344 = vmatpush1.bf16.msra.mxu0 %v5023_v55  ;;  %5868 = vst [vmem:[#allocation40_spill] sm:$0xff] %v5047_v24  ;;  %5869 = vst [vmem:[#allocation41_spill] sm:$0xff] %v5050_v27  ;;  %v190_v34 = vld [vmem:[#allocation12 + $0x28] sm:$0xff]  ;;  %v5056_v35 = vpack.c.bf16 %v176_v23, %v172_v21  ;;  %v171_v36 = vld [vmem:[#allocation11 + $0x190] sm:$0xff]  ;;  %v5059_v41 = vpack.c.bf16 %v181_v29, %v177_v28 }
  0x73   :  { %3346 = vmatprep.subr.bf16.mxu0 %v5026_v58  ;;  %5870 = vst [vmem:[#allocation42_spill] sm:$0xff] %v5053_v32  ;;  %v175_v38 = vld [vmem:[#allocation11 + $0x1b0] sm:$0xff]  ;;  %v180_v39 = vld [vmem:[#allocation11 + $0x1d8] sm:$0xff]  ;;  %v5062_v43 = vpack.c.bf16 %v190_v34, %v186_v31  ;;  %v185_v44 = vld [vmem:[#allocation12] sm:$0xff] }
  0x74   :  { %3376 = vmatpush1.bf16.msra.mxu1 %v5041_v15  ;;  %5871 = vst [vmem:[#allocation43_spill] sm:$0xff] %v5056_v35  ;;  %v184_v40 = vld [vmem:[#allocation11 + $0x1f8] sm:$0xff]  ;;  %5872 = vst [vmem:[#allocation44_spill] sm:$0xff] %v5059_v41  ;;  %v189_v47 = vld [vmem:[#allocation12 + $0x20] sm:$0xff]  ;;  %v5065_v50 = vpack.c.bf16 %v175_v38, %v171_v36 }
  0x75   :  { %3378 = vmatprep.subr.bf16.mxu1 %v5044_v18  ;;  %5873 = vst [vmem:[#allocation45_spill] sm:$0xff] %v5062_v43  ;;  %v194_v49 = vld [vmem:[#allocation12 + $0x48] sm:$0xff]  ;;  %v5068_v53 = vpack.c.bf16 %v184_v40, %v180_v39  ;;  %v179_v54 = vld [vmem:[#allocation11 + $0x1d0] sm:$0xff]  ;;  %v188_v57 = vld [vmem:[#allocation12 + $0x18] sm:$0xff]  ;;  %v5071_v61 = vpack.c.bf16 %v189_v47, %v185_v44 }
  0x76   :  { %3348 = vmatpush1.bf16.msra.mxu0 %v5035_v7  ;;  %5874 = vst [vmem:[#allocation46_spill] sm:$0xff] %v5065_v50  ;;  %v198_v51 = vld [vmem:[#allocation12 + $0x68] sm:$0xff]  ;;  %v183_v56 = vld [vmem:[#allocation11 + $0x1f0] sm:$0xff]  ;;  %v192_v59 = vld [vmem:[#allocation12 + $0x38] sm:$0xff] }
  0x77   :  { %3350 = vmatprep.subr.bf16.mxu0 %v5038_v10  ;;  %5875 = vst [vmem:[#allocation47_spill] sm:$0xff] %v5068_v53  ;;  %v111_v60 = vld [vmem:[#allocation14] sm:$0xff]  ;;  %v5074_v63 = vpack.c.bf16 %v198_v51, %v194_v49  ;;  %v202_v5 = vld [vmem:[#allocation12 + $0x88] sm:$0xff]  ;;  %v5077_v6 = vpack.c.bf16 %v183_v56, %v179_v54  ;;  %v5080_v12 = vpack.c.bf16 %v192_v59, %v188_v57  ;;  %v187_v13 = vld [vmem:[#allocation12 + $0x10] sm:$0xff] }
  0x78   :  { %3380 = vmatpush1.bf16.msra.mxu1 %v5053_v32  ;;  %v193_v2 = vld [vmem:[#allocation12 + $0x40] sm:$0xff]  ;;  %v206_v11 = vld [vmem:[#allocation12 + $0xa8] sm:$0xff]  ;;  %v191_v16 = vld [vmem:[#allocation12 + $0x30] sm:$0xff] }
  0x79   :  { %3382 = vmatprep.subr.bf16.mxu1 %v5056_v35  ;;  %v197_v3 = vld [vmem:[#allocation12 + $0x60] sm:$0xff]  ;;  %5876 = vst [vmem:[#allocation48_spill] sm:$0xff] %v5077_v6  ;;  %5877 = vst [vmem:[#allocation49_spill] sm:$0xff] %v5080_v12  ;;  %v196_v19 = vld [vmem:[#allocation12 + $0x58] sm:$0xff]  ;;  %v5087_v23 = vpack.c.bf16 %v206_v11, %v202_v5  ;;  %v5090_v34 = vpack.c.bf16 %v191_v16, %v187_v13 }
  0x7a   :  { %3352 = vmatpush1.bf16.msra.mxu0 %v5047_v24  ;;  %v200_v20 = vld [vmem:[#allocation12 + $0x78] sm:$0xff]  ;;  %v5083_v21 = vpack.c.bf16 %v197_v3, %v193_v2  ;;  %v201_v28 = vld [vmem:[#allocation12 + $0x80] sm:$0xff]  ;;  %v210_v31 = vld [vmem:[#allocation12 + $0xc8] sm:$0xff] }
  0x7b   :  { %3354 = vmatprep.subr.bf16.mxu0 %v5050_v27  ;;  %v205_v29 = vld [vmem:[#allocation12 + $0xa0] sm:$0xff]  ;;  %v214_v36 = vld [vmem:[#allocation12 + $0xe8] sm:$0xff]  ;;  %v5093_v38 = vpack.c.bf16 %v200_v20, %v196_v19  ;;  %v195_v39 = vld [vmem:[#allocation12 + $0x50] sm:$0xff] }
  0x7c   :  { %3384 = vmatpush1.bf16.msra.mxu1 %v5065_v50  ;;  %v199_v40 = vld [vmem:[#allocation12 + $0x70] sm:$0xff]  ;;  %v204_v44 = vld [vmem:[#allocation12 + $0x98] sm:$0xff]  ;;  %v5096_v49 = vpack.c.bf16 %v205_v29, %v201_v28  ;;  %v5099_v51 = vpack.c.bf16 %v214_v36, %v210_v31  ;;  %v209_v54 = vld [vmem:[#allocation12 + $0xc0] sm:$0xff] }
  0x7d   :  { %3386 = vmatprep.subr.bf16.mxu1 %v5068_v53  ;;  %v208_v47 = vld [vmem:[#allocation12 + $0xb8] sm:$0xff]  ;;  %v213_v56 = vld [vmem:[#allocation12 + $0xe0] sm:$0xff]  ;;  %v218_v57 = vld [vmem:[#allocation12 + $0x108] sm:$0xff]  ;;  %v5102_v59 = vpack.c.bf16 %v199_v40, %v195_v39 }
  0x7e   :  { %3356 = vmatpush1.bf16.msra.mxu0 %v5059_v41  ;;  %5878 = vst [vmem:[#allocation50_spill] sm:$0xff] %v5099_v51  ;;  %v222_v2 = vld [vmem:[#allocation12 + $0x128] sm:$0xff]  ;;  %v5105_v3 = vpack.c.bf16 %v208_v47, %v204_v44  ;;  %v203_v5 = vld [vmem:[#allocation12 + $0x90] sm:$0xff]  ;;  %v216_v13 = vld [vmem:[#allocation12 + $0xf8] sm:$0xff]  ;;  %v5109_v16 = vpack.c.bf16 %v213_v56, %v209_v54 }
  0x7f   :  { %3390 = vmatprep.subr.bf16.mxu0 %v5062_v43  ;;  %v207_v11 = vld [vmem:[#allocation12 + $0xb0] sm:$0xff]  ;;  %v5112_v19 = vpack.c.bf16 %v222_v2, %v218_v57  ;;  %v217_v20 = vld [vmem:[#allocation12 + $0x100] sm:$0xff]  ;;  %v226_v29 = vld [vmem:[#allocation12 + $0x148] sm:$0xff] }
  0x80   :  { %3388 = vmatpush1.bf16.msra.mxu1 %v5077_v6  ;;  %5879 = vst [vmem:[#allocation51_spill] sm:$0xff] %v5109_v16  ;;  %v221_v28 = vld [vmem:[#allocation12 + $0x120] sm:$0xff]  ;;  %v5115_v31 = vpack.c.bf16 %v207_v11, %v203_v5  ;;  %v230_v36 = vld [vmem:[#allocation12 + $0x168] sm:$0xff]  ;;  %v211_v40 = vld [vmem:[#allocation12 + $0xd0] sm:$0xff] }
  0x81   :  { %318 = vmatmul.mubr.f32.vlgmr.msra.gmra.mrb[0].mxu0 %v111_v60  ;;  %3422 = vmatprep.subr.bf16.mxu1 %v5080_v12  ;;  %5880 = vst [vmem:[#allocation52_spill] sm:$0xff] %v5112_v19  ;;  %v215_v44 = vld [vmem:[#allocation12 + $0xf0] sm:$0xff]  ;;  %v220_v47 = vld [vmem:[#allocation12 + $0x118] sm:$0xff]  ;;  %v5121_v56 = vpack.c.bf16 %v221_v28, %v217_v20  ;;  %v5124_v57 = vpack.c.bf16 %v230_v36, %v226_v29  ;;  %v225_v2 = vld [vmem:[#allocation12 + $0x140] sm:$0xff] }
  0x82   :  { %3392 = vmatpush1.bf16.msra.mxu0 %v5071_v61  ;;  %500 = vmatprep.mubr.f32.mxu0 %v5787_v0  ;;  %5881 = vst [vmem:[#allocation53_spill] sm:$0xff] %v5115_v31  ;;  %v224_v54 = vld [vmem:[#allocation12 + $0x138] sm:$0xff]  ;;  %v229_v5 = vld [vmem:[#allocation12 + $0x160] sm:$0xff]  ;;  %v234_v11 = vld [vmem:[#allocation12 + $0x188] sm:$0xff] }
  0x83   :  { %3394 = vmatprep.subr.bf16.mxu0 %v5074_v63  ;;  %389 = vmatmul.mubr.f32.vlgmr.msra.gmra.mrb[0].mxu1 %v111_v60  ;;  %v212_v60 = vld [vmem:[#allocation12 + $0xd8] sm:$0xff]  ;;  %5883 = vst [vmem:[#allocation55_spill] sm:$0xff] %v5121_v56  ;;  %5884 = vst [vmem:[#allocation56_spill] sm:$0xff] %v5124_v57  ;;  %v5133_v29 = vpack.c.bf16 %v229_v5, %v225_v2 }
  0x84   :  { %3424 = vmatpush1.bf16.msra.mxu1 %v5090_v34  ;;  %571 = vmatprep.mubr.f32.mxu1 %v5787_v0  ;;  %v5118_v39 = vpack.c.bf16 %v216_v13, %v212_v60  ;;  %v5127_v0 = vpack.c.bf16 %v215_v44, %v211_v40  ;;  %v238_v60 = vld [vmem:[#allocation12 + $0x1a8] sm:$0xff]  ;;  %v5130_v13 = vpack.c.bf16 %v224_v54, %v220_v47  ;;  %v228_v20 = vld [vmem:[#allocation12 + $0x158] sm:$0xff]  ;;  %v237_v40 = vld [vmem:[#allocation12 + $0x1a0] sm:$0xff] }
  0x85   :  { %3426 = vmatprep.subr.bf16.mxu1 %v5093_v38  ;;  %v232_v28 = vld [vmem:[#allocation12 + $0x178] sm:$0xff]  ;;  %5887 = vst [vmem:[#allocation59_spill] sm:$0xff] %v5133_v29  ;;  %v5136_v36 = vpack.c.bf16 %v238_v60, %v234_v11  ;;  %v242_v44 = vld [vmem:[#allocation12 + $0x1c8] sm:$0xff] }
  0x86   :  { %3396 = vmatpush1.bf16.msra.mxu0 %v5083_v21  ;;  %5882 = vst [vmem:[#allocation54_spill] sm:$0xff] %v5118_v39  ;;  %5885 = vst [vmem:[#allocation57_spill] sm:$0xff] %v5127_v0  ;;  %v246_v47 = vld [vmem:[#allocation12 + $0x1e8] sm:$0xff]  ;;  %v5142_v54 = vpack.c.bf16 %v232_v28, %v228_v20  ;;  %v236_v2 = vld [vmem:[#allocation12 + $0x198] sm:$0xff] }
  0x87   :  { %3398 = vmatprep.subr.bf16.mxu0 %v5087_v23  ;;  %5886 = vst [vmem:[#allocation58_spill] sm:$0xff] %v5130_v13  ;;  %v240_v5 = vld [vmem:[#allocation12 + $0x1b8] sm:$0xff]  ;;  %v5148_v60 = vpack.c.bf16 %v246_v47, %v242_v44  ;;  %v235_v28 = vld [vmem:[#allocation12 + $0x190] sm:$0xff]  ;;  %v116_v47 = vld [vmem:[#allocation14 + $0x8] sm:$0xff] }
  0x88   :  { %3428 = vmatpush1.bf16.msra.mxu1 %v5102_v59  ;;  %v5154_v20 = vpack.c.bf16 %v240_v5, %v236_v2  ;;  %v247_v44 = vld [vmem:[#allocation12 + $0x1f0] sm:$0xff] }
  0x89   :  { %3430 = vmatprep.subr.bf16.mxu1 %v5105_v3 }
  0x8a   :  { %3400 = vmatpush1.bf16.msra.mxu0 %v5096_v49 }
  0x8b   :  { %3402 = vmatprep.subr.bf16.mxu0 %v5099_v51  ;;  %v219_v51 = vld [vmem:[#allocation12 + $0x110] sm:$0xff] }
  0x8c   :  { %3432 = vmatpush1.bf16.msra.mxu1 %v5115_v31  ;;  %v227_v31 = vld [vmem:[#allocation12 + $0x150] sm:$0xff] }
  0x8d   :  { %3434 = vmatprep.subr.bf16.mxu1 %v5118_v39 }
  0x8e   :  { %3404 = vmatpush1.bf16.msra.mxu0 %v5109_v16  ;;  %v223_v16 = vld [vmem:[#allocation12 + $0x130] sm:$0xff] }
  0x8f   :  { %3406 = vmatprep.subr.bf16.mxu0 %v5112_v19  ;;  %v233_v19 = vld [vmem:[#allocation12 + $0x180] sm:$0xff]  ;;  %v5139_v39 = vpack.c.bf16 %v223_v16, %v219_v51 }
  0x90   :  { %3436 = vmatpush1.bf16.msra.mxu1 %v5127_v0  ;;  %v5145_v11 = vpack.c.bf16 %v237_v40, %v233_v19  ;;  %v245_v51 = vld [vmem:[#allocation12 + $0x1e0] sm:$0xff]  ;;  %v244_v0 = vld [vmem:[#allocation12 + $0x1d8] sm:$0xff] }
  0x91   :  { %3438 = vmatprep.subr.bf16.mxu1 %v5130_v13  ;;  %v239_v13 = vld [vmem:[#allocation12 + $0x1b0] sm:$0xff] }
  0x92   :  { %3408 = vmatpush1.bf16.msra.mxu0 %v5121_v56  ;;  %v231_v56 = vld [vmem:[#allocation12 + $0x170] sm:$0xff]  ;;  %v5161_v40 = vpack.c.bf16 %v239_v13, %v235_v28 }
  0x93   :  { %3410 = vmatprep.subr.bf16.mxu0 %v5124_v57  ;;  %v241_v57 = vld [vmem:[#allocation12 + $0x1c0] sm:$0xff]  ;;  %v5151_v16 = vpack.c.bf16 %v231_v56, %v227_v31  ;;  %v243_v56 = vld [vmem:[#allocation12 + $0x1d0] sm:$0xff] }
  0x94   :  { %3440 = vmatpush1.bf16.msra.mxu1 %v5139_v39  ;;  %v5157_v19 = vpack.c.bf16 %v245_v51, %v241_v57  ;;  %v5168_v2 = vpack.c.bf16 %v247_v44, %v243_v56  ;;  %v5888_v57 = vmov 0.0   ;;  %v250_v51 = vld [vmem:[#allocation6 + $0x8] sm:$0xff] }
  0x95   :  { %3442 = vmatprep.subr.bf16.mxu1 %v5142_v54 }
  0x96   :  { %3412 = vmatpush1.bf16.msra.mxu0 %v5133_v29  ;;  %v248_v29 = vld [vmem:[#allocation12 + $0x1f8] sm:$0xff] }
  0x97   :  { %3414 = vmatprep.subr.bf16.mxu0 %v5136_v36  ;;  %v5164_v31 = vpack.c.bf16 %v248_v29, %v244_v0  ;;  %v249_v0 = vld [vmem:[#allocation6] sm:$0xff] }
  0x98   :  { %3444 = vmatpush1.bf16.msra.mxu1 %v5151_v16  ;;  %v395_v13 = vunpack.c.l.bf16 %v249_v0  ;;  %v396_v29 = vunpack.c.h.bf16 %v249_v0 }
  0x99   :  { %3446 = vmatprep.subr.bf16.mxu1 %v5154_v20 }
  0x9a   :  { %3416 = vmatpush1.bf16.msra.mxu0 %v5145_v11 }
  0x9b   :  { %3418 = vmatprep.subr.bf16.mxu0 %v5148_v60 }
  0x9c   :  { %3448 = vmatpush1.bf16.msra.mxu1 %v5161_v40 }
  0x9d   :  { %3450 = vmatprep.subr.bf16.mxu1 %v5164_v31 }
  0x9e   :  { %3420 = vmatpush1.bf16.msra.mxu0 %v5157_v19 }
  0x9f   :  { %3454 = vmatprep.subr.bf16.mxu0 %v4978_v4 }
  0xa0   :  { %3452 = vmatpush1.bf16.msra.mxu1 %v5168_v2 }
  0xa1   :  { %501 = vmatmul.mubr.f32.vlgmr.msra.gmra.mrb[2].mxu0 %v116_v47  ;;  %3486 = vmatprep.subr.bf16.mxu1 %v4991_v22 }
  0xa2   :  { %3456 = vmatpush1.bf16.msra.mxu0 %v4980_v8  ;;  %684 = vmatprep.mubr.f32.mxu0 %v5888_v57 }
  0xa3   :  { %3458 = vmatprep.subr.bf16.mxu0 %v4982_v9  ;;  %572 = vmatmul.mubr.f32.vlgmr.msra.gmra.mrb[2].mxu1 %v116_v47 }
  0xa4   :  { %3488 = vmatpush1.bf16.msra.mxu1 %v4993_v25  ;;  %755 = vmatprep.mubr.f32.mxu1 %v5888_v57 }
  0xa5   :  { %3490 = vmatprep.subr.bf16.mxu1 %v5003_v33 }
  0xa6   :  { %3460 = vmatpush1.bf16.msra.mxu0 %v4986_v14 }
  0xa7   :  { %3462 = vmatprep.subr.bf16.mxu0 %v4989_v17 }
  0xa8   :  { %3492 = vmatpush1.bf16.msra.mxu1 %v5005_v37 }
  0xa9   :  { %3494 = vmatprep.subr.bf16.mxu1 %v5011_v45 }
  0xaa   :  { %3464 = vmatpush1.bf16.msra.mxu0 %v4996_v26 }
  0xab   :  { %3466 = vmatprep.subr.bf16.mxu0 %v5000_v30 }
  0xac   :  { %3496 = vmatpush1.bf16.msra.mxu1 %v5017_v48 }
  0xad   :  { %3498 = vmatprep.subr.bf16.mxu1 %v5020_v52 }
  0xae   :  { %3468 = vmatpush1.bf16.msra.mxu0 %v5009_v42 }
  0xaf   :  { %3470 = vmatprep.subr.bf16.mxu0 %v5014_v46 }
  0xb0   :  { %3500 = vmatpush1.bf16.msra.mxu1 %v5029_v62 }
  0xb1   :  { %3502 = vmatprep.subr.bf16.mxu1 %v5032_v1 }
  0xb2   :  { %3472 = vmatpush1.bf16.msra.mxu0 %v5023_v55 }
  0xb3   :  { %3474 = vmatprep.subr.bf16.mxu0 %v5026_v58 }
  0xb4   :  { %3504 = vmatpush1.bf16.msra.mxu1 %v5041_v15 }
  0xb5   :  { %3506 = vmatprep.subr.bf16.mxu1 %v5044_v18 }
  0xb6   :  { %3476 = vmatpush1.bf16.msra.mxu0 %v5035_v7 }
  0xb7   :  { %3478 = vmatprep.subr.bf16.mxu0 %v5038_v10 }
  0xb8   :  { %3508 = vmatpush1.bf16.msra.mxu1 %v5053_v32 }
  0xb9   :  { %3510 = vmatprep.subr.bf16.mxu1 %v5056_v35 }
  0xba   :  { %3480 = vmatpush1.bf16.msra.mxu0 %v5047_v24  ;;  %v397_v24 = vunpack.c.l.bf16 %v250_v51 }
  0xbb   :  { %3482 = vmatprep.subr.bf16.mxu0 %v5050_v27 }
  0xbc   :  { %3512 = vmatpush1.bf16.msra.mxu1 %v5065_v50 }
  0xbd   :  { %3514 = vmatprep.subr.bf16.mxu1 %v5068_v53 }
  0xbe   :  { %3484 = vmatpush1.bf16.msra.mxu0 %v5059_v41  ;;  %v398_v41 = vunpack.c.h.bf16 %v250_v51 }
  0xbf   :  { %3518 = vmatprep.subr.bf16.mxu0 %v5062_v43 }
  0xc0   :  { %3516 = vmatpush1.bf16.msra.mxu1 %v5077_v6 }
  0xc1   :  { %3550 = vmatprep.subr.bf16.mxu1 %v5080_v12 }
 0x154   :  { %v319_v5 = vpop.f32.mrb[0].mxu0 }
 0x155   :  { %v399_v28 = vadd.f32 %v395_v13, %v319_v5  ;;  %v321_v56 = vpop.f32.mrb[1].mxu0  ;;  %v432_v5 = vld [vmem:[#allocation9 + $0x70] sm:$0xff] }
 0x156   :  { %v400_v44 = vadd.f32 %v396_v29, %v321_v56  ;;  %v390_v50 = vpop.f32.mrb[0].mxu1 }
 0x157   :  { %v3277_v47 = vmul.f32 -1.442695, %v399_v28  ;;  %v392_v43 = vpop.f32.mrb[1].mxu1  ;;  %v401_v35 = vadd.f32 %v397_v24, %v390_v50  ;;  %v578_v24 = vunpack.c.l.bf16 %v432_v5 }
 0x158   :  { %v3278_v27 = vmul.f32 -1.442695, %v400_v44  ;;  %v402_v53 = vadd.f32 %v398_v41, %v392_v43 }
 0x159   :  { %4367 = vpow2.f32 %v3277_v47 }
 0x15a   :  { %4369 = vpow2.f32 %v3278_v27  ;;  %v3279_v6 = vmul.f32 -1.442695, %v402_v53  ;;  %v113_v27 = vld [vmem:[%s5782_s5] sm:$0xff] }
 0x15c   :  { %4371 = vpow2.f32 %v3279_v6  ;;  %v579_v6 = vunpack.c.h.bf16 %v432_v5 }
 0x15d   :  { %4373 = vtanh.f32 %v401_v35  ;;  %v433_v35 = vld [vmem:[#allocation9 + $0x78] sm:$0xff] }
 0x15e   :  { %v581_v47 = vunpack.c.h.bf16 %v433_v35 }
 0x163   :  { %v4368_v12 = vpop.eup %4367 }
 0x164   :  { %v4370_v10 = vpop.eup %4369  ;;  %v406_v0 = vadd.f32 1.0, %v4368_v12 }
 0x165   :  { %v412_v32 = vadd.f32 1.0, %v4370_v10 }
 0x166   :  { %4375 = vrcp.f32 %v406_v0  ;;  %v4372_v13 = vpop.eup %4371 }
 0x167   :  { %4377 = vrcp.f32 %v412_v32  ;;  %v4374_v29 = vpop.eup %4373  ;;  %v419_v41 = vadd.f32 1.0, %v4372_v13 }
 0x169   :  { %4379 = vrcp.f32 %v419_v41 }
 0x170   :  { %v4376_v28 = vpop.eup %4375 }
 0x171   :  { %v4378_v43 = vpop.eup %4377  ;;  %v423_v53 = vmul.f32 %v4376_v28, %v4374_v29 }
 0x172   :  { %v422_v50 = vmul.f32 %v4378_v43, %v113_v27  ;;  %v580_v27 = vunpack.c.l.bf16 %v433_v35 }
 0x173   :  { %v4380_v5 = vpop.eup %4379 }
 0x174   :  { %v5211_v51 = vadd.f32 %v423_v53, %v422_v50  ;;  %v502_v10 = vpop.f32.mrb[2].mxu0 }
 0x175   :  { %v582_v32 = vadd.f32 %v578_v24, %v502_v10  ;;  %v504_v12 = vpop.f32.mrb[3].mxu0 }
 0x176   :  { %4381 = vtanh.f32 %v5211_v51  ;;  %v583_v56 = vadd.f32 %v579_v6, %v504_v12  ;;  %v573_v13 = vpop.f32.mrb[2].mxu1  ;;  %v5890_v12 = vld [vmem:[#allocation50_spill] sm:$0xff] }
 0x177   :  { %v3280_v44 = vmul.f32 -1.442695, %v582_v32  ;;  %v575_v29 = vpop.f32.mrb[3].mxu1  ;;  %v584_v41 = vadd.f32 %v580_v27, %v573_v13 }
 0x178   :  { %v3281_v0 = vmul.f32 -1.442695, %v583_v56  ;;  %v585_v28 = vadd.f32 %v581_v47, %v575_v29  ;;  %v5891_v56 = vld [vmem:[#allocation54_spill] sm:$0xff]  ;;  %v5892_v29 = vld [vmem:[#allocation51_spill] sm:$0xff] }
 0x179   :  { %4383 = vpow2.f32 %v3280_v44  ;;  %v3276_v47 = vld [vmem:[%s5782_s5 + $0x8] sm:$0xff]  ;;  %s4845_s5 = smov [#allocation15]  }
 0x17a   :  { %4385 = vpow2.f32 %v3281_v0  ;;  %v3282_v43 = vmul.f32 -1.442695, %v585_v28  ;;  %v5893_v28 = vld [vmem:[#allocation57_spill] sm:$0xff]  ;;  %s3207_s13 = sshll.u32 %s4845_s5, 4  ;;  %s3208_s13 = int_to_ptr.vmem [resolvable:$true] %s3207_s13 }
 0x17b   :  { %s4733_s1 = scalar_lea.vmem %s3208_s13, 512  ;;  %p4738_p13 = scmp.lt.s32.totalorder %s3208_s13, %s3208_s13 }
 0x17c   :  { %4387 = vpow2.f32 %v3282_v43  ;;  %v5894_v43 = vld [vmem:[#allocation52_spill] sm:$0xff]  ;;  %p4734_p12 = scmp.ne.s32.totalorder %s3208_s13, %s4733_s1  ;;  %p4739_p0 = scmp.lt.s32.totalorder %s4733_s1, %s4733_s1 }
 0x17d   :  { %4389 = vtanh.f32 %v584_v41 }
 0x17e   :  { %p4740_p1 = por %p4739_p0, %p4738_p13 }
 0x180   :  { %v4382_v53 = vpop.eup %4381  ;;  %p4741_p2 = pnand %p4740_p1, %p4734_p12 }
 0x181   :  { %v426_v50 = vmul.f32 %v4382_v53, %v4380_v5  ;;  %v5895_v53 = vld [vmem:[#allocation58_spill] sm:$0xff] }
 0x183   :  { %v4384_v7 = vpop.eup %4383  ;;  %v429_v24 = vpack.c.bf16 %v426_v50, %v426_v50  ;;  %685 = vmatmul.mubr.f32.vlgmr.msra.gmra.mrb[4].mxu0 %v426_v50  ;;  %756 = vmatmul.mubr.f32.vlgmr.msra.gmra.mrb[4].mxu1 %v426_v50 }
 0x184   :  { %v4386_v6 = vpop.eup %4385  ;;  %v589_v10 = vadd.f32 1.0, %v4384_v7  ;;  %3520 = vmatpush1.bf16.msra.mxu0 %v5071_v61  ;;  %3552 = vmatpush1.bf16.msra.mxu1 %v5090_v34  ;;  %v5889_v7 = vld [vmem:[#allocation53_spill] sm:$0xff] }
 0x185   :  { %v595_v32 = vadd.f32 1.0, %v4386_v6  ;;  %430 = vst [vmem:[#allocation15] sm:$0xf] %v429_v24  ;;  %3522 = vmatprep.subr.bf16.mxu0 %v5074_v63  ;;  %3554 = vmatprep.subr.bf16.mxu1 %v5093_v38  ;;  %v5896_v24 = vld [vmem:[#allocation55_spill] sm:$0xff]  ;;  %v5897_v6 = vld [vmem:[#allocation56_spill] sm:$0xff] }
 0x186   :  { %4391 = vrcp.f32 %v589_v10  ;;  %868 = vmatprep.mubr.f32.mxu0 %v5888_v57  ;;  %939 = vmatprep.mubr.f32.mxu1 %v5888_v57  ;;  %v4388_v35 = vpop.eup %4387  ;;  %v5898_v10 = vld [vmem:[#allocation59_spill] sm:$0xff] }
 0x187   :  { %4393 = vrcp.f32 %v595_v32  ;;  %v4390_v44 = vpop.eup %4389  ;;  %v602_v13 = vadd.f32 1.0, %v4388_v35 }
 0x188   :  { %3524 = vmatpush1.bf16.msra.mxu0 %v5083_v21  ;;  %3556 = vmatpush1.bf16.msra.mxu1 %v5102_v59 }
 0x189   :  { %3526 = vmatprep.subr.bf16.mxu0 %v5087_v23  ;;  %3558 = vmatprep.subr.bf16.mxu1 %v5105_v3  ;;  %4395 = vrcp.f32 %v602_v13  ;;  %v5900_v13 = vld [vmem:[#allocation42_spill] sm:$0xff] }
 0x18c   :  { %3528 = vmatpush1.bf16.msra.mxu0 %v5096_v49  ;;  %3560 = vmatpush1.bf16.msra.mxu1 %v5889_v7 }
 0x18d   :  { %3530 = vmatprep.subr.bf16.mxu0 %v5890_v12  ;;  %3562 = vmatprep.subr.bf16.mxu1 %v5891_v56 }
 0x190   :  { %v4392_v0 = vpop.eup %4391  ;;  %3532 = vmatpush1.bf16.msra.mxu0 %v5892_v29  ;;  %3564 = vmatpush1.bf16.msra.mxu1 %v5893_v28 }
 0x191   :  { %v4394_v27 = vpop.eup %4393  ;;  %v606_v5 = vmul.f32 %v4392_v0, %v4390_v44  ;;  %3534 = vmatprep.subr.bf16.mxu0 %v5894_v43  ;;  %3566 = vmatprep.subr.bf16.mxu1 %v5895_v53  ;;  %v5899_v0 = vld [vmem:[#allocation36_spill] sm:$0xff] }
 0x192   :  { %v605_v41 = vmul.f32 %v4394_v27, %v3276_v47  ;;  %v5901_v27 = vld [vmem:[#allocation37_spill] sm:$0xff] }
 0x193   :  { %v4396_v32 = vpop.eup %4395 }
 0x194   :  { %v5235_v50 = vadd.f32 %v606_v5, %v605_v41  ;;  %3536 = vmatpush1.bf16.msra.mxu0 %v5896_v24  ;;  %3568 = vmatpush1.bf16.msra.mxu1 %v5139_v39  ;;  %v5902_v5 = vld [vmem:[#allocation43_spill] sm:$0xff]  ;;  %v5903_v41 = vld [vmem:[#allocation40_spill] sm:$0xff] }
 0x195   :  { %3538 = vmatprep.subr.bf16.mxu0 %v5897_v6  ;;  %3570 = vmatprep.subr.bf16.mxu1 %v5142_v54 }
 0x196   :  { %4397 = vtanh.f32 %v5235_v50 }
 0x198   :  { %3540 = vmatpush1.bf16.msra.mxu0 %v5898_v10  ;;  %3572 = vmatpush1.bf16.msra.mxu1 %v5151_v16 }
 0x199   :  { %3542 = vmatprep.subr.bf16.mxu0 %v5136_v36  ;;  %3574 = vmatprep.subr.bf16.mxu1 %v5154_v20 }
 0x19c   :  { %3544 = vmatpush1.bf16.msra.mxu0 %v5145_v11  ;;  %3576 = vmatpush1.bf16.msra.mxu1 %v5161_v40 }
 0x19d   :  { %3546 = vmatprep.subr.bf16.mxu0 %v5148_v60  ;;  %3578 = vmatprep.subr.bf16.mxu1 %v5164_v31 }
 0x1a0   :  { %v4398_v35 = vpop.eup %4397  ;;  %3548 = vmatpush1.bf16.msra.mxu0 %v5157_v19  ;;  %3580 = vmatpush1.bf16.msra.mxu1 %v5168_v2 }
 0x1a1   :  { %v609_v44 = vmul.f32 %v4398_v35, %v4396_v32  ;;  %3582 = vmatprep.subr.bf16.mxu0 %v4978_v4  ;;  %3614 = vmatprep.subr.bf16.mxu1 %v4991_v22  ;;  %v5904_v32 = vld [vmem:[#allocation46_spill] sm:$0xff]  ;;  %v5905_v35 = vld [vmem:[#allocation41_spill] sm:$0xff] }
 0x1a3   :  { %v612_v47 = vpack.c.bf16 %v609_v44, %v609_v44  ;;  %869 = vmatmul.mubr.f32.vlgmr.msra.gmra.mrb[6].mxu0 %v609_v44  ;;  %940 = vmatmul.mubr.f32.vlgmr.msra.gmra.mrb[6].mxu1 %v609_v44  ;;  %v5906_v44 = vld [vmem:[#allocation47_spill] sm:$0xff] }
 0x1a4   :  { %3584 = vmatpush1.bf16.msra.mxu0 %v4980_v8  ;;  %3616 = vmatpush1.bf16.msra.mxu1 %v4993_v25 }
 0x1a5   :  { %614 = vst [vmem:[#allocation16 + $0x1c] sm:$0xf] %v612_v47  ;;  %3586 = vmatprep.subr.bf16.mxu0 %v4982_v9  ;;  %3618 = vmatprep.subr.bf16.mxu1 %v5003_v33  ;;  %v5907_v47 = vld [vmem:[#allocation44_spill] sm:$0xff] }
 0x1a6   :  { %1052 = vmatprep.mubr.f32.mxu0 %v5888_v57  ;;  %1123 = vmatprep.mubr.f32.mxu1 %v5888_v57 }
 0x1a8   :  { %3588 = vmatpush1.bf16.msra.mxu0 %v4986_v14  ;;  %3620 = vmatpush1.bf16.msra.mxu1 %v5005_v37 }
 0x1a9   :  { %3590 = vmatprep.subr.bf16.mxu0 %v4989_v17  ;;  %3622 = vmatprep.subr.bf16.mxu1 %v5011_v45 }
 0x1ac   :  { %3592 = vmatpush1.bf16.msra.mxu0 %v4996_v26  ;;  %3624 = vmatpush1.bf16.msra.mxu1 %v5017_v48 }
 0x1ad   :  { %3594 = vmatprep.subr.bf16.mxu0 %v5000_v30  ;;  %3626 = vmatprep.subr.bf16.mxu1 %v5020_v52 }
 0x1b0   :  { %3596 = vmatpush1.bf16.msra.mxu0 %v5009_v42  ;;  %3628 = vmatpush1.bf16.msra.mxu1 %v5029_v62 }
 0x1b1   :  { %3598 = vmatprep.subr.bf16.mxu0 %v5014_v46  ;;  %3630 = vmatprep.subr.bf16.mxu1 %v5032_v1  ;;  %v617_v1 = vld [vmem:[#allocation6 + $0x18] sm:$0xff] }
 0x1b2   :  { %v765_v42 = vunpack.c.h.bf16 %v617_v1 }
 0x1b4   :  { %3600 = vmatpush1.bf16.msra.mxu0 %v5023_v55  ;;  %3632 = vmatpush1.bf16.msra.mxu1 %v5041_v15 }
 0x1b5   :  { %3602 = vmatprep.subr.bf16.mxu0 %v5026_v58  ;;  %3634 = vmatprep.subr.bf16.mxu1 %v5044_v18  ;;  %v5908_v58 = vld [vmem:[#allocation48_spill] sm:$0xff]  ;;  %v5909_v18 = vld [vmem:[#allocation45_spill] sm:$0xff] }
 0x1b8   :  { %3604 = vmatpush1.bf16.msra.mxu0 %v5899_v0  ;;  %3636 = vmatpush1.bf16.msra.mxu1 %v5900_v13  ;;  %v5910_v0 = vld [vmem:[#allocation49_spill] sm:$0xff]  ;;  %v616_v13 = vld [vmem:[#allocation6 + $0x10] sm:$0xff] }
 0x1b9   :  { %3606 = vmatprep.subr.bf16.mxu0 %v5901_v27  ;;  %3638 = vmatprep.subr.bf16.mxu1 %v5902_v5  ;;  %v762_v27 = vunpack.c.l.bf16 %v616_v13  ;;  %v763_v15 = vunpack.c.h.bf16 %v616_v13 }
 0x1bc   :  { %3608 = vmatpush1.bf16.msra.mxu0 %v5903_v41  ;;  %3640 = vmatpush1.bf16.msra.mxu1 %v5904_v32 }
 0x1bd   :  { %3610 = vmatprep.subr.bf16.mxu0 %v5905_v35  ;;  %3642 = vmatprep.subr.bf16.mxu1 %v5906_v44 }
 0x1c0   :  { %3612 = vmatpush1.bf16.msra.mxu0 %v5907_v47  ;;  %3644 = vmatpush1.bf16.msra.mxu1 %v5908_v58  ;;  %v764_v47 = vunpack.c.l.bf16 %v617_v1 }
 0x1c1   :  { %3646 = vmatprep.subr.bf16.mxu0 %v5909_v18  ;;  %3678 = vmatprep.subr.bf16.mxu1 %v5910_v0 }
 0x256   :  { %v686_v5 = vpop.f32.mrb[4].mxu0  ;;  %v757_v55 = vpop.f32.mrb[4].mxu1 }
 0x257   :  { %v766_v41 = vadd.f32 %v762_v27, %v686_v5  ;;  %v688_v32 = vpop.f32.mrb[5].mxu0  ;;  %v759_v46 = vpop.f32.mrb[5].mxu1  ;;  %v768_v52 = vadd.f32 %v764_v47, %v757_v55  ;;  %v800_v5 = vld [vmem:[#allocation9 + $0x60] sm:$0xff] }
 0x258   :  { %v767_v35 = vadd.f32 %v763_v15, %v688_v32  ;;  %v769_v58 = vadd.f32 %v765_v42, %v759_v46  ;;  %v947_v46 = vunpack.c.h.bf16 %v800_v5 }
 0x259   :  { %v3283_v62 = vmul.f32 -1.442695, %v766_v41 }
 0x25a   :  { %v3284_v44 = vmul.f32 -1.442695, %v767_v35  ;;  %v3285_v18 = vmul.f32 -1.442695, %v769_v58 }
 0x25b   :  { %4399 = vpow2.f32 %v3283_v62 }
 0x25c   :  { %4401 = vpow2.f32 %v3284_v44  ;;  %v946_v44 = vunpack.c.l.bf16 %v800_v5 }
 0x25d   :  { %4403 = vpow2.f32 %v3285_v18 }
 0x25e   :  { %4405 = vtanh.f32 %v768_v52 }
 0x265   :  { %v4400_v0 = vpop.eup %4399 }
 0x266   :  { %v4402_v30 = vpop.eup %4401  ;;  %v773_v48 = vadd.f32 1.0, %v4400_v0 }
 0x267   :  { %v779_v13 = vadd.f32 1.0, %v4402_v30  ;;  %v4404_v27 = vpop.eup %4403  ;;  %v801_v30 = vld [vmem:[#allocation9 + $0x68] sm:$0xff] }
 0x268   :  { %4407 = vrcp.f32 %v773_v48  ;;  %v4406_v15 = vpop.eup %4405  ;;  %v786_v62 = vadd.f32 1.0, %v4404_v27 }
 0x269   :  { %4409 = vrcp.f32 %v779_v13 }
 0x26a   :  { %4411 = vrcp.f32 %v786_v62 }
 0x272   :  { %v4408_v41 = vpop.eup %4407 }
 0x273   :  { %v4410_v32 = vpop.eup %4409  ;;  %v790_v35 = vmul.f32 %v4408_v41, %v4406_v15  ;;  %v949_v15 = vunpack.c.h.bf16 %v801_v30 }
 0x274   :  { %v789_v42 = vmul.f32 %v4410_v32, %v5211_v51  ;;  %v948_v51 = vunpack.c.l.bf16 %v801_v30  ;;  %v4412_v5 = vpop.eup %4411 }
 0x276   :  { %v5289_v55 = vadd.f32 %v790_v35, %v789_v42  ;;  %v870_v58 = vpop.f32.mrb[6].mxu0  ;;  %v941_v1 = vpop.f32.mrb[6].mxu1 }
 0x277   :  { %v950_v52 = vadd.f32 %v946_v44, %v870_v58  ;;  %v872_v48 = vpop.f32.mrb[7].mxu0  ;;  %v943_v18 = vpop.f32.mrb[7].mxu1  ;;  %v952_v35 = vadd.f32 %v948_v51, %v941_v1 }
 0x278   :  { %v951_v0 = vadd.f32 %v947_v46, %v872_v48  ;;  %4413 = vtanh.f32 %v5289_v55  ;;  %v953_v27 = vadd.f32 %v949_v15, %v943_v18 }
 0x279   :  { %v3286_v47 = vmul.f32 -1.442695, %v950_v52 }
 0x27a   :  { %v3287_v13 = vmul.f32 -1.442695, %v951_v0  ;;  %v3288_v32 = vmul.f32 -1.442695, %v953_v27 }
 0x27b   :  { %4415 = vpow2.f32 %v3286_v47 }
 0x27c   :  { %4417 = vpow2.f32 %v3287_v13 }
 0x27d   :  { %4419 = vpow2.f32 %v3288_v32  ;;  %v5912_v32 = vld [vmem:[#allocation27_spill] sm:$0xff] }
 0x27e   :  { %4421 = vtanh.f32 %v952_v35  ;;  %v5913_v35 = vld [vmem:[#allocation31_spill] sm:$0xff] }
 0x282   :  { %v4414_v41 = vpop.eup %4413 }
 0x283   :  { %v793_v42 = vmul.f32 %v4414_v41, %v4412_v5  ;;  %v5911_v41 = vld [vmem:[#allocation30_spill] sm:$0xff] }
 0x285   :  { %v4416_v62 = vpop.eup %4415  ;;  %v796_v44 = vpack.c.bf16 %v793_v42, %v793_v42  ;;  %1053 = vmatmul.mubr.f32.vlgmr.msra.gmra.mrb[8].mxu0 %v793_v42  ;;  %1124 = vmatmul.mubr.f32.vlgmr.msra.gmra.mrb[8].mxu1 %v793_v42  ;;  %v5914_v42 = vld [vmem:[#allocation28_spill] sm:$0xff] }
 0x286   :  { %v4418_v58 = vpop.eup %4417  ;;  %v957_v46 = vadd.f32 1.0, %v4416_v62  ;;  %3648 = vmatpush1.bf16.msra.mxu0 %v5071_v61  ;;  %3680 = vmatpush1.bf16.msra.mxu1 %v5090_v34  ;;  %v5915_v62 = vld [vmem:[#allocation34_spill] sm:$0xff] }
 0x287   :  { %v963_v52 = vadd.f32 1.0, %v4418_v58  ;;  %798 = vst [vmem:[#allocation15 + $0x4] sm:$0xf] %v796_v44  ;;  %3650 = vmatprep.subr.bf16.mxu0 %v5074_v63  ;;  %3682 = vmatprep.subr.bf16.mxu1 %v5093_v38  ;;  %v4420_v1 = vpop.eup %4419  ;;  %v5916_v44 = vld [vmem:[#allocation29_spill] sm:$0xff]  ;;  %v5917_v58 = vld [vmem:[#allocation35_spill] sm:$0xff] }
 0x288   :  { %4423 = vrcp.f32 %v957_v46  ;;  %1236 = vmatprep.mubr.f32.mxu0 %v5888_v57  ;;  %1307 = vmatprep.mubr.f32.mxu1 %v5888_v57  ;;  %v4422_v30 = vpop.eup %4421  ;;  %v970_v47 = vadd.f32 1.0, %v4420_v1  ;;  %v5918_v46 = vld [vmem:[#allocation32_spill] sm:$0xff]  ;;  %v5920_v1 = vld [vmem:[#allocation33_spill] sm:$0xff] }
 0x289   :  { %4425 = vrcp.f32 %v963_v52  ;;  %v5919_v52 = vld [vmem:[#allocation38_spill] sm:$0xff] }
 0x28a   :  { %3652 = vmatpush1.bf16.msra.mxu0 %v5083_v21  ;;  %3684 = vmatpush1.bf16.msra.mxu1 %v5102_v59  ;;  %4427 = vrcp.f32 %v970_v47  ;;  %v5925_v47 = vld [vmem:[#allocation43_spill] sm:$0xff] }
 0x28b   :  { %3654 = vmatprep.subr.bf16.mxu0 %v5087_v23  ;;  %3686 = vmatprep.subr.bf16.mxu1 %v5105_v3 }
 0x28e   :  { %3656 = vmatpush1.bf16.msra.mxu0 %v5096_v49  ;;  %3688 = vmatpush1.bf16.msra.mxu1 %v5889_v7 }
 0x28f   :  { %3658 = vmatprep.subr.bf16.mxu0 %v5890_v12  ;;  %3690 = vmatprep.subr.bf16.mxu1 %v5891_v56 }
 0x292   :  { %v4424_v48 = vpop.eup %4423  ;;  %3660 = vmatpush1.bf16.msra.mxu0 %v5892_v29  ;;  %3692 = vmatpush1.bf16.msra.mxu1 %v5893_v28 }
 0x293   :  { %v4426_v18 = vpop.eup %4425  ;;  %v974_v0 = vmul.f32 %v4424_v48, %v4422_v30  ;;  %3662 = vmatprep.subr.bf16.mxu0 %v5894_v43  ;;  %3694 = vmatprep.subr.bf16.mxu1 %v5895_v53  ;;  %v5921_v30 = vld [vmem:[#allocation39_spill] sm:$0xff]  ;;  %v5922_v48 = vld [vmem:[#allocation36_spill] sm:$0xff] }
 0x294   :  { %v973_v13 = vmul.f32 %v4426_v18, %v5235_v50  ;;  %v4428_v50 = vpop.eup %4427  ;;  %v5923_v18 = vld [vmem:[#allocation42_spill] sm:$0xff] }
 0x296   :  { %v5311_v15 = vadd.f32 %v974_v0, %v973_v13  ;;  %3664 = vmatpush1.bf16.msra.mxu0 %v5896_v24  ;;  %3696 = vmatpush1.bf16.msra.mxu1 %v5139_v39  ;;  %v5924_v0 = vld [vmem:[#allocation37_spill] sm:$0xff]  ;;  %v5926_v13 = vld [vmem:[#allocation40_spill] sm:$0xff] }
 0x297   :  { %3666 = vmatprep.subr.bf16.mxu0 %v5897_v6  ;;  %3698 = vmatprep.subr.bf16.mxu1 %v5142_v54 }
 0x298   :  { %4429 = vtanh.f32 %v5311_v15 }
 0x29a   :  { %3668 = vmatpush1.bf16.msra.mxu0 %v5898_v10  ;;  %3700 = vmatpush1.bf16.msra.mxu1 %v5151_v16 }
 0x29b   :  { %3670 = vmatprep.subr.bf16.mxu0 %v5136_v36  ;;  %3702 = vmatprep.subr.bf16.mxu1 %v5154_v20 }
 0x29e   :  { %3672 = vmatpush1.bf16.msra.mxu0 %v5145_v11  ;;  %3704 = vmatpush1.bf16.msra.mxu1 %v5161_v40 }
 0x29f   :  { %3674 = vmatprep.subr.bf16.mxu0 %v5148_v60  ;;  %3706 = vmatprep.subr.bf16.mxu1 %v5164_v31 }
 0x2a2   :  { %v4430_v27 = vpop.eup %4429  ;;  %3676 = vmatpush1.bf16.msra.mxu0 %v5157_v19  ;;  %3708 = vmatpush1.bf16.msra.mxu1 %v5168_v2 }
 0x2a3   :  { %v977_v51 = vmul.f32 %v4430_v27, %v4428_v50  ;;  %3710 = vmatprep.subr.bf16.mxu0 %v4978_v4  ;;  %3742 = vmatprep.subr.bf16.mxu1 %v4991_v22  ;;  %v5927_v50 = vld [vmem:[#allocation46_spill] sm:$0xff]  ;;  %v5928_v27 = vld [vmem:[#allocation41_spill] sm:$0xff] }
 0x2a5   :  { %v980_v5 = vpack.c.bf16 %v977_v51, %v977_v51  ;;  %1237 = vmatmul.mubr.f32.vlgmr.msra.gmra.mrb[10].mxu0 %v977_v51  ;;  %1308 = vmatmul.mubr.f32.vlgmr.msra.gmra.mrb[10].mxu1 %v977_v51  ;;  %v5929_v51 = vld [vmem:[#allocation47_spill] sm:$0xff] }
 0x2a6   :  { %3712 = vmatpush1.bf16.msra.mxu0 %v4980_v8  ;;  %3744 = vmatpush1.bf16.msra.mxu1 %v4993_v25 }
 0x2a7   :  { %982 = vst [vmem:[#allocation16 + $0x18] sm:$0xf] %v980_v5  ;;  %3714 = vmatprep.subr.bf16.mxu0 %v4982_v9  ;;  %3746 = vmatprep.subr.bf16.mxu1 %v5003_v33  ;;  %v5930_v5 = vld [vmem:[#allocation44_spill] sm:$0xff] }
 0x2a8   :  { %1420 = vmatprep.mubr.f32.mxu0 %v5888_v57  ;;  %1491 = vmatprep.mubr.f32.mxu1 %v5888_v57 }
 0x2aa   :  { %3716 = vmatpush1.bf16.msra.mxu0 %v4986_v14  ;;  %3748 = vmatpush1.bf16.msra.mxu1 %v5005_v37 }
 0x2ab   :  { %3718 = vmatprep.subr.bf16.mxu0 %v4989_v17  ;;  %3750 = vmatprep.subr.bf16.mxu1 %v5011_v45 }
 0x2ae   :  { %3720 = vmatpush1.bf16.msra.mxu0 %v4996_v26  ;;  %3752 = vmatpush1.bf16.msra.mxu1 %v5911_v41 }
 0x2af   :  { %3722 = vmatprep.subr.bf16.mxu0 %v5912_v32  ;;  %3754 = vmatprep.subr.bf16.mxu1 %v5913_v35 }
 0x2b2   :  { %3724 = vmatpush1.bf16.msra.mxu0 %v5914_v42  ;;  %3756 = vmatpush1.bf16.msra.mxu1 %v5915_v62 }
 0x2b3   :  { %3726 = vmatprep.subr.bf16.mxu0 %v5916_v44  ;;  %3758 = vmatprep.subr.bf16.mxu1 %v5917_v58  ;;  %v985_v58 = vld [vmem:[#allocation6 + $0x28] sm:$0xff] }
 0x2b4   :  { %v1133_v42 = vunpack.c.h.bf16 %v985_v58 }
 0x2b6   :  { %3728 = vmatpush1.bf16.msra.mxu0 %v5918_v46  ;;  %3760 = vmatpush1.bf16.msra.mxu1 %v5919_v52 }
 0x2b7   :  { %3730 = vmatprep.subr.bf16.mxu0 %v5920_v1  ;;  %3762 = vmatprep.subr.bf16.mxu1 %v5921_v30  ;;  %v5931_v1 = vld [vmem:[#allocation48_spill] sm:$0xff]  ;;  %v5932_v30 = vld [vmem:[#allocation45_spill] sm:$0xff] }
 0x2ba   :  { %3732 = vmatpush1.bf16.msra.mxu0 %v5922_v48  ;;  %3764 = vmatpush1.bf16.msra.mxu1 %v5923_v18  ;;  %v5933_v48 = vld [vmem:[#allocation49_spill] sm:$0xff] }
 0x2bb   :  { %3734 = vmatprep.subr.bf16.mxu0 %v5924_v0  ;;  %3766 = vmatprep.subr.bf16.mxu1 %v5925_v47  ;;  %v984_v18 = vld [vmem:[#allocation6 + $0x20] sm:$0xff] }
 0x2bc   :  { %v1130_v0 = vunpack.c.l.bf16 %v984_v18  ;;  %v1131_v52 = vunpack.c.h.bf16 %v984_v18 }
 0x2be   :  { %3736 = vmatpush1.bf16.msra.mxu0 %v5926_v13  ;;  %3768 = vmatpush1.bf16.msra.mxu1 %v5927_v50 }
 0x2bf   :  { %3738 = vmatprep.subr.bf16.mxu0 %v5928_v27  ;;  %3770 = vmatprep.subr.bf16.mxu1 %v5929_v51 }
 0x2c2   :  { %3740 = vmatpush1.bf16.msra.mxu0 %v5930_v5  ;;  %3772 = vmatpush1.bf16.msra.mxu1 %v5931_v1  ;;  %v1132_v5 = vunpack.c.l.bf16 %v985_v58 }
 0x2c3   :  { %3774 = vmatprep.subr.bf16.mxu0 %v5932_v30  ;;  %3806 = vmatprep.subr.bf16.mxu1 %v5933_v48 }
 0x358   :  { %v1054_v47 = vpop.f32.mrb[8].mxu0  ;;  %v1125_v46 = vpop.f32.mrb[8].mxu1 }
 0x359   :  { %v1134_v13 = vadd.f32 %v1130_v0, %v1054_v47  ;;  %v1056_v50 = vpop.f32.mrb[9].mxu0  ;;  %v1127_v44 = vpop.f32.mrb[9].mxu1  ;;  %v1136_v35 = vadd.f32 %v1132_v5, %v1125_v46  ;;  %v1168_v47 = vld [vmem:[#allocation9 + $0x50] sm:$0xff] }
 0x35a   :  { %v1135_v27 = vadd.f32 %v1131_v52, %v1056_v50  ;;  %v1137_v1 = vadd.f32 %v1133_v42, %v1127_v44  ;;  %v1315_v44 = vunpack.c.h.bf16 %v1168_v47 }
 0x35b   :  { %v3289_v62 = vmul.f32 -1.442695, %v1134_v13 }
 0x35c   :  { %v3290_v51 = vmul.f32 -1.442695, %v1135_v27  ;;  %v3291_v30 = vmul.f32 -1.442695, %v1137_v1 }
 0x35d   :  { %4431 = vpow2.f32 %v3289_v62 }
 0x35e   :  { %4433 = vpow2.f32 %v3290_v51  ;;  %v1314_v51 = vunpack.c.l.bf16 %v1168_v47 }
 0x35f   :  { %4435 = vpow2.f32 %v3291_v30 }
 0x360   :  { %4437 = vtanh.f32 %v1136_v35 }
 0x367   :  { %v4432_v48 = vpop.eup %4431 }
 0x368   :  { %v4434_v32 = vpop.eup %4433  ;;  %v1141_v41 = vadd.f32 1.0, %v4432_v48 }
 0x369   :  { %v1147_v18 = vadd.f32 1.0, %v4434_v32  ;;  %v4436_v0 = vpop.eup %4435  ;;  %v1169_v32 = vld [vmem:[#allocation9 + $0x58] sm:$0xff] }
 0x36a   :  { %4439 = vrcp.f32 %v1141_v41  ;;  %v4438_v52 = vpop.eup %4437  ;;  %v1154_v62 = vadd.f32 1.0, %v4436_v0 }
 0x36b   :  { %4441 = vrcp.f32 %v1147_v18 }
 0x36c   :  { %4443 = vrcp.f32 %v1154_v62 }
 0x374   :  { %v4440_v13 = vpop.eup %4439 }
 0x375   :  { %v4442_v50 = vpop.eup %4441  ;;  %v1158_v27 = vmul.f32 %v4440_v13, %v4438_v52  ;;  %v1317_v52 = vunpack.c.h.bf16 %v1169_v32 }
 0x376   :  { %v1157_v42 = vmul.f32 %v4442_v50, %v5289_v55  ;;  %v1316_v55 = vunpack.c.l.bf16 %v1169_v32  ;;  %v4444_v47 = vpop.eup %4443 }
 0x378   :  { %v5365_v58 = vadd.f32 %v1158_v27, %v1157_v42  ;;  %v1238_v46 = vpop.f32.mrb[10].mxu0  ;;  %v1309_v1 = vpop.f32.mrb[10].mxu1 }
 0x379   :  { %v1318_v35 = vadd.f32 %v1314_v51, %v1238_v46  ;;  %v1240_v41 = vpop.f32.mrb[11].mxu0  ;;  %v1311_v30 = vpop.f32.mrb[11].mxu1  ;;  %v1320_v27 = vadd.f32 %v1316_v55, %v1309_v1 }
 0x37a   :  { %v1319_v48 = vadd.f32 %v1315_v44, %v1240_v41  ;;  %4445 = vtanh.f32 %v5365_v58  ;;  %v1321_v0 = vadd.f32 %v1317_v52, %v1311_v30 }
 0x37b   :  { %v3292_v5 = vmul.f32 -1.442695, %v1318_v35 }
 0x37c   :  { %v3293_v18 = vmul.f32 -1.442695, %v1319_v48  ;;  %v3294_v50 = vmul.f32 -1.442695, %v1321_v0 }
 0x37d   :  { %4447 = vpow2.f32 %v3292_v5 }
 0x37e   :  { %4449 = vpow2.f32 %v3293_v18 }
 0x37f   :  { %4451 = vpow2.f32 %v3294_v50  ;;  %v5935_v50 = vld [vmem:[#allocation27_spill] sm:$0xff] }
 0x380   :  { %4453 = vtanh.f32 %v1320_v27  ;;  %v5936_v27 = vld [vmem:[#allocation31_spill] sm:$0xff] }
 0x384   :  { %v4446_v13 = vpop.eup %4445 }
 0x385   :  { %v1161_v42 = vmul.f32 %v4446_v13, %v4444_v47  ;;  %v5934_v13 = vld [vmem:[#allocation30_spill] sm:$0xff] }
 0x387   :  { %v4448_v62 = vpop.eup %4447  ;;  %v1164_v51 = vpack.c.bf16 %v1161_v42, %v1161_v42  ;;  %1421 = vmatmul.mubr.f32.vlgmr.msra.gmra.mrb[12].mxu0 %v1161_v42  ;;  %1492 = vmatmul.mubr.f32.vlgmr.msra.gmra.mrb[12].mxu1 %v1161_v42  ;;  %v5937_v42 = vld [vmem:[#allocation28_spill] sm:$0xff] }
 0x388   :  { %v4450_v46 = vpop.eup %4449  ;;  %v1325_v44 = vadd.f32 1.0, %v4448_v62  ;;  %3776 = vmatpush1.bf16.msra.mxu0 %v5071_v61  ;;  %3808 = vmatpush1.bf16.msra.mxu1 %v5090_v34  ;;  %v5938_v62 = vld [vmem:[#allocation34_spill] sm:$0xff] }
 0x389   :  { %v1331_v35 = vadd.f32 1.0, %v4450_v46  ;;  %1166 = vst [vmem:[#allocation15 + $0x8] sm:$0xf] %v1164_v51  ;;  %3778 = vmatprep.subr.bf16.mxu0 %v5074_v63  ;;  %3810 = vmatprep.subr.bf16.mxu1 %v5093_v38  ;;  %v4452_v1 = vpop.eup %4451  ;;  %v5939_v51 = vld [vmem:[#allocation29_spill] sm:$0xff]  ;;  %v5940_v46 = vld [vmem:[#allocation35_spill] sm:$0xff] }
 0x38a   :  { %4455 = vrcp.f32 %v1325_v44  ;;  %1604 = vmatprep.mubr.f32.mxu0 %v5888_v57  ;;  %1675 = vmatprep.mubr.f32.mxu1 %v5888_v57  ;;  %v4454_v32 = vpop.eup %4453  ;;  %v1338_v5 = vadd.f32 1.0, %v4452_v1  ;;  %v5941_v44 = vld [vmem:[#allocation32_spill] sm:$0xff]  ;;  %v5943_v1 = vld [vmem:[#allocation33_spill] sm:$0xff] }
 0x38b   :  { %4457 = vrcp.f32 %v1331_v35  ;;  %v5942_v35 = vld [vmem:[#allocation38_spill] sm:$0xff] }
 0x38c   :  { %3780 = vmatpush1.bf16.msra.mxu0 %v5083_v21  ;;  %3812 = vmatpush1.bf16.msra.mxu1 %v5102_v59  ;;  %4459 = vrcp.f32 %v1338_v5  ;;  %v5948_v5 = vld [vmem:[#allocation43_spill] sm:$0xff] }
 0x38d   :  { %3782 = vmatprep.subr.bf16.mxu0 %v5087_v23  ;;  %3814 = vmatprep.subr.bf16.mxu1 %v5105_v3 }
 0x390   :  { %3784 = vmatpush1.bf16.msra.mxu0 %v5096_v49  ;;  %3816 = vmatpush1.bf16.msra.mxu1 %v5889_v7 }
 0x391   :  { %3786 = vmatprep.subr.bf16.mxu0 %v5890_v12  ;;  %3818 = vmatprep.subr.bf16.mxu1 %v5891_v56 }
 0x394   :  { %v4456_v41 = vpop.eup %4455  ;;  %3788 = vmatpush1.bf16.msra.mxu0 %v5892_v29  ;;  %3820 = vmatpush1.bf16.msra.mxu1 %v5893_v28 }
 0x395   :  { %v4458_v30 = vpop.eup %4457  ;;  %v1342_v48 = vmul.f32 %v4456_v41, %v4454_v32  ;;  %3790 = vmatprep.subr.bf16.mxu0 %v5894_v43  ;;  %3822 = vmatprep.subr.bf16.mxu1 %v5895_v53  ;;  %v5944_v32 = vld [vmem:[#allocation39_spill] sm:$0xff]  ;;  %v5945_v41 = vld [vmem:[#allocation36_spill] sm:$0xff] }
 0x396   :  { %v1341_v18 = vmul.f32 %v4458_v30, %v5311_v15  ;;  %v4460_v15 = vpop.eup %4459  ;;  %v5946_v30 = vld [vmem:[#allocation42_spill] sm:$0xff] }
 0x398   :  { %v5387_v52 = vadd.f32 %v1342_v48, %v1341_v18  ;;  %3792 = vmatpush1.bf16.msra.mxu0 %v5896_v24  ;;  %3824 = vmatpush1.bf16.msra.mxu1 %v5139_v39  ;;  %v5947_v48 = vld [vmem:[#allocation37_spill] sm:$0xff]  ;;  %v5949_v18 = vld [vmem:[#allocation40_spill] sm:$0xff] }
 0x399   :  { %3794 = vmatprep.subr.bf16.mxu0 %v5897_v6  ;;  %3826 = vmatprep.subr.bf16.mxu1 %v5142_v54 }
 0x39a   :  { %4461 = vtanh.f32 %v5387_v52 }
 0x39c   :  { %3796 = vmatpush1.bf16.msra.mxu0 %v5898_v10  ;;  %3828 = vmatpush1.bf16.msra.mxu1 %v5151_v16 }
 0x39d   :  { %3798 = vmatprep.subr.bf16.mxu0 %v5136_v36  ;;  %3830 = vmatprep.subr.bf16.mxu1 %v5154_v20 }
 0x3a0   :  { %3800 = vmatpush1.bf16.msra.mxu0 %v5145_v11  ;;  %3832 = vmatpush1.bf16.msra.mxu1 %v5161_v40 }
 0x3a1   :  { %3802 = vmatprep.subr.bf16.mxu0 %v5148_v60  ;;  %3834 = vmatprep.subr.bf16.mxu1 %v5164_v31 }
 0x3a4   :  { %v4462_v0 = vpop.eup %4461  ;;  %3804 = vmatpush1.bf16.msra.mxu0 %v5157_v19  ;;  %3836 = vmatpush1.bf16.msra.mxu1 %v5168_v2 }
 0x3a5   :  { %v1345_v55 = vmul.f32 %v4462_v0, %v4460_v15  ;;  %3838 = vmatprep.subr.bf16.mxu0 %v4978_v4  ;;  %3870 = vmatprep.subr.bf16.mxu1 %v4991_v22  ;;  %v5950_v15 = vld [vmem:[#allocation46_spill] sm:$0xff]  ;;  %v5951_v0 = vld [vmem:[#allocation41_spill] sm:$0xff] }
 0x3a7   :  { %v1348_v47 = vpack.c.bf16 %v1345_v55, %v1345_v55  ;;  %1605 = vmatmul.mubr.f32.vlgmr.msra.gmra.mrb[14].mxu0 %v1345_v55  ;;  %1676 = vmatmul.mubr.f32.vlgmr.msra.gmra.mrb[14].mxu1 %v1345_v55  ;;  %v5952_v55 = vld [vmem:[#allocation47_spill] sm:$0xff] }
 0x3a8   :  { %3840 = vmatpush1.bf16.msra.mxu0 %v4980_v8  ;;  %3872 = vmatpush1.bf16.msra.mxu1 %v4993_v25 }
 0x3a9   :  { %1350 = vst [vmem:[#allocation16 + $0x14] sm:$0xf] %v1348_v47  ;;  %3842 = vmatprep.subr.bf16.mxu0 %v4982_v9  ;;  %3874 = vmatprep.subr.bf16.mxu1 %v5003_v33  ;;  %v5953_v47 = vld [vmem:[#allocation44_spill] sm:$0xff] }
 0x3aa   :  { %1788 = vmatprep.mubr.f32.mxu0 %v5888_v57  ;;  %1859 = vmatprep.mubr.f32.mxu1 %v5888_v57 }
 0x3ac   :  { %3844 = vmatpush1.bf16.msra.mxu0 %v4986_v14  ;;  %3876 = vmatpush1.bf16.msra.mxu1 %v5005_v37 }
 0x3ad   :  { %3846 = vmatprep.subr.bf16.mxu0 %v4989_v17  ;;  %3878 = vmatprep.subr.bf16.mxu1 %v5011_v45 }
 0x3b0   :  { %3848 = vmatpush1.bf16.msra.mxu0 %v4996_v26  ;;  %3880 = vmatpush1.bf16.msra.mxu1 %v5934_v13 }
 0x3b1   :  { %3850 = vmatprep.subr.bf16.mxu0 %v5935_v50  ;;  %3882 = vmatprep.subr.bf16.mxu1 %v5936_v27 }
 0x3b4   :  { %3852 = vmatpush1.bf16.msra.mxu0 %v5937_v42  ;;  %3884 = vmatpush1.bf16.msra.mxu1 %v5938_v62 }
 0x3b5   :  { %3854 = vmatprep.subr.bf16.mxu0 %v5939_v51  ;;  %3886 = vmatprep.subr.bf16.mxu1 %v5940_v46  ;;  %v1353_v46 = vld [vmem:[#allocation6 + $0x38] sm:$0xff] }
 0x3b6   :  { %v1501_v42 = vunpack.c.h.bf16 %v1353_v46 }
 0x3b8   :  { %3856 = vmatpush1.bf16.msra.mxu0 %v5941_v44  ;;  %3888 = vmatpush1.bf16.msra.mxu1 %v5942_v35 }
 0x3b9   :  { %3858 = vmatprep.subr.bf16.mxu0 %v5943_v1  ;;  %3890 = vmatprep.subr.bf16.mxu1 %v5944_v32  ;;  %v5954_v1 = vld [vmem:[#allocation48_spill] sm:$0xff]  ;;  %v5955_v32 = vld [vmem:[#allocation45_spill] sm:$0xff] }
 0x3bc   :  { %3860 = vmatpush1.bf16.msra.mxu0 %v5945_v41  ;;  %3892 = vmatpush1.bf16.msra.mxu1 %v5946_v30  ;;  %v5956_v41 = vld [vmem:[#allocation49_spill] sm:$0xff]  ;;  %v1352_v30 = vld [vmem:[#allocation6 + $0x30] sm:$0xff] }
 0x3bd   :  { %3862 = vmatprep.subr.bf16.mxu0 %v5947_v48  ;;  %3894 = vmatprep.subr.bf16.mxu1 %v5948_v5  ;;  %v1498_v48 = vunpack.c.l.bf16 %v1352_v30  ;;  %v1499_v35 = vunpack.c.h.bf16 %v1352_v30 }
 0x3c0   :  { %3864 = vmatpush1.bf16.msra.mxu0 %v5949_v18  ;;  %3896 = vmatpush1.bf16.msra.mxu1 %v5950_v15 }
 0x3c1   :  { %3866 = vmatprep.subr.bf16.mxu0 %v5951_v0  ;;  %3898 = vmatprep.subr.bf16.mxu1 %v5952_v55 }
 0x3c4   :  { %3868 = vmatpush1.bf16.msra.mxu0 %v5953_v47  ;;  %3900 = vmatpush1.bf16.msra.mxu1 %v5954_v1  ;;  %v1500_v47 = vunpack.c.l.bf16 %v1353_v46 }
 0x3c5   :  { %3902 = vmatprep.subr.bf16.mxu0 %v5955_v32  ;;  %3934 = vmatprep.subr.bf16.mxu1 %v5956_v41 }
 0x45a   :  { %v1422_v5 = vpop.f32.mrb[12].mxu0  ;;  %v1493_v44 = vpop.f32.mrb[12].mxu1 }
 0x45b   :  { %v1502_v18 = vadd.f32 %v1498_v48, %v1422_v5  ;;  %v1424_v15 = vpop.f32.mrb[13].mxu0  ;;  %v1495_v51 = vpop.f32.mrb[13].mxu1  ;;  %v1504_v27 = vadd.f32 %v1500_v47, %v1493_v44  ;;  %v1536_v5 = vld [vmem:[#allocation9 + $0x40] sm:$0xff] }
 0x45c   :  { %v1503_v0 = vadd.f32 %v1499_v35, %v1424_v15  ;;  %v1505_v1 = vadd.f32 %v1501_v42, %v1495_v51  ;;  %v1683_v51 = vunpack.c.h.bf16 %v1536_v5 }
 0x45d   :  { %v3295_v62 = vmul.f32 -1.442695, %v1502_v18 }
 0x45e   :  { %v3296_v55 = vmul.f32 -1.442695, %v1503_v0  ;;  %v3297_v32 = vmul.f32 -1.442695, %v1505_v1 }
 0x45f   :  { %4463 = vpow2.f32 %v3295_v62 }
 0x460   :  { %4465 = vpow2.f32 %v3296_v55  ;;  %v1682_v55 = vunpack.c.l.bf16 %v1536_v5 }
 0x461   :  { %4467 = vpow2.f32 %v3297_v32 }
 0x462   :  { %4469 = vtanh.f32 %v1504_v27 }
 0x469   :  { %v4464_v41 = vpop.eup %4463 }
 0x46a   :  { %v4466_v50 = vpop.eup %4465  ;;  %v1509_v13 = vadd.f32 1.0, %v4464_v41 }
 0x46b   :  { %v1515_v30 = vadd.f32 1.0, %v4466_v50  ;;  %v4468_v48 = vpop.eup %4467  ;;  %v1537_v50 = vld [vmem:[#allocation9 + $0x48] sm:$0xff] }
 0x46c   :  { %4471 = vrcp.f32 %v1509_v13  ;;  %v4470_v35 = vpop.eup %4469  ;;  %v1522_v62 = vadd.f32 1.0, %v4468_v48 }
 0x46d   :  { %4473 = vrcp.f32 %v1515_v30 }
 0x46e   :  { %4475 = vrcp.f32 %v1522_v62 }
 0x476   :  { %v4472_v18 = vpop.eup %4471 }
 0x477   :  { %v4474_v15 = vpop.eup %4473  ;;  %v1526_v0 = vmul.f32 %v4472_v18, %v4470_v35  ;;  %v1685_v35 = vunpack.c.h.bf16 %v1537_v50 }
 0x478   :  { %v1525_v42 = vmul.f32 %v4474_v15, %v5365_v58  ;;  %v1684_v58 = vunpack.c.l.bf16 %v1537_v50  ;;  %v4476_v5 = vpop.eup %4475 }
 0x47a   :  { %v5441_v46 = vadd.f32 %v1526_v0, %v1525_v42  ;;  %v1606_v44 = vpop.f32.mrb[14].mxu0  ;;  %v1677_v1 = vpop.f32.mrb[14].mxu1 }
 0x47b   :  { %v1686_v27 = vadd.f32 %v1682_v55, %v1606_v44  ;;  %v1608_v13 = vpop.f32.mrb[15].mxu0  ;;  %v1679_v32 = vpop.f32.mrb[15].mxu1  ;;  %v1688_v0 = vadd.f32 %v1684_v58, %v1677_v1 }
 0x47c   :  { %v1687_v41 = vadd.f32 %v1683_v51, %v1608_v13  ;;  %4477 = vtanh.f32 %v5441_v46  ;;  %v1689_v48 = vadd.f32 %v1685_v35, %v1679_v32 }
 0x47d   :  { %v3298_v47 = vmul.f32 -1.442695, %v1686_v27 }
 0x47e   :  { %v3299_v30 = vmul.f32 -1.442695, %v1687_v41  ;;  %v3300_v15 = vmul.f32 -1.442695, %v1689_v48 }
 0x47f   :  { %4479 = vpow2.f32 %v3298_v47 }
 0x480   :  { %4481 = vpow2.f32 %v3299_v30 }
 0x481   :  { %4483 = vpow2.f32 %v3300_v15  ;;  %v5958_v15 = vld [vmem:[#allocation27_spill] sm:$0xff] }
 0x482   :  { %4485 = vtanh.f32 %v1688_v0  ;;  %v5959_v0 = vld [vmem:[#allocation31_spill] sm:$0xff] }
 0x486   :  { %v4478_v18 = vpop.eup %4477 }
 0x487   :  { %v1529_v42 = vmul.f32 %v4478_v18, %v4476_v5  ;;  %v5957_v18 = vld [vmem:[#allocation30_spill] sm:$0xff] }
 0x489   :  { %v4480_v62 = vpop.eup %4479  ;;  %v1532_v55 = vpack.c.bf16 %v1529_v42, %v1529_v42  ;;  %1789 = vmatmul.mubr.f32.vlgmr.msra.gmra.mrb[16].mxu0 %v1529_v42  ;;  %1860 = vmatmul.mubr.f32.vlgmr.msra.gmra.mrb[16].mxu1 %v1529_v42  ;;  %v5960_v42 = vld [vmem:[#allocation28_spill] sm:$0xff] }
 0x48a   :  { %v4482_v44 = vpop.eup %4481  ;;  %v1693_v51 = vadd.f32 1.0, %v4480_v62  ;;  %3904 = vmatpush1.bf16.msra.mxu0 %v5071_v61  ;;  %3936 = vmatpush1.bf16.msra.mxu1 %v5090_v34  ;;  %v5961_v62 = vld [vmem:[#allocation34_spill] sm:$0xff] }
 0x48b   :  { %v1699_v27 = vadd.f32 1.0, %v4482_v44  ;;  %1534 = vst [vmem:[#allocation15 + $0xc] sm:$0xf] %v1532_v55  ;;  %3906 = vmatprep.subr.bf16.mxu0 %v5074_v63  ;;  %3938 = vmatprep.subr.bf16.mxu1 %v5093_v38  ;;  %v4484_v1 = vpop.eup %4483  ;;  %v5962_v55 = vld [vmem:[#allocation29_spill] sm:$0xff]  ;;  %v5963_v44 = vld [vmem:[#allocation35_spill] sm:$0xff] }
 0x48c   :  { %4487 = vrcp.f32 %v1693_v51  ;;  %1972 = vmatprep.mubr.f32.mxu0 %v5888_v57  ;;  %2043 = vmatprep.mubr.f32.mxu1 %v5888_v57  ;;  %v4486_v50 = vpop.eup %4485  ;;  %v1706_v47 = vadd.f32 1.0, %v4484_v1  ;;  %v5964_v51 = vld [vmem:[#allocation32_spill] sm:$0xff]  ;;  %v5966_v1 = vld [vmem:[#allocation33_spill] sm:$0xff] }
 0x48d   :  { %4489 = vrcp.f32 %v1699_v27  ;;  %v5965_v27 = vld [vmem:[#allocation38_spill] sm:$0xff] }
 0x48e   :  { %3908 = vmatpush1.bf16.msra.mxu0 %v5083_v21  ;;  %3940 = vmatpush1.bf16.msra.mxu1 %v5102_v59  ;;  %4491 = vrcp.f32 %v1706_v47  ;;  %v5971_v47 = vld [vmem:[#allocation43_spill] sm:$0xff] }
 0x48f   :  { %3910 = vmatprep.subr.bf16.mxu0 %v5087_v23  ;;  %3942 = vmatprep.subr.bf16.mxu1 %v5105_v3 }
 0x492   :  { %3912 = vmatpush1.bf16.msra.mxu0 %v5096_v49  ;;  %3944 = vmatpush1.bf16.msra.mxu1 %v5889_v7 }
 0x493   :  { %3914 = vmatprep.subr.bf16.mxu0 %v5890_v12  ;;  %3946 = vmatprep.subr.bf16.mxu1 %v5891_v56 }
 0x496   :  { %v4488_v13 = vpop.eup %4487  ;;  %3916 = vmatpush1.bf16.msra.mxu0 %v5892_v29  ;;  %3948 = vmatpush1.bf16.msra.mxu1 %v5893_v28 }
 0x497   :  { %v4490_v32 = vpop.eup %4489  ;;  %v1710_v41 = vmul.f32 %v4488_v13, %v4486_v50  ;;  %3918 = vmatprep.subr.bf16.mxu0 %v5894_v43  ;;  %3950 = vmatprep.subr.bf16.mxu1 %v5895_v53  ;;  %v5967_v50 = vld [vmem:[#allocation39_spill] sm:$0xff]  ;;  %v5968_v13 = vld [vmem:[#allocation36_spill] sm:$0xff] }
 0x498   :  { %v1709_v30 = vmul.f32 %v4490_v32, %v5387_v52  ;;  %v4492_v52 = vpop.eup %4491  ;;  %v5969_v32 = vld [vmem:[#allocation42_spill] sm:$0xff] }
 0x49a   :  { %v5463_v35 = vadd.f32 %v1710_v41, %v1709_v30  ;;  %3920 = vmatpush1.bf16.msra.mxu0 %v5896_v24  ;;  %3952 = vmatpush1.bf16.msra.mxu1 %v5139_v39  ;;  %v5970_v41 = vld [vmem:[#allocation37_spill] sm:$0xff]  ;;  %v5972_v30 = vld [vmem:[#allocation40_spill] sm:$0xff] }
 0x49b   :  { %3922 = vmatprep.subr.bf16.mxu0 %v5897_v6  ;;  %3954 = vmatprep.subr.bf16.mxu1 %v5142_v54 }
 0x49c   :  { %4493 = vtanh.f32 %v5463_v35 }
 0x49e   :  { %3924 = vmatpush1.bf16.msra.mxu0 %v5898_v10  ;;  %3956 = vmatpush1.bf16.msra.mxu1 %v5151_v16 }
 0x49f   :  { %3926 = vmatprep.subr.bf16.mxu0 %v5136_v36  ;;  %3958 = vmatprep.subr.bf16.mxu1 %v5154_v20 }
 0x4a2   :  { %3928 = vmatpush1.bf16.msra.mxu0 %v5145_v11  ;;  %3960 = vmatpush1.bf16.msra.mxu1 %v5161_v40 }
 0x4a3   :  { %3930 = vmatprep.subr.bf16.mxu0 %v5148_v60  ;;  %3962 = vmatprep.subr.bf16.mxu1 %v5164_v31 }
 0x4a6   :  { %v4494_v48 = vpop.eup %4493  ;;  %3932 = vmatpush1.bf16.msra.mxu0 %v5157_v19  ;;  %3964 = vmatpush1.bf16.msra.mxu1 %v5168_v2 }
 0x4a7   :  { %v1713_v58 = vmul.f32 %v4494_v48, %v4492_v52  ;;  %3966 = vmatprep.subr.bf16.mxu0 %v4978_v4  ;;  %3998 = vmatprep.subr.bf16.mxu1 %v4991_v22  ;;  %v5973_v52 = vld [vmem:[#allocation46_spill] sm:$0xff]  ;;  %v5974_v48 = vld [vmem:[#allocation41_spill] sm:$0xff] }
 0x4a9   :  { %v1716_v5 = vpack.c.bf16 %v1713_v58, %v1713_v58  ;;  %1973 = vmatmul.mubr.f32.vlgmr.msra.gmra.mrb[18].mxu0 %v1713_v58  ;;  %2044 = vmatmul.mubr.f32.vlgmr.msra.gmra.mrb[18].mxu1 %v1713_v58  ;;  %v5975_v58 = vld [vmem:[#allocation47_spill] sm:$0xff] }
 0x4aa   :  { %3968 = vmatpush1.bf16.msra.mxu0 %v4980_v8  ;;  %4000 = vmatpush1.bf16.msra.mxu1 %v4993_v25 }
 0x4ab   :  { %1718 = vst [vmem:[#allocation16 + $0x10] sm:$0xf] %v1716_v5  ;;  %3970 = vmatprep.subr.bf16.mxu0 %v4982_v9  ;;  %4002 = vmatprep.subr.bf16.mxu1 %v5003_v33  ;;  %v5976_v5 = vld [vmem:[#allocation44_spill] sm:$0xff] }
 0x4ac   :  { %2156 = vmatprep.mubr.f32.mxu0 %v5888_v57  ;;  %2227 = vmatprep.mubr.f32.mxu1 %v5888_v57 }
 0x4ae   :  { %3972 = vmatpush1.bf16.msra.mxu0 %v4986_v14  ;;  %4004 = vmatpush1.bf16.msra.mxu1 %v5005_v37 }
 0x4af   :  { %3974 = vmatprep.subr.bf16.mxu0 %v4989_v17  ;;  %4006 = vmatprep.subr.bf16.mxu1 %v5011_v45 }
 0x4b2   :  { %3976 = vmatpush1.bf16.msra.mxu0 %v4996_v26  ;;  %4008 = vmatpush1.bf16.msra.mxu1 %v5957_v18 }
 0x4b3   :  { %3978 = vmatprep.subr.bf16.mxu0 %v5958_v15  ;;  %4010 = vmatprep.subr.bf16.mxu1 %v5959_v0 }
 0x4b6   :  { %3980 = vmatpush1.bf16.msra.mxu0 %v5960_v42  ;;  %4012 = vmatpush1.bf16.msra.mxu1 %v5961_v62 }
 0x4b7   :  { %3982 = vmatprep.subr.bf16.mxu0 %v5962_v55  ;;  %4014 = vmatprep.subr.bf16.mxu1 %v5963_v44  ;;  %v1721_v44 = vld [vmem:[#allocation6 + $0x48] sm:$0xff] }
 0x4b8   :  { %v1869_v42 = vunpack.c.h.bf16 %v1721_v44 }
 0x4ba   :  { %3984 = vmatpush1.bf16.msra.mxu0 %v5964_v51  ;;  %4016 = vmatpush1.bf16.msra.mxu1 %v5965_v27 }
 0x4bb   :  { %3986 = vmatprep.subr.bf16.mxu0 %v5966_v1  ;;  %4018 = vmatprep.subr.bf16.mxu1 %v5967_v50  ;;  %v5977_v1 = vld [vmem:[#allocation48_spill] sm:$0xff]  ;;  %v5978_v50 = vld [vmem:[#allocation45_spill] sm:$0xff] }
 0x4be   :  { %3988 = vmatpush1.bf16.msra.mxu0 %v5968_v13  ;;  %4020 = vmatpush1.bf16.msra.mxu1 %v5969_v32  ;;  %v5979_v13 = vld [vmem:[#allocation49_spill] sm:$0xff] }
 0x4bf   :  { %3990 = vmatprep.subr.bf16.mxu0 %v5970_v41  ;;  %4022 = vmatprep.subr.bf16.mxu1 %v5971_v47  ;;  %v1720_v32 = vld [vmem:[#allocation6 + $0x40] sm:$0xff] }
 0x4c0   :  { %v1866_v41 = vunpack.c.l.bf16 %v1720_v32  ;;  %v1867_v27 = vunpack.c.h.bf16 %v1720_v32 }
 0x4c2   :  { %3992 = vmatpush1.bf16.msra.mxu0 %v5972_v30  ;;  %4024 = vmatpush1.bf16.msra.mxu1 %v5973_v52 }
 0x4c3   :  { %3994 = vmatprep.subr.bf16.mxu0 %v5974_v48  ;;  %4026 = vmatprep.subr.bf16.mxu1 %v5975_v58 }
 0x4c6   :  { %3996 = vmatpush1.bf16.msra.mxu0 %v5976_v5  ;;  %4028 = vmatpush1.bf16.msra.mxu1 %v5977_v1  ;;  %v1868_v5 = vunpack.c.l.bf16 %v1721_v44 }
 0x4c7   :  { %4030 = vmatprep.subr.bf16.mxu0 %v5978_v50  ;;  %4062 = vmatprep.subr.bf16.mxu1 %v5979_v13 }
 0x55c   :  { %v1790_v47 = vpop.f32.mrb[16].mxu0  ;;  %v1861_v51 = vpop.f32.mrb[16].mxu1 }
 0x55d   :  { %v1870_v30 = vadd.f32 %v1866_v41, %v1790_v47  ;;  %v1792_v52 = vpop.f32.mrb[17].mxu0  ;;  %v1863_v55 = vpop.f32.mrb[17].mxu1  ;;  %v1872_v0 = vadd.f32 %v1868_v5, %v1861_v51  ;;  %v1904_v47 = vld [vmem:[#allocation9 + $0x30] sm:$0xff] }
 0x55e   :  { %v1871_v48 = vadd.f32 %v1867_v27, %v1792_v52  ;;  %v1873_v1 = vadd.f32 %v1869_v42, %v1863_v55  ;;  %v2051_v55 = vunpack.c.h.bf16 %v1904_v47 }
 0x55f   :  { %v3301_v62 = vmul.f32 -1.442695, %v1870_v30 }
 0x560   :  { %v3302_v58 = vmul.f32 -1.442695, %v1871_v48  ;;  %v3303_v50 = vmul.f32 -1.442695, %v1873_v1 }
 0x561   :  { %4495 = vpow2.f32 %v3301_v62 }
 0x562   :  { %4497 = vpow2.f32 %v3302_v58  ;;  %v2050_v58 = vunpack.c.l.bf16 %v1904_v47 }
 0x563   :  { %4499 = vpow2.f32 %v3303_v50 }
 0x564   :  { %4501 = vtanh.f32 %v1872_v0 }
 0x56b   :  { %v4496_v13 = vpop.eup %4495 }
 0x56c   :  { %v4498_v15 = vpop.eup %4497  ;;  %v1877_v18 = vadd.f32 1.0, %v4496_v13 }
 0x56d   :  { %v1883_v32 = vadd.f32 1.0, %v4498_v15  ;;  %v4500_v41 = vpop.eup %4499  ;;  %v1905_v15 = vld [vmem:[#allocation9 + $0x38] sm:$0xff] }
 0x56e   :  { %4503 = vrcp.f32 %v1877_v18  ;;  %v4502_v27 = vpop.eup %4501  ;;  %v1890_v62 = vadd.f32 1.0, %v4500_v41 }
 0x56f   :  { %4505 = vrcp.f32 %v1883_v32 }
 0x570   :  { %4507 = vrcp.f32 %v1890_v62 }
 0x578   :  { %v4504_v30 = vpop.eup %4503 }
 0x579   :  { %v4506_v52 = vpop.eup %4505  ;;  %v1894_v48 = vmul.f32 %v4504_v30, %v4502_v27  ;;  %v2053_v27 = vunpack.c.h.bf16 %v1905_v15 }
 0x57a   :  { %v1893_v42 = vmul.f32 %v4506_v52, %v5441_v46  ;;  %v2052_v46 = vunpack.c.l.bf16 %v1905_v15  ;;  %v4508_v47 = vpop.eup %4507 }
 0x57c   :  { %v5517_v44 = vadd.f32 %v1894_v48, %v1893_v42  ;;  %v1974_v51 = vpop.f32.mrb[18].mxu0  ;;  %v2045_v1 = vpop.f32.mrb[18].mxu1 }
 0x57d   :  { %v2054_v0 = vadd.f32 %v2050_v58, %v1974_v51  ;;  %v1976_v18 = vpop.f32.mrb[19].mxu0  ;;  %v2047_v50 = vpop.f32.mrb[19].mxu1  ;;  %v2056_v48 = vadd.f32 %v2052_v46, %v2045_v1 }
 0x57e   :  { %v2055_v13 = vadd.f32 %v2051_v55, %v1976_v18  ;;  %4509 = vtanh.f32 %v5517_v44  ;;  %v2057_v41 = vadd.f32 %v2053_v27, %v2047_v50 }
 0x57f   :  { %v3304_v5 = vmul.f32 -1.442695, %v2054_v0 }
 0x580   :  { %v3305_v32 = vmul.f32 -1.442695, %v2055_v13  ;;  %v3306_v52 = vmul.f32 -1.442695, %v2057_v41 }
 0x581   :  { %4511 = vpow2.f32 %v3304_v5 }
 0x582   :  { %4513 = vpow2.f32 %v3305_v32 }
 0x583   :  { %4515 = vpow2.f32 %v3306_v52  ;;  %v5981_v52 = vld [vmem:[#allocation27_spill] sm:$0xff] }
 0x584   :  { %4517 = vtanh.f32 %v2056_v48  ;;  %v5982_v48 = vld [vmem:[#allocation31_spill] sm:$0xff] }
 0x588   :  { %v4510_v30 = vpop.eup %4509 }
 0x589   :  { %v1897_v42 = vmul.f32 %v4510_v30, %v4508_v47  ;;  %v5980_v30 = vld [vmem:[#allocation30_spill] sm:$0xff] }
 0x58b   :  { %v4512_v62 = vpop.eup %4511  ;;  %v1900_v58 = vpack.c.bf16 %v1897_v42, %v1897_v42  ;;  %2157 = vmatmul.mubr.f32.vlgmr.msra.gmra.mrb[20].mxu0 %v1897_v42  ;;  %2228 = vmatmul.mubr.f32.vlgmr.msra.gmra.mrb[20].mxu1 %v1897_v42  ;;  %v5983_v42 = vld [vmem:[#allocation28_spill] sm:$0xff] }
 0x58c   :  { %v4514_v51 = vpop.eup %4513  ;;  %v2061_v55 = vadd.f32 1.0, %v4512_v62  ;;  %4032 = vmatpush1.bf16.msra.mxu0 %v5071_v61  ;;  %4064 = vmatpush1.bf16.msra.mxu1 %v5090_v34  ;;  %v5984_v62 = vld [vmem:[#allocation34_spill] sm:$0xff] }
 0x58d   :  { %v2067_v0 = vadd.f32 1.0, %v4514_v51  ;;  %1902 = vst [vmem:[#allocation15 + $0x10] sm:$0xf] %v1900_v58  ;;  %4034 = vmatprep.subr.bf16.mxu0 %v5074_v63  ;;  %4066 = vmatprep.subr.bf16.mxu1 %v5093_v38  ;;  %v4516_v1 = vpop.eup %4515  ;;  %v5985_v58 = vld [vmem:[#allocation29_spill] sm:$0xff]  ;;  %v5986_v51 = vld [vmem:[#allocation35_spill] sm:$0xff] }
 0x58e   :  { %4519 = vrcp.f32 %v2061_v55  ;;  %2340 = vmatprep.mubr.f32.mxu0 %v5888_v57  ;;  %2411 = vmatprep.mubr.f32.mxu1 %v5888_v57  ;;  %v4518_v15 = vpop.eup %4517  ;;  %v2074_v5 = vadd.f32 1.0, %v4516_v1  ;;  %v5987_v55 = vld [vmem:[#allocation32_spill] sm:$0xff]  ;;  %v5989_v1 = vld [vmem:[#allocation33_spill] sm:$0xff] }
 0x58f   :  { %4521 = vrcp.f32 %v2067_v0  ;;  %v5988_v0 = vld [vmem:[#allocation38_spill] sm:$0xff] }
 0x590   :  { %4036 = vmatpush1.bf16.msra.mxu0 %v5083_v21  ;;  %4068 = vmatpush1.bf16.msra.mxu1 %v5102_v59  ;;  %4523 = vrcp.f32 %v2074_v5  ;;  %v5994_v5 = vld [vmem:[#allocation43_spill] sm:$0xff] }
 0x591   :  { %4038 = vmatprep.subr.bf16.mxu0 %v5087_v23  ;;  %4070 = vmatprep.subr.bf16.mxu1 %v5105_v3 }
 0x594   :  { %4040 = vmatpush1.bf16.msra.mxu0 %v5096_v49  ;;  %4072 = vmatpush1.bf16.msra.mxu1 %v5889_v7 }
 0x595   :  { %4042 = vmatprep.subr.bf16.mxu0 %v5890_v12  ;;  %4074 = vmatprep.subr.bf16.mxu1 %v5891_v56 }
 0x598   :  { %v4520_v18 = vpop.eup %4519  ;;  %4044 = vmatpush1.bf16.msra.mxu0 %v5892_v29  ;;  %4076 = vmatpush1.bf16.msra.mxu1 %v5893_v28 }
 0x599   :  { %v4522_v50 = vpop.eup %4521  ;;  %v2078_v13 = vmul.f32 %v4520_v18, %v4518_v15  ;;  %4046 = vmatprep.subr.bf16.mxu0 %v5894_v43  ;;  %4078 = vmatprep.subr.bf16.mxu1 %v5895_v53  ;;  %v5990_v15 = vld [vmem:[#allocation39_spill] sm:$0xff]  ;;  %v5991_v18 = vld [vmem:[#allocation36_spill] sm:$0xff] }
 0x59a   :  { %v2077_v32 = vmul.f32 %v4522_v50, %v5463_v35  ;;  %v4524_v35 = vpop.eup %4523  ;;  %v5992_v50 = vld [vmem:[#allocation42_spill] sm:$0xff] }
 0x59c   :  { %v5539_v27 = vadd.f32 %v2078_v13, %v2077_v32  ;;  %4048 = vmatpush1.bf16.msra.mxu0 %v5896_v24  ;;  %4080 = vmatpush1.bf16.msra.mxu1 %v5139_v39  ;;  %v5993_v13 = vld [vmem:[#allocation37_spill] sm:$0xff]  ;;  %v5995_v32 = vld [vmem:[#allocation40_spill] sm:$0xff] }
 0x59d   :  { %4050 = vmatprep.subr.bf16.mxu0 %v5897_v6  ;;  %4082 = vmatprep.subr.bf16.mxu1 %v5142_v54 }
 0x59e   :  { %4525 = vtanh.f32 %v5539_v27 }
 0x5a0   :  { %4052 = vmatpush1.bf16.msra.mxu0 %v5898_v10  ;;  %4084 = vmatpush1.bf16.msra.mxu1 %v5151_v16 }
 0x5a1   :  { %4054 = vmatprep.subr.bf16.mxu0 %v5136_v36  ;;  %4086 = vmatprep.subr.bf16.mxu1 %v5154_v20 }
 0x5a4   :  { %4056 = vmatpush1.bf16.msra.mxu0 %v5145_v11  ;;  %4088 = vmatpush1.bf16.msra.mxu1 %v5161_v40 }
 0x5a5   :  { %4058 = vmatprep.subr.bf16.mxu0 %v5148_v60  ;;  %4090 = vmatprep.subr.bf16.mxu1 %v5164_v31 }
 0x5a8   :  { %v4526_v41 = vpop.eup %4525  ;;  %4060 = vmatpush1.bf16.msra.mxu0 %v5157_v19  ;;  %4092 = vmatpush1.bf16.msra.mxu1 %v5168_v2 }
 0x5a9   :  { %v2081_v46 = vmul.f32 %v4526_v41, %v4524_v35  ;;  %4094 = vmatprep.subr.bf16.mxu0 %v4978_v4  ;;  %4126 = vmatprep.subr.bf16.mxu1 %v4991_v22  ;;  %v5996_v35 = vld [vmem:[#allocation46_spill] sm:$0xff]  ;;  %v5997_v41 = vld [vmem:[#allocation41_spill] sm:$0xff] }
 0x5ab   :  { %v2084_v47 = vpack.c.bf16 %v2081_v46, %v2081_v46  ;;  %2341 = vmatmul.mubr.f32.vlgmr.msra.gmra.mrb[22].mxu0 %v2081_v46  ;;  %2412 = vmatmul.mubr.f32.vlgmr.msra.gmra.mrb[22].mxu1 %v2081_v46  ;;  %v5998_v46 = vld [vmem:[#allocation47_spill] sm:$0xff] }
 0x5ac   :  { %4096 = vmatpush1.bf16.msra.mxu0 %v4980_v8  ;;  %4128 = vmatpush1.bf16.msra.mxu1 %v4993_v25 }
 0x5ad   :  { %2086 = vst [vmem:[#allocation16 + $0xc] sm:$0xf] %v2084_v47  ;;  %4098 = vmatprep.subr.bf16.mxu0 %v4982_v9  ;;  %4130 = vmatprep.subr.bf16.mxu1 %v5003_v33  ;;  %v5999_v47 = vld [vmem:[#allocation44_spill] sm:$0xff] }
 0x5ae   :  { %2524 = vmatprep.mubr.f32.mxu0 %v5888_v57  ;;  %2595 = vmatprep.mubr.f32.mxu1 %v5888_v57 }
 0x5b0   :  { %4100 = vmatpush1.bf16.msra.mxu0 %v4986_v14  ;;  %4132 = vmatpush1.bf16.msra.mxu1 %v5005_v37 }
 0x5b1   :  { %4102 = vmatprep.subr.bf16.mxu0 %v4989_v17  ;;  %4134 = vmatprep.subr.bf16.mxu1 %v5011_v45 }
 0x5b4   :  { %4104 = vmatpush1.bf16.msra.mxu0 %v4996_v26  ;;  %4136 = vmatpush1.bf16.msra.mxu1 %v5980_v30 }
 0x5b5   :  { %4106 = vmatprep.subr.bf16.mxu0 %v5981_v52  ;;  %4138 = vmatprep.subr.bf16.mxu1 %v5982_v48 }
 0x5b8   :  { %4108 = vmatpush1.bf16.msra.mxu0 %v5983_v42  ;;  %4140 = vmatpush1.bf16.msra.mxu1 %v5984_v62 }
 0x5b9   :  { %4110 = vmatprep.subr.bf16.mxu0 %v5985_v58  ;;  %4142 = vmatprep.subr.bf16.mxu1 %v5986_v51  ;;  %v2089_v51 = vld [vmem:[#allocation6 + $0x58] sm:$0xff] }
 0x5ba   :  { %v2237_v42 = vunpack.c.h.bf16 %v2089_v51 }
 0x5bc   :  { %4112 = vmatpush1.bf16.msra.mxu0 %v5987_v55  ;;  %4144 = vmatpush1.bf16.msra.mxu1 %v5988_v0 }
 0x5bd   :  { %4114 = vmatprep.subr.bf16.mxu0 %v5989_v1  ;;  %4146 = vmatprep.subr.bf16.mxu1 %v5990_v15  ;;  %v6000_v1 = vld [vmem:[#allocation48_spill] sm:$0xff]  ;;  %v6001_v15 = vld [vmem:[#allocation45_spill] sm:$0xff] }
 0x5c0   :  { %4116 = vmatpush1.bf16.msra.mxu0 %v5991_v18  ;;  %4148 = vmatpush1.bf16.msra.mxu1 %v5992_v50  ;;  %v6002_v18 = vld [vmem:[#allocation49_spill] sm:$0xff]  ;;  %v2088_v50 = vld [vmem:[#allocation6 + $0x50] sm:$0xff] }
 0x5c1   :  { %4118 = vmatprep.subr.bf16.mxu0 %v5993_v13  ;;  %4150 = vmatprep.subr.bf16.mxu1 %v5994_v5  ;;  %v2234_v13 = vunpack.c.l.bf16 %v2088_v50  ;;  %v2235_v0 = vunpack.c.h.bf16 %v2088_v50 }
 0x5c4   :  { %4120 = vmatpush1.bf16.msra.mxu0 %v5995_v32  ;;  %4152 = vmatpush1.bf16.msra.mxu1 %v5996_v35 }
 0x5c5   :  { %4122 = vmatprep.subr.bf16.mxu0 %v5997_v41  ;;  %4154 = vmatprep.subr.bf16.mxu1 %v5998_v46 }
 0x5c8   :  { %4124 = vmatpush1.bf16.msra.mxu0 %v5999_v47  ;;  %4156 = vmatpush1.bf16.msra.mxu1 %v6000_v1  ;;  %v2236_v47 = vunpack.c.l.bf16 %v2089_v51 }
 0x5c9   :  { %4158 = vmatprep.subr.bf16.mxu0 %v6001_v15  ;;  %4190 = vmatprep.subr.bf16.mxu1 %v6002_v18 }
 0x65e   :  { %v2158_v5 = vpop.f32.mrb[20].mxu0  ;;  %v2229_v55 = vpop.f32.mrb[20].mxu1 }
 0x65f   :  { %v2238_v32 = vadd.f32 %v2234_v13, %v2158_v5  ;;  %v2160_v35 = vpop.f32.mrb[21].mxu0  ;;  %v2231_v58 = vpop.f32.mrb[21].mxu1  ;;  %v2240_v48 = vadd.f32 %v2236_v47, %v2229_v55  ;;  %v2272_v5 = vld [vmem:[#allocation9 + $0x20] sm:$0xff] }
 0x660   :  { %v2239_v41 = vadd.f32 %v2235_v0, %v2160_v35  ;;  %v2241_v1 = vadd.f32 %v2237_v42, %v2231_v58  ;;  %v2419_v58 = vunpack.c.h.bf16 %v2272_v5 }
 0x661   :  { %v3307_v62 = vmul.f32 -1.442695, %v2238_v32 }
 0x662   :  { %v3308_v46 = vmul.f32 -1.442695, %v2239_v41  ;;  %v3309_v15 = vmul.f32 -1.442695, %v2241_v1 }
 0x663   :  { %4527 = vpow2.f32 %v3307_v62 }
 0x664   :  { %4529 = vpow2.f32 %v3308_v46  ;;  %v2418_v46 = vunpack.c.l.bf16 %v2272_v5 }
 0x665   :  { %4531 = vpow2.f32 %v3309_v15 }
 0x666   :  { %4533 = vtanh.f32 %v2240_v48 }
 0x66d   :  { %v4528_v18 = vpop.eup %4527 }
 0x66e   :  { %v4530_v52 = vpop.eup %4529  ;;  %v2245_v30 = vadd.f32 1.0, %v4528_v18 }
 0x66f   :  { %v2251_v50 = vadd.f32 1.0, %v4530_v52  ;;  %v4532_v13 = vpop.eup %4531  ;;  %v2273_v52 = vld [vmem:[#allocation9 + $0x28] sm:$0xff] }
 0x670   :  { %4535 = vrcp.f32 %v2245_v30  ;;  %v4534_v0 = vpop.eup %4533  ;;  %v2258_v62 = vadd.f32 1.0, %v4532_v13 }
 0x671   :  { %4537 = vrcp.f32 %v2251_v50 }
 0x672   :  { %4539 = vrcp.f32 %v2258_v62 }
 0x67a   :  { %v4536_v32 = vpop.eup %4535 }
 0x67b   :  { %v4538_v35 = vpop.eup %4537  ;;  %v2262_v41 = vmul.f32 %v4536_v32, %v4534_v0  ;;  %v2421_v0 = vunpack.c.h.bf16 %v2273_v52 }
 0x67c   :  { %v2261_v42 = vmul.f32 %v4538_v35, %v5517_v44  ;;  %v2420_v44 = vunpack.c.l.bf16 %v2273_v52  ;;  %v4540_v5 = vpop.eup %4539 }
 0x67e   :  { %v5593_v51 = vadd.f32 %v2262_v41, %v2261_v42  ;;  %v2342_v55 = vpop.f32.mrb[22].mxu0  ;;  %v2413_v1 = vpop.f32.mrb[22].mxu1 }
 0x67f   :  { %v2422_v48 = vadd.f32 %v2418_v46, %v2342_v55  ;;  %v2344_v30 = vpop.f32.mrb[23].mxu0  ;;  %v2415_v15 = vpop.f32.mrb[23].mxu1  ;;  %v2424_v41 = vadd.f32 %v2420_v44, %v2413_v1 }
 0x680   :  { %v2423_v18 = vadd.f32 %v2419_v58, %v2344_v30  ;;  %4541 = vtanh.f32 %v5593_v51  ;;  %v2425_v13 = vadd.f32 %v2421_v0, %v2415_v15 }
 0x681   :  { %v3310_v47 = vmul.f32 -1.442695, %v2422_v48 }
 0x682   :  { %v3311_v50 = vmul.f32 -1.442695, %v2423_v18  ;;  %v3312_v35 = vmul.f32 -1.442695, %v2425_v13 }
 0x683   :  { %4543 = vpow2.f32 %v3310_v47 }
 0x684   :  { %4545 = vpow2.f32 %v3311_v50 }
 0x685   :  { %4547 = vpow2.f32 %v3312_v35  ;;  %v6015_v35 = vld [vmem:[#allocation42_spill] sm:$0xff] }
 0x686   :  { %4549 = vtanh.f32 %v2424_v41  ;;  %v6016_v41 = vld [vmem:[#allocation37_spill] sm:$0xff] }
 0x68a   :  { %v4542_v32 = vpop.eup %4541 }
 0x68b   :  { %v2265_v42 = vmul.f32 %v4542_v32, %v4540_v5  ;;  %v6014_v32 = vld [vmem:[#allocation36_spill] sm:$0xff] }
 0x68d   :  { %v4544_v62 = vpop.eup %4543  ;;  %v2268_v46 = vpack.c.bf16 %v2265_v42, %v2265_v42  ;;  %2525 = vmatmul.mubr.f32.vlgmr.msra.gmra.mrb[24].mxu0 %v2265_v42  ;;  %2596 = vmatmul.mubr.f32.vlgmr.msra.gmra.mrb[24].mxu1 %v2265_v42  ;;  %v6017_v42 = vld [vmem:[#allocation43_spill] sm:$0xff] }
 0x68e   :  { %v4546_v55 = vpop.eup %4545  ;;  %v2429_v58 = vadd.f32 1.0, %v4544_v62  ;;  %4160 = vmatpush1.bf16.msra.mxu0 %v5071_v61  ;;  %4192 = vmatpush1.bf16.msra.mxu1 %v5090_v34  ;;  %v6018_v62 = vld [vmem:[#allocation40_spill] sm:$0xff] }
 0x68f   :  { %v2435_v48 = vadd.f32 1.0, %v4546_v55  ;;  %2270 = vst [vmem:[#allocation15 + $0x14] sm:$0xf] %v2268_v46  ;;  %4162 = vmatprep.subr.bf16.mxu0 %v5074_v63  ;;  %4194 = vmatprep.subr.bf16.mxu1 %v5093_v38  ;;  %v4548_v1 = vpop.eup %4547  ;;  %v6019_v46 = vld [vmem:[#allocation46_spill] sm:$0xff]  ;;  %v6020_v55 = vld [vmem:[#allocation41_spill] sm:$0xff] }
 0x690   :  { %4551 = vrcp.f32 %v2429_v58  ;;  %2708 = vmatprep.mubr.f32.mxu0 %v5888_v57  ;;  %2779 = vmatprep.mubr.f32.mxu1 %v5888_v57  ;;  %v4550_v52 = vpop.eup %4549  ;;  %v2442_v47 = vadd.f32 1.0, %v4548_v1  ;;  %v6021_v58 = vld [vmem:[#allocation47_spill] sm:$0xff]  ;;  %v6023_v1 = vld [vmem:[#allocation48_spill] sm:$0xff] }
 0x691   :  { %4553 = vrcp.f32 %v2435_v48  ;;  %v6022_v48 = vld [vmem:[#allocation44_spill] sm:$0xff] }
 0x692   :  { %4164 = vmatpush1.bf16.msra.mxu0 %v5083_v21  ;;  %4196 = vmatpush1.bf16.msra.mxu1 %v5102_v59  ;;  %4555 = vrcp.f32 %v2442_v47 }
 0x693   :  { %4166 = vmatprep.subr.bf16.mxu0 %v5087_v23  ;;  %4198 = vmatprep.subr.bf16.mxu1 %v5105_v3 }
 0x696   :  { %4168 = vmatpush1.bf16.msra.mxu0 %v5096_v49  ;;  %4200 = vmatpush1.bf16.msra.mxu1 %v5889_v7 }
 0x697   :  { %4170 = vmatprep.subr.bf16.mxu0 %v5890_v12  ;;  %4202 = vmatprep.subr.bf16.mxu1 %v5891_v56 }
 0x69a   :  { %v4552_v30 = vpop.eup %4551  ;;  %4172 = vmatpush1.bf16.msra.mxu0 %v5892_v29  ;;  %4204 = vmatpush1.bf16.msra.mxu1 %v5893_v28 }
 0x69b   :  { %v4554_v15 = vpop.eup %4553  ;;  %v2446_v18 = vmul.f32 %v4552_v30, %v4550_v52  ;;  %4174 = vmatprep.subr.bf16.mxu0 %v5894_v43  ;;  %4206 = vmatprep.subr.bf16.mxu1 %v5895_v53  ;;  %v6024_v52 = vld [vmem:[#allocation45_spill] sm:$0xff] }
 0x69c   :  { %v2445_v50 = vmul.f32 %v4554_v15, %v5539_v27  ;;  %v4556_v27 = vpop.eup %4555  ;;  %v6025_v30 = vld [vmem:[#allocation49_spill] sm:$0xff] }
 0x69d   :  { %v2456_v15 = vld [vmem:[#allocation6 + $0x60] sm:$0xff] }
 0x69e   :  { %v5615_v0 = vadd.f32 %v2446_v18, %v2445_v50  ;;  %4176 = vmatpush1.bf16.msra.mxu0 %v5896_v24  ;;  %4208 = vmatpush1.bf16.msra.mxu1 %v5139_v39  ;;  %v2602_v18 = vunpack.c.l.bf16 %v2456_v15  ;;  %v2603_v47 = vunpack.c.h.bf16 %v2456_v15 }
 0x69f   :  { %4178 = vmatprep.subr.bf16.mxu0 %v5897_v6  ;;  %4210 = vmatprep.subr.bf16.mxu1 %v5142_v54 }
 0x6a0   :  { %4557 = vtanh.f32 %v5615_v0 }
 0x6a2   :  { %4180 = vmatpush1.bf16.msra.mxu0 %v5898_v10  ;;  %4212 = vmatpush1.bf16.msra.mxu1 %v5151_v16 }
 0x6a3   :  { %4182 = vmatprep.subr.bf16.mxu0 %v5136_v36  ;;  %4214 = vmatprep.subr.bf16.mxu1 %v5154_v20 }
 0x6a6   :  { %4184 = vmatpush1.bf16.msra.mxu0 %v5145_v11  ;;  %4216 = vmatpush1.bf16.msra.mxu1 %v5161_v40 }
 0x6a7   :  { %4186 = vmatprep.subr.bf16.mxu0 %v5148_v60  ;;  %4218 = vmatprep.subr.bf16.mxu1 %v5164_v31 }
 0x6aa   :  { %v4558_v13 = vpop.eup %4557  ;;  %4188 = vmatpush1.bf16.msra.mxu0 %v5157_v19  ;;  %4220 = vmatpush1.bf16.msra.mxu1 %v5168_v2 }
 0x6ab   :  { %v2449_v44 = vmul.f32 %v4558_v13, %v4556_v27  ;;  %4222 = vmatprep.subr.bf16.mxu0 %v4978_v4  ;;  %4254 = vmatprep.subr.bf16.mxu1 %v4991_v22  ;;  %v6003_v4 = vld [vmem:[#allocation30_spill] sm:$0xff]  ;;  %v6006_v22 = vld [vmem:[#allocation28_spill] sm:$0xff] }
 0x6ad   :  { %v2452_v5 = vpack.c.bf16 %v2449_v44, %v2449_v44  ;;  %2709 = vmatmul.mubr.f32.vlgmr.msra.gmra.mrb[26].mxu0 %v2449_v44  ;;  %2780 = vmatmul.mubr.f32.vlgmr.msra.gmra.mrb[26].mxu1 %v2449_v44  ;;  %v2457_v44 = vld [vmem:[#allocation6 + $0x68] sm:$0xff] }
 0x6ae   :  { %4224 = vmatpush1.bf16.msra.mxu0 %v4980_v8  ;;  %4256 = vmatpush1.bf16.msra.mxu1 %v4993_v25  ;;  %v6004_v8 = vld [vmem:[#allocation27_spill] sm:$0xff]  ;;  %v6007_v25 = vld [vmem:[#allocation34_spill] sm:$0xff] }
 0x6af   :  { %2454 = vst [vmem:[#allocation16 + $0x8] sm:$0xf] %v2452_v5  ;;  %4226 = vmatprep.subr.bf16.mxu0 %v4982_v9  ;;  %4258 = vmatprep.subr.bf16.mxu1 %v5003_v33  ;;  %v6005_v9 = vld [vmem:[#allocation31_spill] sm:$0xff]  ;;  %v6008_v33 = vld [vmem:[#allocation29_spill] sm:$0xff] }
 0x6b0   :  { %2892 = vmatprep.mubr.f32.mxu0 %v5888_v57  ;;  %2963 = vmatprep.mubr.f32.mxu1 %v5888_v57 }
 0x6b2   :  { %4228 = vmatpush1.bf16.msra.mxu0 %v4986_v14  ;;  %4260 = vmatpush1.bf16.msra.mxu1 %v5005_v37  ;;  %v6009_v14 = vld [vmem:[#allocation35_spill] sm:$0xff]  ;;  %v6010_v37 = vld [vmem:[#allocation32_spill] sm:$0xff] }
 0x6b3   :  { %4230 = vmatprep.subr.bf16.mxu0 %v4989_v17  ;;  %4262 = vmatprep.subr.bf16.mxu1 %v5011_v45  ;;  %v6011_v17 = vld [vmem:[#allocation38_spill] sm:$0xff]  ;;  %v6012_v45 = vld [vmem:[#allocation33_spill] sm:$0xff] }
 0x6b6   :  { %4232 = vmatpush1.bf16.msra.mxu0 %v4996_v26  ;;  %4264 = vmatpush1.bf16.msra.mxu1 %v6003_v4  ;;  %v6013_v26 = vld [vmem:[#allocation39_spill] sm:$0xff] }
 0x6b7   :  { %4234 = vmatprep.subr.bf16.mxu0 %v6004_v8  ;;  %4266 = vmatprep.subr.bf16.mxu1 %v6005_v9 }
 0x6ba   :  { %4236 = vmatpush1.bf16.msra.mxu0 %v6006_v22  ;;  %4268 = vmatpush1.bf16.msra.mxu1 %v6007_v25  ;;  %v2605_v25 = vunpack.c.h.bf16 %v2457_v44 }
 0x6bb   :  { %4238 = vmatprep.subr.bf16.mxu0 %v6008_v33  ;;  %4270 = vmatprep.subr.bf16.mxu1 %v6009_v14  ;;  %v2604_v14 = vunpack.c.l.bf16 %v2457_v44 }
 0x6be   :  { %4240 = vmatpush1.bf16.msra.mxu0 %v6010_v37  ;;  %4272 = vmatpush1.bf16.msra.mxu1 %v6011_v17 }
 0x6bf   :  { %4242 = vmatprep.subr.bf16.mxu0 %v6012_v45  ;;  %4274 = vmatprep.subr.bf16.mxu1 %v6013_v26 }
 0x6c2   :  { %4244 = vmatpush1.bf16.msra.mxu0 %v6014_v32  ;;  %4276 = vmatpush1.bf16.msra.mxu1 %v6015_v35 }
 0x6c3   :  { %4246 = vmatprep.subr.bf16.mxu0 %v6016_v41  ;;  %4278 = vmatprep.subr.bf16.mxu1 %v6017_v42  ;;  %v2640_v42 = vld [vmem:[#allocation9 + $0x10] sm:$0xff] }
 0x6c6   :  { %4248 = vmatpush1.bf16.msra.mxu0 %v6018_v62  ;;  %4280 = vmatpush1.bf16.msra.mxu1 %v6019_v46 }
 0x6c7   :  { %4250 = vmatprep.subr.bf16.mxu0 %v6020_v55  ;;  %4282 = vmatprep.subr.bf16.mxu1 %v6021_v58 }
 0x6ca   :  { %4252 = vmatpush1.bf16.msra.mxu0 %v6022_v48  ;;  %4284 = vmatpush1.bf16.msra.mxu1 %v6023_v1  ;;  %v2786_v1 = vunpack.c.l.bf16 %v2640_v42 }
 0x6cb   :  { %4286 = vmatprep.subr.bf16.mxu0 %v6024_v52  ;;  %4318 = vmatprep.subr.bf16.mxu1 %v6025_v30  ;;  %v2787_v30 = vunpack.c.h.bf16 %v2640_v42 }
 0x760   :  { %v2526_v50 = vpop.f32.mrb[24].mxu0  ;;  %v2597_v27 = vpop.f32.mrb[24].mxu1 }
 0x761   :  { %v2606_v13 = vadd.f32 %v2602_v18, %v2526_v50  ;;  %v2528_v5 = vpop.f32.mrb[25].mxu0  ;;  %v2599_v4 = vpop.f32.mrb[25].mxu1  ;;  %v2608_v17 = vadd.f32 %v2604_v14, %v2597_v27  ;;  %v2641_v27 = vld [vmem:[#allocation9 + $0x18] sm:$0xff] }
 0x762   :  { %v2607_v8 = vadd.f32 %v2603_v47, %v2528_v5  ;;  %v2609_v33 = vadd.f32 %v2605_v25, %v2599_v4 }
 0x763   :  { %v3313_v9 = vmul.f32 -1.442695, %v2606_v13 }
 0x764   :  { %v3314_v22 = vmul.f32 -1.442695, %v2607_v8  ;;  %v3315_v37 = vmul.f32 -1.442695, %v2609_v33 }
 0x765   :  { %4559 = vpow2.f32 %v3313_v9  ;;  %v2789_v9 = vunpack.c.h.bf16 %v2641_v27 }
 0x766   :  { %4561 = vpow2.f32 %v3314_v22 }
 0x767   :  { %4563 = vpow2.f32 %v3315_v37 }
 0x768   :  { %4565 = vtanh.f32 %v2608_v17 }
 0x76f   :  { %v4560_v45 = vpop.eup %4559 }
 0x770   :  { %v4562_v26 = vpop.eup %4561  ;;  %v2613_v32 = vadd.f32 1.0, %v4560_v45 }
 0x771   :  { %v2619_v35 = vadd.f32 1.0, %v4562_v26  ;;  %v4564_v41 = vpop.eup %4563 }
 0x772   :  { %4567 = vrcp.f32 %v2613_v32  ;;  %v4566_v62 = vpop.eup %4565  ;;  %v2626_v48 = vadd.f32 1.0, %v4564_v41 }
 0x773   :  { %4569 = vrcp.f32 %v2619_v35 }
 0x774   :  { %4571 = vrcp.f32 %v2626_v48 }
 0x77c   :  { %v4568_v46 = vpop.eup %4567 }
 0x77d   :  { %v4570_v55 = vpop.eup %4569  ;;  %v2630_v58 = vmul.f32 %v4568_v46, %v4566_v62  ;;  %v3007_v46 = vld [vmem:[#allocation9] sm:$0xff] }
 0x77e   :  { %v2629_v52 = vmul.f32 %v4570_v55, %v5593_v51  ;;  %v2788_v51 = vunpack.c.l.bf16 %v2641_v27  ;;  %v4572_v25 = vpop.eup %4571 }
 0x780   :  { %v5669_v15 = vadd.f32 %v2630_v58, %v2629_v52  ;;  %v2710_v18 = vpop.f32.mrb[26].mxu0  ;;  %v2781_v47 = vpop.f32.mrb[26].mxu1 }
 0x781   :  { %v2790_v50 = vadd.f32 %v2786_v1, %v2710_v18  ;;  %v2712_v13 = vpop.f32.mrb[27].mxu0  ;;  %v2783_v44 = vpop.f32.mrb[27].mxu1  ;;  %v2792_v37 = vadd.f32 %v2788_v51, %v2781_v47  ;;  %v3154_v47 = vunpack.c.h.bf16 %v3007_v46 }
 0x782   :  { %v2791_v5 = vadd.f32 %v2787_v30, %v2712_v13  ;;  %4573 = vtanh.f32 %v5669_v15  ;;  %v2793_v22 = vadd.f32 %v2789_v9, %v2783_v44  ;;  %v3153_v30 = vunpack.c.l.bf16 %v3007_v46 }
 0x783   :  { %v3316_v4 = vmul.f32 -1.442695, %v2790_v50 }
 0x784   :  { %v3317_v8 = vmul.f32 -1.442695, %v2791_v5  ;;  %v3318_v14 = vmul.f32 -1.442695, %v2793_v22  ;;  %v3008_v5 = vld [vmem:[#allocation9 + $0x8] sm:$0xff] }
 0x785   :  { %4575 = vpow2.f32 %v3316_v4 }
 0x786   :  { %4577 = vpow2.f32 %v3317_v8 }
 0x787   :  { %4579 = vpow2.f32 %v3318_v14  ;;  %v3155_v14 = vunpack.c.l.bf16 %v3008_v5 }
 0x788   :  { %4581 = vtanh.f32 %v2792_v37 }
 0x78c   :  { %v4574_v33 = vpop.eup %4573 }
 0x78d   :  { %v2633_v17 = vmul.f32 %v4574_v33, %v4572_v25  ;;  %v3156_v25 = vunpack.c.h.bf16 %v3008_v5 }
 0x78f   :  { %v4576_v45 = vpop.eup %4575  ;;  %v2636_v26 = vpack.c.bf16 %v2633_v17, %v2633_v17  ;;  %2893 = vmatmul.mubr.f32.vlgmr.msra.gmra.mrb[28].mxu0 %v2633_v17  ;;  %2964 = vmatmul.mubr.f32.vlgmr.msra.gmra.mrb[28].mxu1 %v2633_v17 }
 0x790   :  { %v4578_v32 = vpop.eup %4577  ;;  %v2797_v35 = vadd.f32 1.0, %v4576_v45  ;;  %4288 = vmatpush1.bf16.msra.mxu0 %v5071_v61  ;;  %4320 = vmatpush1.bf16.msra.mxu1 %v5090_v34 }
 0x791   :  { %v2803_v41 = vadd.f32 1.0, %v4578_v32  ;;  %2638 = vst [vmem:[#allocation15 + $0x18] sm:$0xf] %v2636_v26  ;;  %4290 = vmatprep.subr.bf16.mxu0 %v5074_v63  ;;  %4322 = vmatprep.subr.bf16.mxu1 %v5093_v38  ;;  %v4580_v61 = vpop.eup %4579 }
 0x792   :  { %4583 = vrcp.f32 %v2797_v35  ;;  %3075 = vmatprep.mubr.f32.mxu0 %v5888_v57  ;;  %3146 = vmatprep.mubr.f32.mxu1 %v5888_v57  ;;  %v4582_v63 = vpop.eup %4581 }
 0x793   :  { %4585 = vrcp.f32 %v2803_v41 }
 0x794   :  { %4292 = vmatpush1.bf16.msra.mxu0 %v5083_v21  ;;  %4324 = vmatpush1.bf16.msra.mxu1 %v5102_v59 }
 0x795   :  { %4294 = vmatprep.subr.bf16.mxu0 %v5087_v23  ;;  %4326 = vmatprep.subr.bf16.mxu1 %v5105_v3  ;;  %v2810_v23 = vadd.f32 1.0, %v4580_v61 }
 0x797   :  { %4587 = vrcp.f32 %v2810_v23 }
 0x798   :  { %4296 = vmatpush1.bf16.msra.mxu0 %v5096_v49  ;;  %4328 = vmatpush1.bf16.msra.mxu1 %v5889_v7 }
 0x799   :  { %4298 = vmatprep.subr.bf16.mxu0 %v5890_v12  ;;  %4330 = vmatprep.subr.bf16.mxu1 %v5891_v56 }
 0x79c   :  { %v4584_v34 = vpop.eup %4583  ;;  %4300 = vmatpush1.bf16.msra.mxu0 %v5892_v29  ;;  %4332 = vmatpush1.bf16.msra.mxu1 %v5893_v28 }
 0x79d   :  { %v4586_v21 = vpop.eup %4585  ;;  %v2814_v38 = vmul.f32 %v4584_v34, %v4582_v63  ;;  %4302 = vmatprep.subr.bf16.mxu0 %v5894_v43  ;;  %4334 = vmatprep.subr.bf16.mxu1 %v5895_v53 }
 0x79e   :  { %v2813_v49 = vmul.f32 %v4586_v21, %v5615_v0 }
 0x7a0   :  { %v5691_v59 = vadd.f32 %v2814_v38, %v2813_v49  ;;  %4304 = vmatpush1.bf16.msra.mxu0 %v5896_v24  ;;  %4336 = vmatpush1.bf16.msra.mxu1 %v5139_v39 }
 0x7a1   :  { %4306 = vmatprep.subr.bf16.mxu0 %v5897_v6  ;;  %4338 = vmatprep.subr.bf16.mxu1 %v5142_v54  ;;  %v4588_v3 = vpop.eup %4587 }
 0x7a2   :  { %4589 = vtanh.f32 %v5691_v59 }
 0x7a4   :  { %4308 = vmatpush1.bf16.msra.mxu0 %v5898_v10  ;;  %4340 = vmatpush1.bf16.msra.mxu1 %v5151_v16 }
 0x7a5   :  { %4310 = vmatprep.subr.bf16.mxu0 %v5136_v36  ;;  %4342 = vmatprep.subr.bf16.mxu1 %v5154_v20  ;;  %v2824_v36 = vld [vmem:[#allocation6 + $0x70] sm:$0xff] }
 0x7a6   :  { %v2970_v20 = vunpack.c.l.bf16 %v2824_v36 }
 0x7a8   :  { %4312 = vmatpush1.bf16.msra.mxu0 %v5145_v11  ;;  %4344 = vmatpush1.bf16.msra.mxu1 %v5161_v40  ;;  %v2971_v11 = vunpack.c.h.bf16 %v2824_v36 }
 0x7a9   :  { %4314 = vmatprep.subr.bf16.mxu0 %v5148_v60  ;;  %4346 = vmatprep.subr.bf16.mxu1 %v5164_v31  ;;  %v2825_v60 = vld [vmem:[#allocation6 + $0x78] sm:$0xff] }
 0x7aa   :  { %v2972_v43 = vunpack.c.l.bf16 %v2825_v60 }
 0x7ac   :  { %v4590_v39 = vpop.eup %4589  ;;  %4316 = vmatpush1.bf16.msra.mxu0 %v5157_v19  ;;  %4348 = vmatpush1.bf16.msra.mxu1 %v5168_v2  ;;  %v2973_v19 = vunpack.c.h.bf16 %v2825_v60 }
 0x7ad   :  { %v2817_v54 = vmul.f32 %v4590_v39, %v4588_v3 }
 0x7af   :  { %v2820_v16 = vpack.c.bf16 %v2817_v54, %v2817_v54  ;;  %3076 = vmatmul.mubr.f32.vlgmr.msra.gmra.mrb[30].mxu0 %v2817_v54  ;;  %3147 = vmatmul.mubr.f32.vlgmr.msra.gmra.mrb[30].mxu1 %v2817_v54 }
 0x7b1   :  { %2822 = vst [vmem:[#allocation16 + $0x4] sm:$0xf] %v2820_v16 }
 0x862   :  { %v2894_v57 = vpop.f32.mrb[28].mxu0  ;;  %v2965_v40 = vpop.f32.mrb[28].mxu1 }
 0x863   :  { %v2974_v7 = vadd.f32 %v2970_v20, %v2894_v57  ;;  %v2896_v12 = vpop.f32.mrb[29].mxu0  ;;  %v2967_v31 = vpop.f32.mrb[29].mxu1  ;;  %v2976_v24 = vadd.f32 %v2972_v43, %v2965_v40 }
 0x864   :  { %v2975_v56 = vadd.f32 %v2971_v11, %v2896_v12  ;;  %v2977_v2 = vadd.f32 %v2973_v19, %v2967_v31 }
 0x865   :  { %v3319_v29 = vmul.f32 -1.442695, %v2974_v7 }
 0x866   :  { %v3320_v28 = vmul.f32 -1.442695, %v2975_v56  ;;  %v3321_v53 = vmul.f32 -1.442695, %v2977_v2 }
 0x867   :  { %4591 = vpow2.f32 %v3319_v29 }
 0x868   :  { %4593 = vpow2.f32 %v3320_v28 }
 0x869   :  { %4595 = vpow2.f32 %v3321_v53 }
 0x86a   :  { %4597 = vtanh.f32 %v2976_v24 }
 0x871   :  { %v4592_v6 = vpop.eup %4591 }
 0x872   :  { %v4594_v10 = vpop.eup %4593  ;;  %v2981_v0 = vadd.f32 1.0, %v4592_v6 }
 0x873   :  { %v2987_v42 = vadd.f32 1.0, %v4594_v10  ;;  %v4596_v62 = vpop.eup %4595 }
 0x874   :  { %4599 = vrcp.f32 %v2981_v0  ;;  %v4598_v55 = vpop.eup %4597  ;;  %v2994_v52 = vadd.f32 1.0, %v4596_v62 }
 0x875   :  { %4601 = vrcp.f32 %v2987_v42 }
 0x876   :  { %4603 = vrcp.f32 %v2994_v52 }
 0x87e   :  { %v4600_v58 = vpop.eup %4599 }
 0x87f   :  { %v4602_v48 = vpop.eup %4601  ;;  %v2998_v1 = vmul.f32 %v4600_v58, %v4598_v55 }
 0x880   :  { %v2997_v18 = vmul.f32 %v4602_v48, %v5669_v15  ;;  %v4604_v15 = vpop.eup %4603 }
 0x882   :  { %v2999_v50 = vadd.f32 %v2998_v1, %v2997_v18  ;;  %v3077_v27 = vpop.f32.mrb[30].mxu0  ;;  %v3148_v13 = vpop.f32.mrb[30].mxu1 }
 0x883   :  { %v3157_v44 = vadd.f32 %v3153_v30, %v3077_v27  ;;  %v3079_v4 = vpop.f32.mrb[31].mxu0  ;;  %v3150_v8 = vpop.f32.mrb[31].mxu1  ;;  %v3159_v26 = vadd.f32 %v3155_v14, %v3148_v13 }
 0x884   :  { %4605 = vtanh.f32 %v2999_v50  ;;  %3198 = vst [vmem:[#allocation19] sm:$0xff] %v2999_v50  ;;  %v3158_v9 = vadd.f32 %v3154_v47, %v3079_v4  ;;  %v3160_v33 = vadd.f32 %v3156_v25, %v3150_v8 }
 0x885   :  { %v3322_v22 = vmul.f32 -1.442695, %v3157_v44 }
 0x886   :  { %v3323_v51 = vmul.f32 -1.442695, %v3158_v9  ;;  %v3324_v17 = vmul.f32 -1.442695, %v3160_v33 }
 0x887   :  { %4607 = vpow2.f32 %v3322_v22 }
 0x888   :  { %4609 = vpow2.f32 %v3323_v51 }
 0x889   :  { %4611 = vpow2.f32 %v3324_v17 }
 0x88a   :  { %4613 = vtanh.f32 %v3159_v26 }
 0x88e   :  { %v4606_v37 = vpop.eup %4605 }
 0x88f   :  { %v3001_v45 = vmul.f32 %v4606_v37, %v4604_v15 }
 0x891   :  { %v4608_v32 = vpop.eup %4607  ;;  %v3004_v35 = vpack.c.bf16 %v3001_v45, %v3001_v45  ;;  %3193 = vst [vmem:[#allocation18] sm:$0xff] %v3001_v45 }
 0x892   :  { %v4610_v41 = vpop.eup %4609  ;;  %v3164_v61 = vadd.f32 1.0, %v4608_v32 }
 0x893   :  { %3006 = vst [vmem:[#allocation15 + $0x1c] sm:$0xf] %v3004_v35  ;;  %v3170_v63 = vadd.f32 1.0, %v4610_v41 }
 0x894   :  { %4615 = vrcp.f32 %v3164_v61 }
 0x895   :  { %4744 = shalt.err (!%p4741_p2)
}
 0x896   :  { %s4745_s17 = scalar_lea.hbm %s5783_s6, 512 }
 0x897   :  { %p4746_p3 = scmp.ne.s32.totalorder %s5783_s6, %s4745_s17  ;;  %p4749_p4 = scmp.lt.u32.totalorder %s4745_s17, %s5783_s6 }
 0x899   :  { %p4751_p5 = pnand %p4749_p4, %p4746_p3 }
 0x89b   :  { %4754 = shalt.err (!%p4751_p5)
}
 0x89c   :  { %s4846_s20 = smov 64   ;;  %s4847_s26 = smov 4   ;;  %4617 = vrcp.f32 %v3170_v63  ;;  %v4612_v34 = vpop.eup %4611 }
 0x89d   :  { %3213 = dma.vmem_to_hbm [thread:$0]  %s3208_s13, 512, %s5783_s6, [#allocation8], %s4846_s20, %s4846_s20, %s4847_s26   ;;  %v4614_v21 = vpop.eup %4613  ;;  %v3177_v3 = vadd.f32 1.0, %v4612_v34 }
 0x89e   :  { %v4616_v38 = vpop.eup %4615  ;;  %s4848_s25 = smov [#allocation19]  }
 0x89f   :  { %v3181_v49 = vmul.f32 %v4616_v38, %v4614_v21  ;;  %s3247_s27 = sshll.u32 %s4848_s25, 4  ;;  %4619 = vrcp.f32 %v3177_v3  ;;  %s3248_s27 = int_to_ptr.vmem [resolvable:$true] %s3247_s27 }
 0x8a0   :  { %s4755_s28 = scalar_lea.vmem %s3248_s27, 256  ;;  %p4760_p7 = scmp.lt.s32.totalorder %s3248_s27, %s3248_s27 }
 0x8a1   :  { %p4756_p6 = scmp.ne.s32.totalorder %s3248_s27, %s4755_s28  ;;  %p4761_p8 = scmp.lt.s32.totalorder %s4755_s28, %s4755_s28 }
 0x8a3   :  { %p4762_p9 = por %p4761_p8, %p4760_p7 }
 0x8a5   :  { %p4763_p10 = pnand %p4762_p9, %p4756_p6 }
 0x8a6   :  { %v4618_v23 = vpop.eup %4617 }
 0x8a7   :  { %v3180_v39 = vmul.f32 %v4618_v23, %v5691_v59 }
 0x8a9   :  { %v3182_v54 = vadd.f32 %v3181_v49, %v3180_v39 }
 0x8ab   :  { %4621 = vtanh.f32 %v3182_v54  ;;  %3201 = vst [vmem:[#allocation19 + $0x8] sm:$0xff] %v3182_v54 }
 0x8ac   :  { %4766 = shalt.err (!%p4763_p10)
}
 0x8ad   :  { %s4767_s24 = scalar_lea.hbm %s5786_s9, 256 }
 0x8ae   :  { %p4768_p11 = scmp.ne.s32.totalorder %s5786_s9, %s4767_s24  ;;  %p4771_p12 = scmp.lt.u32.totalorder %s4767_s24, %s5786_s9 }
 0x8b0   :  { %p4773_p13 = pnand %p4771_p12, %p4768_p11 }
 0x8b2   :  { %4776 = shalt.err (!%p4773_p13)
}
 0x8b3   :  { %3253 = dma.vmem_to_hbm [thread:$0]  %s3248_s27, 256, %s5786_s9, [#allocation20], %s4842_s2, %s4842_s2, %s4843_s10   ;;  %v4620_v59 = vpop.eup %4619 }
 0x8b4   :  { %s4849_s5 = smov [#allocation16]   ;;  %s4850_s1 = smov [#allocation18]  }
 0x8b5   :  { %v4622_v16 = vpop.eup %4621  ;;  %s3223_s13 = sshll.u32 %s4849_s5, 4  ;;  %s3235_s15 = sshll.u32 %s4850_s1, 4  ;;  %s3224_s13 = int_to_ptr.vmem [resolvable:$true] %s3223_s13  ;;  %s5740_s15 = int_to_ptr.vmem [resolvable:$true] %s3235_s15 }
 0x8b6   :  { %v3184_v36 = vmul.f32 %v4622_v16, %v4620_v59  ;;  %s4777_s16 = scalar_lea.vmem %s3224_s13, 512  ;;  %p4782_p1 = scmp.lt.s32.totalorder %s3224_s13, %s3224_s13 }
 0x8b7   :  { %p4778_p0 = scmp.ne.s32.totalorder %s3224_s13, %s4777_s16  ;;  %p4783_p2 = scmp.lt.s32.totalorder %s4777_s16, %s4777_s16 }
 0x8b8   :  { %v3187_v20 = vpack.c.bf16 %v3184_v36, %v3184_v36  ;;  %3196 = vst [vmem:[#allocation18 + $0x8] sm:$0xff] %v3184_v36 }
 0x8b9   :  { %p4784_p3 = por %p4783_p2, %p4782_p1 }
 0x8ba   :  { %3188 = vst [vmem:[#allocation16] sm:$0xf] %v3187_v20 }
 0x8bb   :  { %p4785_p4 = pnand %p4784_p3, %p4778_p0 }
 0x8bd   :  { %4788 = shalt.err (!%p4785_p4)
}
 0x8be   :  { %s4789_s18 = scalar_lea.hbm %s5784_s7, 512 }
 0x8bf   :  { %p4790_p5 = scmp.ne.s32.totalorder %s5784_s7, %s4789_s18  ;;  %p4793_p6 = scmp.lt.u32.totalorder %s4789_s18, %s5784_s7 }
 0x8c1   :  { %p4795_p7 = pnand %p4793_p6, %p4790_p5 }
 0x8c3   :  { %4798 = shalt.err (!%p4795_p7)
}
 0x8c4   :  { %3229 = dma.vmem_to_hbm [thread:$0]  %s3224_s13, 512, %s5784_s7, [#allocation17], %s4846_s20, %s4846_s20, %s4847_s26  }
 0x8c5   :  { %s4799_s27 = scalar_lea.vmem %s5740_s15, 256  ;;  %p4804_p9 = scmp.lt.s32.totalorder %s5740_s15, %s5740_s15 }
 0x8c6   :  { %p4800_p8 = scmp.ne.s32.totalorder %s5740_s15, %s4799_s27  ;;  %p4805_p10 = scmp.lt.s32.totalorder %s4799_s27, %s4799_s27 }
 0x8c8   :  { %p4806_p11 = por %p4805_p10, %p4804_p9 }
 0x8ca   :  { %p4807_p12 = pnand %p4806_p11, %p4800_p8 }
 0x8cc   :  { %4810 = shalt.err (!%p4807_p12)
}
 0x8cd   :  { %s4811_s3 = scalar_lea.hbm %s5785_s8, 256 }
 0x8ce   :  { %p4812_p13 = scmp.ne.s32.totalorder %s5785_s8, %s4811_s3  ;;  %p4815_p0 = scmp.lt.u32.totalorder %s4811_s3, %s5785_s8 }
 0x8d0   :  { %p4817_p1 = pnand %p4815_p0, %p4812_p13 }
 0x8d2   :  { %4820 = shalt.err (!%p4817_p1)
}
 0x8d3   :  { %3241 = dma.vmem_to_hbm [thread:$0]  %s5740_s15, 256, %s5785_s8, [#allocation17], %s4842_s2, %s4842_s2, %s4843_s10  }
 0x8d4   :  { %4827 = dma.done.wait [#allocation8], 512  }
 0x8d5   :  { %4828 = vsyncadd [#allocation8], 4294966784 }
 0x8d6   :  { %4829 = dma.done.wait [#allocation17], 768  }
 0x8d7   :  { %4830 = vsyncadd [#allocation17], 4294966528 }
 0x8d8   :  { %4831 = dma.done.wait [#allocation20], 256  }
 0x8d9   :  { %4832 = vsyncadd [#allocation20], 4294967040 }
 0x8da   :  { %3266 = vsyncpa [#allocation7], 1 }
 0x8db   :  { %3267 = vsyncpa [#allocation10], 1 }
 0x8dc   :  { %3268 = vsyncpa [#allocation13], 1 }
 0x8dd   :  { %3269 = vsyncpa [#allocation8], 1 }
 0x8de   :  { %3270 = vsyncpa [#allocation17], 1 }
 0x8df   :  { %3271 = vsyncpa [#allocation20], 1 }

</bundles_post_ra>
